<compile_context>
chip_gen: v5e
topology: v5e:2x2
jax: 0.10.0
libtpu: 0.0.40
codegen_flags: <defaults>
</compile_context>

<pallas_src>
import functools

import jax
import jax.numpy as jnp
from jax import lax
from jax.experimental import pallas as pl
from jax.experimental.pallas import tpu as pltpu


# Column (sublane) offset at which the padded interior is stored inside the
# VMEM scratch.  8 keeps the interior store tile-aligned; column _PAD_COL0-1
# provides the left zero pad and column _PAD_COL0+W the right zero pad.
_PAD_COL0 = 8


# ----------------------------------------------------------------------------
# Kernel: one batch element per grid step, both conv stages fused.
# ----------------------------------------------------------------------------
def _bup_double_conv_kernel(x_ref,               # (1, H, W, C_in)
                            w1_ref, b1_ref,      # (9*C_in, C_mid), (1, C_mid)
                            w2_ref, b2_ref,      # (9*C_mid, C_out), (1, C_out)
                            out_ref,             # (1, H*W, C_out)
                            pad1_ref,            # VMEM (H+2, Wp, C_in)
                            pad2_ref):           # VMEM (H+2, Wp, C_mid)
    H, W = x_ref.shape[1], x_ref.shape[2]
    C_mid = w1_ref.shape[1]
    HW = H * W
    c0 = _PAD_COL0

    def conv3x3_bias_relu(pad_ref, interior_hwc, w_ref, b_ref):
        """SAME 3x3 conv + folded-BN bias + ReLU as a single im2col matmul."""
        c = interior_hwc.shape[-1]
        # In-kernel zero padding: zero the scratch, then drop the interior at a
        # sublane-aligned offset.  Rows 0 / H+1 and columns c0-1 / c0+W stay
        # zero and act as the SAME padding border.
        pad_ref[...] = jnp.zeros_like(pad_ref)
        pad_ref[pl.ds(1, H), pl.ds(c0, W), :] = interior_hwc
        xp = pad_ref[...]
        # im2col: one (HW, 9*C) slab -> a single MXU matmul instead of nine
        # shifted K=C matmuls.  Each concatenated piece is C lanes wide
        # (a multiple of 128 at the demo width), so the lane concat is aligned.
        patches = jnp.concatenate(
            [xp[dy:dy + H, c0 - 1 + dx:c0 - 1 + dx + W, :].reshape(HW, c)
             for dy in range(3) for dx in range(3)],
            axis=-1)                                               # (HW, 9*C)
        acc = jnp.dot(patches, w_ref[...],
                      preferred_element_type=jnp.float32)          # (HW, Cout)
        return jnp.maximum(acc + b_ref[...], 0.0)

    # TODO(synk): nn.Dropout2d is identity in eval mode; training-mode channel
    # dropout and batch-statistics BatchNorm are not modeled here.
    xv = x_ref[0].astype(jnp.float32)                              # (H, W, C_in)
    y1 = conv3x3_bias_relu(pad1_ref, xv, w1_ref, b1_ref)           # (HW, C_mid)
    y2 = conv3x3_bias_relu(pad2_ref, y1.reshape(H, W, C_mid),
                           w2_ref, b2_ref)                         # (HW, C_out)
    out_ref[0] = y2.astype(out_ref.dtype)                          # lane-dense store


# ----------------------------------------------------------------------------
# Wrappers (NHWC primary; thin NCHW adapter for PyTorch parity only).
# ----------------------------------------------------------------------------
def bup_double_conv_nhwc(x, params):
    """Fused eval-mode BUpDoubleConv.  x: (N, H, W, C_in) -> (N, H, W, C_out)."""
    w1, b1, w2, b2 = params
    N, H, W, C_in = x.shape
    C_mid = w1.shape[1]
    C_out = w2.shape[1]
    HW = H * W
    assert W % 8 == 0, "W is expected to be a multiple of 8 (sublane tile)"
    Wp = W + 2 * _PAD_COL0                       # padded-scratch column extent

    full = lambda a: pl.BlockSpec(a.shape, lambda b: (0,) * a.ndim)

    out = pl.pallas_call(
        _bup_double_conv_kernel,
        out_shape=jax.ShapeDtypeStruct((N, HW, C_out), x.dtype),
        grid_spec=pltpu.PrefetchScalarGridSpec(
            num_scalar_prefetch=0,
            grid=(N,),
            in_specs=[
                pl.BlockSpec((1, H, W, C_in), lambda b: (b, 0, 0, 0)),
                full(w1), full(b1), full(w2), full(b2),
            ],
            out_specs=pl.BlockSpec((1, HW, C_out), lambda b: (b, 0, 0)),
            scratch_shapes=[
                pltpu.VMEM((H + 2, Wp, C_in), jnp.float32),
                pltpu.VMEM((H + 2, Wp, C_mid), jnp.float32),
            ],
        ),
        compiler_params=pltpu.CompilerParams(
            # Batch elements are independent -> megacore-shard on v7x.
            dimension_semantics=("parallel",),
            vmem_limit_bytes=32 * 1024 * 1024,
        ),
    )(x, w1, b1, w2, b2)
    return out.reshape(N, H, W, C_out)


def bup_double_conv_nchw(x_nchw, params):
    """PyTorch-parity adapter (NCHW in/out).  Prefer the NHWC entry point and keep
    the model NHWC end-to-end to avoid these layout transposes in the hot path."""
    x = jnp.transpose(x_nchw, (0, 2, 3, 1))
    y = bup_double_conv_nhwc(x, params)
    return jnp.transpose(y, (0, 3, 1, 2))


# ----------------------------------------------------------------------------
# Parameters: deterministic synthetic Conv+BN weights, BN folded for the kernel.
# ----------------------------------------------------------------------------
def _bn_fold(w, b, gamma, beta, mean, var, eps=1e-5):
    """Fold y = BN(conv(x; w) + b) into (w', b').  Last axis of w = out channels."""
    scale = gamma / jnp.sqrt(var + eps)
    return w * scale, (b - mean) * scale + beta


def make_params(key, C_in, C_mid, C_out):
    """Returns (raw, folded):
       raw    = ((w1, b1, bn1), (w2, b2, bn2))   HWIO conv weights + BN stats
       folded = (w1f, b1f, w2f, b2f)             BN folded, w reshaped (9*Cin, Cout)"""
    ks = jax.random.split(key, 6)

    def bn_stats(k, c):
        k1, k2, k3, k4 = jax.random.split(k, 4)
        gamma = 1.0 + 0.1 * jax.random.normal(k1, (c,), jnp.float32)
        beta = 0.1 * jax.random.normal(k2, (c,), jnp.float32)
        mean = 0.1 * jax.random.normal(k3, (c,), jnp.float32)
        var = 0.5 + 0.5 * jnp.abs(jax.random.normal(k4, (c,), jnp.float32))
        return gamma, beta, mean, var

    w1 = 0.03 * jax.random.normal(ks[0], (3, 3, C_in, C_mid), jnp.float32)
    b1 = 0.1 * jax.random.normal(ks[1], (C_mid,), jnp.float32)
    bn1 = bn_stats(ks[2], C_mid)
    w2 = 0.03 * jax.random.normal(ks[3], (3, 3, C_mid, C_out), jnp.float32)
    b2 = 0.1 * jax.random.normal(ks[4], (C_out,), jnp.float32)
    bn2 = bn_stats(ks[5], C_out)

    w1f, b1f = _bn_fold(w1, b1, *bn1)
    w2f, b2f = _bn_fold(w2, b2, *bn2)
    folded = (w1f.reshape(9 * C_in, C_mid), b1f.reshape(1, C_mid),
              w2f.reshape(9 * C_mid, C_out), b2f.reshape(1, C_out))
    raw = ((w1, b1, bn1), (w2, b2, bn2))
    return raw, folded


# ----------------------------------------------------------------------------
# Pure-JAX eval-mode reference (explicit BN, no folding) for correctness check.
# ----------------------------------------------------------------------------
def reference_nchw(x_nchw, raw_params, eps=1e-5):
    (w1, b1, bn1), (w2, b2, bn2) = raw_params
    x = jnp.transpose(x_nchw, (0, 2, 3, 1))

    def stage(v, w, b, bn):
        gamma, beta, mean, var = bn
        y = lax.conv_general_dilated(
            v, w, (1, 1), "SAME",
            dimension_numbers=("NHWC", "HWIO", "NHWC")) + b
        y = gamma * (y - mean) / jnp.sqrt(var + eps) + beta
        return jax.nn.relu(y)

    y = stage(stage(x, w1, b1, bn1), w2, b2, bn2)
    return jnp.transpose(y, (0, 3, 1, 2))


if __name__ == "__main__":
    # BUpDoubleConv(in_channels=128, out_channels=128, dropout_rate=0.1), eval.
    # Channel width 128 (= one full lane tile) is representative of real U-Net
    # widths and keeps every block lane-aligned; batch/spatial kept small.
    N, H, W = 2, 16, 16
    C_in, C_out = 128, 128
    C_mid = C_out                                  # mid_channels defaults to out

    key = jax.random.PRNGKey(0)
    kx, kp = jax.random.split(key)
    x_nchw = jax.random.normal(kx, (N, C_in, H, W), jnp.float32)
    raw_params, folded_params = make_params(kp, C_in, C_mid, C_out)

    fwd = jax.jit(functools.partial(bup_double_conv_nchw, params=folded_params))
    out = jax.block_until_ready(fwd(x_nchw))

    ref = reference_nchw(x_nchw, raw_params)
    assert out.shape == (N, C_out, H, W)
    max_err = float(jnp.max(jnp.abs(out - ref)))
    assert jnp.allclose(out, ref, rtol=5e-4, atol=5e-4), max_err
    print("KERNEL_OK")
</pallas_src>

<mosaic_0001>
module attributes {stable_mosaic.version = 11 : i64} {
  func.func @_bup_double_conv_kernel(%arg0: i32, %arg1: memref<1x16x16x128xf32, #tpu.memory_space<vmem>>, %arg2: memref<1152x128xf32, #tpu.memory_space<vmem>>, %arg3: memref<1x128xf32, #tpu.memory_space<vmem>>, %arg4: memref<1152x128xf32, #tpu.memory_space<vmem>>, %arg5: memref<1x128xf32, #tpu.memory_space<vmem>>, %arg6: memref<1x256x128xf32, #tpu.memory_space<vmem>>, %arg7: memref<18x32x128xf32, #tpu.memory_space<vmem>>, %arg8: memref<18x32x128xf32, #tpu.memory_space<vmem>>) attributes {dimension_semantics = [#tpu.dimension_semantics<parallel>], iteration_bounds = array<i64: 2>, scalar_prefetch = 0 : i64, scratch_operands = 2 : i64, tpu.core_type = #tpu.core_type<tc>, window_params = [{transform_indices = @transform_0, window_bounds = array<i64: 1, 16, 16, 128>}, {pipeline_mode = #tpu.pipeline_mode<synchronous>, transform_indices = @transform_1, window_bounds = array<i64: 1152, 128>}, {pipeline_mode = #tpu.pipeline_mode<synchronous>, transform_indices = @transform_2, window_bounds = array<i64: 1, 128>}, {pipeline_mode = #tpu.pipeline_mode<synchronous>, transform_indices = @transform_3, window_bounds = array<i64: 1152, 128>}, {pipeline_mode = #tpu.pipeline_mode<synchronous>, transform_indices = @transform_4, window_bounds = array<i64: 1, 128>}, {transform_indices = @transform_5, window_bounds = array<i64: 1, 256, 128>}]} {
    %c0 = arith.constant 0 : index
    %c0_0 = arith.constant 0 : index
    %c0_1 = arith.constant 0 : index
    %c0_2 = arith.constant 0 : index
    %0 = vector.load %arg1[%c0, %c0_0, %c0_1, %c0_2] : memref<1x16x16x128xf32, #tpu.memory_space<vmem>>, vector<1x16x16x128xf32>
    %1 = vector.shape_cast %0 : vector<1x16x16x128xf32> to vector<16x16x128xf32>
    %cst = arith.constant 0.000000e+00 : f32
    %2 = vector.broadcast %cst : f32 to vector<18x32x128xf32>
    %c0_3 = arith.constant 0 : index
    %c0_4 = arith.constant 0 : index
    %c0_5 = arith.constant 0 : index
    %3 = vector.load %arg7[%c0_3, %c0_4, %c0_5] : memref<18x32x128xf32, #tpu.memory_space<vmem>>, vector<18x32x128xf32>
    tpu.vector_store %arg7[%c0_3, %c0_4, %c0_5], %2 {strides = array<i32>} : memref<18x32x128xf32, #tpu.memory_space<vmem>>, vector<18x32x128xf32>,
    %c1 = arith.constant 1 : index
    %c8 = arith.constant 8 : index
    %c0_6 = arith.constant 0 : index
    %4 = vector.load %arg7[%c1, %c8, %c0_6] : memref<18x32x128xf32, #tpu.memory_space<vmem>>, vector<16x16x128xf32>
    tpu.vector_store %arg7[%c1, %c8, %c0_6], %1 {strides = array<i32>} : memref<18x32x128xf32, #tpu.memory_space<vmem>>, vector<16x16x128xf32>,
    %c0_7 = arith.constant 0 : index
    %c0_8 = arith.constant 0 : index
    %c0_9 = arith.constant 0 : index
    %5 = vector.load %arg7[%c0_7, %c0_8, %c0_9] : memref<18x32x128xf32, #tpu.memory_space<vmem>>, vector<18x32x128xf32>
    %6 = vector.extract_strided_slice %5 {offsets = [0, 7, 0], sizes = [16, 16, 128], strides = [1, 1, 1]} : vector<18x32x128xf32> to vector<16x16x128xf32>
    %7 = vector.shape_cast %6 : vector<16x16x128xf32> to vector<256x128xf32>
    %8 = vector.extract_strided_slice %5 {offsets = [0, 8, 0], sizes = [16, 16, 128], strides = [1, 1, 1]} : vector<18x32x128xf32> to vector<16x16x128xf32>
    %9 = vector.shape_cast %8 : vector<16x16x128xf32> to vector<256x128xf32>
    %10 = vector.extract_strided_slice %5 {offsets = [0, 9, 0], sizes = [16, 16, 128], strides = [1, 1, 1]} : vector<18x32x128xf32> to vector<16x16x128xf32>
    %11 = vector.shape_cast %10 : vector<16x16x128xf32> to vector<256x128xf32>
    %12 = vector.extract_strided_slice %5 {offsets = [1, 7, 0], sizes = [16, 16, 128], strides = [1, 1, 1]} : vector<18x32x128xf32> to vector<16x16x128xf32>
    %13 = vector.shape_cast %12 : vector<16x16x128xf32> to vector<256x128xf32>
    %14 = vector.extract_strided_slice %5 {offsets = [1, 8, 0], sizes = [16, 16, 128], strides = [1, 1, 1]} : vector<18x32x128xf32> to vector<16x16x128xf32>
    %15 = vector.shape_cast %14 : vector<16x16x128xf32> to vector<256x128xf32>
    %16 = vector.extract_strided_slice %5 {offsets = [1, 9, 0], sizes = [16, 16, 128], strides = [1, 1, 1]} : vector<18x32x128xf32> to vector<16x16x128xf32>
    %17 = vector.shape_cast %16 : vector<16x16x128xf32> to vector<256x128xf32>
    %18 = vector.extract_strided_slice %5 {offsets = [2, 7, 0], sizes = [16, 16, 128], strides = [1, 1, 1]} : vector<18x32x128xf32> to vector<16x16x128xf32>
    %19 = vector.shape_cast %18 : vector<16x16x128xf32> to vector<256x128xf32>
    %20 = vector.extract_strided_slice %5 {offsets = [2, 8, 0], sizes = [16, 16, 128], strides = [1, 1, 1]} : vector<18x32x128xf32> to vector<16x16x128xf32>
    %21 = vector.shape_cast %20 : vector<16x16x128xf32> to vector<256x128xf32>
    %22 = vector.extract_strided_slice %5 {offsets = [2, 9, 0], sizes = [16, 16, 128], strides = [1, 1, 1]} : vector<18x32x128xf32> to vector<16x16x128xf32>
    %23 = vector.shape_cast %22 : vector<16x16x128xf32> to vector<256x128xf32>
    %24 = tpu.concatenate %7, %9, %11, %13, %15, %17, %19, %21, %23 in 1 : vector<256x128xf32>, vector<256x128xf32>, vector<256x128xf32>, vector<256x128xf32>, vector<256x128xf32>, vector<256x128xf32>, vector<256x128xf32>, vector<256x128xf32>, vector<256x128xf32> -> vector<256x1152xf32>
    %c0_10 = arith.constant 0 : index
    %c0_11 = arith.constant 0 : index
    %25 = vector.load %arg2[%c0_10, %c0_11] : memref<1152x128xf32, #tpu.memory_space<vmem>>, vector<1152x128xf32>
    %cst_12 = arith.constant dense<0.000000e+00> : vector<256x128xf32>
    %26 = tpu.matmul %24, %25, %cst_12 {dimension_numbers = #tpu.dot_dimension_numbers<[1], [0], [0], [1], [0, 0, 1, 1], [], []>} : vector<256x1152xf32>, vector<1152x128xf32>, vector<256x128xf32> -> vector<256x128xf32>
    %c0_13 = arith.constant 0 : index
    %c0_14 = arith.constant 0 : index
    %27 = vector.load %arg3[%c0_13, %c0_14] : memref<1x128xf32, #tpu.memory_space<vmem>>, vector<1x128xf32>
    %28 = vector.broadcast %27 : vector<1x128xf32> to vector<256x128xf32>
    %29 = arith.addf %26, %28 : vector<256x128xf32>
    %cst_15 = arith.constant 0.000000e+00 : f32
    %30 = vector.broadcast %cst_15 : f32 to vector<256x128xf32>
    %31 = arith.maximumf %29, %30 : vector<256x128xf32>
    %32 = vector.shape_cast %31 : vector<256x128xf32> to vector<16x16x128xf32>
    %cst_16 = arith.constant 0.000000e+00 : f32
    %33 = vector.broadcast %cst_16 : f32 to vector<18x32x128xf32>
    %c0_17 = arith.constant 0 : index
    %c0_18 = arith.constant 0 : index
    %c0_19 = arith.constant 0 : index
    %34 = vector.load %arg8[%c0_17, %c0_18, %c0_19] : memref<18x32x128xf32, #tpu.memory_space<vmem>>, vector<18x32x128xf32>
    tpu.vector_store %arg8[%c0_17, %c0_18, %c0_19], %33 {strides = array<i32>} : memref<18x32x128xf32, #tpu.memory_space<vmem>>, vector<18x32x128xf32>,
    %c1_20 = arith.constant 1 : index
    %c8_21 = arith.constant 8 : index
    %c0_22 = arith.constant 0 : index
    %35 = vector.load %arg8[%c1_20, %c8_21, %c0_22] : memref<18x32x128xf32, #tpu.memory_space<vmem>>, vector<16x16x128xf32>
    tpu.vector_store %arg8[%c1_20, %c8_21, %c0_22], %32 {strides = array<i32>} : memref<18x32x128xf32, #tpu.memory_space<vmem>>, vector<16x16x128xf32>,
    %c0_23 = arith.constant 0 : index
    %c0_24 = arith.constant 0 : index
    %c0_25 = arith.constant 0 : index
    %36 = vector.load %arg8[%c0_23, %c0_24, %c0_25] : memref<18x32x128xf32, #tpu.memory_space<vmem>>, vector<18x32x128xf32>
    %37 = vector.extract_strided_slice %36 {offsets = [0, 7, 0], sizes = [16, 16, 128], strides = [1, 1, 1]} : vector<18x32x128xf32> to vector<16x16x128xf32>
    %38 = vector.shape_cast %37 : vector<16x16x128xf32> to vector<256x128xf32>
    %39 = vector.extract_strided_slice %36 {offsets = [0, 8, 0], sizes = [16, 16, 128], strides = [1, 1, 1]} : vector<18x32x128xf32> to vector<16x16x128xf32>
    %40 = vector.shape_cast %39 : vector<16x16x128xf32> to vector<256x128xf32>
    %41 = vector.extract_strided_slice %36 {offsets = [0, 9, 0], sizes = [16, 16, 128], strides = [1, 1, 1]} : vector<18x32x128xf32> to vector<16x16x128xf32>
    %42 = vector.shape_cast %41 : vector<16x16x128xf32> to vector<256x128xf32>
    %43 = vector.extract_strided_slice %36 {offsets = [1, 7, 0], sizes = [16, 16, 128], strides = [1, 1, 1]} : vector<18x32x128xf32> to vector<16x16x128xf32>
    %44 = vector.shape_cast %43 : vector<16x16x128xf32> to vector<256x128xf32>
    %45 = vector.extract_strided_slice %36 {offsets = [1, 8, 0], sizes = [16, 16, 128], strides = [1, 1, 1]} : vector<18x32x128xf32> to vector<16x16x128xf32>
    %46 = vector.shape_cast %45 : vector<16x16x128xf32> to vector<256x128xf32>
    %47 = vector.extract_strided_slice %36 {offsets = [1, 9, 0], sizes = [16, 16, 128], strides = [1, 1, 1]} : vector<18x32x128xf32> to vector<16x16x128xf32>
    %48 = vector.shape_cast %47 : vector<16x16x128xf32> to vector<256x128xf32>
    %49 = vector.extract_strided_slice %36 {offsets = [2, 7, 0], sizes = [16, 16, 128], strides = [1, 1, 1]} : vector<18x32x128xf32> to vector<16x16x128xf32>
    %50 = vector.shape_cast %49 : vector<16x16x128xf32> to vector<256x128xf32>
    %51 = vector.extract_strided_slice %36 {offsets = [2, 8, 0], sizes = [16, 16, 128], strides = [1, 1, 1]} : vector<18x32x128xf32> to vector<16x16x128xf32>
    %52 = vector.shape_cast %51 : vector<16x16x128xf32> to vector<256x128xf32>
    %53 = vector.extract_strided_slice %36 {offsets = [2, 9, 0], sizes = [16, 16, 128], strides = [1, 1, 1]} : vector<18x32x128xf32> to vector<16x16x128xf32>
    %54 = vector.shape_cast %53 : vector<16x16x128xf32> to vector<256x128xf32>
    %55 = tpu.concatenate %38, %40, %42, %44, %46, %48, %50, %52, %54 in 1 : vector<256x128xf32>, vector<256x128xf32>, vector<256x128xf32>, vector<256x128xf32>, vector<256x128xf32>, vector<256x128xf32>, vector<256x128xf32>, vector<256x128xf32>, vector<256x128xf32> -> vector<256x1152xf32>
    %c0_26 = arith.constant 0 : index
    %c0_27 = arith.constant 0 : index
    %56 = vector.load %arg4[%c0_26, %c0_27] : memref<1152x128xf32, #tpu.memory_space<vmem>>, vector<1152x128xf32>
    %cst_28 = arith.constant dense<0.000000e+00> : vector<256x128xf32>
    %57 = tpu.matmul %55, %56, %cst_28 {dimension_numbers = #tpu.dot_dimension_numbers<[1], [0], [0], [1], [0, 0, 1, 1], [], []>} : vector<256x1152xf32>, vector<1152x128xf32>, vector<256x128xf32> -> vector<256x128xf32>
    %c0_29 = arith.constant 0 : index
    %c0_30 = arith.constant 0 : index
    %58 = vector.load %arg5[%c0_29, %c0_30] : memref<1x128xf32, #tpu.memory_space<vmem>>, vector<1x128xf32>
    %59 = vector.broadcast %58 : vector<1x128xf32> to vector<256x128xf32>
    %60 = arith.addf %57, %59 : vector<256x128xf32>
    %cst_31 = arith.constant 0.000000e+00 : f32
    %61 = vector.broadcast %cst_31 : f32 to vector<256x128xf32>
    %62 = arith.maximumf %60, %61 : vector<256x128xf32>
    %c0_32 = arith.constant 0 : index
    %c0_33 = arith.constant 0 : index
    %c0_34 = arith.constant 0 : index
    %63 = vector.load %arg6[%c0_32, %c0_33, %c0_34] : memref<1x256x128xf32, #tpu.memory_space<vmem>>, vector<1x256x128xf32>
    %64 = vector.shape_cast %63 : vector<1x256x128xf32> to vector<256x128xf32>
    %65 = vector.shape_cast %62 : vector<256x128xf32> to vector<1x256x128xf32>
    tpu.vector_store %arg6[%c0_32, %c0_33, %c0_34], %65 {strides = array<i32>} : memref<1x256x128xf32, #tpu.memory_space<vmem>>, vector<1x256x128xf32>,
    return
  }
  func.func @transform_0(%arg0: i32) -> (i32, i32, i32, i32) {
    %c0_i32 = arith.constant 0 : i32
    %c0_i32_0 = arith.constant 0 : i32
    %c0_i32_1 = arith.constant 0 : i32
    %c0_i32_2 = arith.constant 0 : i32
    return %arg0, %c0_i32, %c0_i32_0, %c0_i32_1 : i32, i32, i32, i32
  }
  func.func @transform_1(%arg0: i32) -> (i32, i32) {
    %c0_i32 = arith.constant 0 : i32
    %c0_i32_0 = arith.constant 0 : i32
    %c0_i32_1 = arith.constant 0 : i32
    return %c0_i32, %c0_i32_0 : i32, i32
  }
  func.func @transform_2(%arg0: i32) -> (i32, i32) {
    %c0_i32 = arith.constant 0 : i32
    %c0_i32_0 = arith.constant 0 : i32
    %c0_i32_1 = arith.constant 0 : i32
    return %c0_i32, %c0_i32_0 : i32, i32
  }
  func.func @transform_3(%arg0: i32) -> (i32, i32) {
    %c0_i32 = arith.constant 0 : i32
    %c0_i32_0 = arith.constant 0 : i32
    %c0_i32_1 = arith.constant 0 : i32
    return %c0_i32, %c0_i32_0 : i32, i32
  }
  func.func @transform_4(%arg0: i32) -> (i32, i32) {
    %c0_i32 = arith.constant 0 : i32
    %c0_i32_0 = arith.constant 0 : i32
    %c0_i32_1 = arith.constant 0 : i32
    return %c0_i32, %c0_i32_0 : i32, i32
  }
  func.func @transform_5(%arg0: i32) -> (i32, i32, i32) {
    %c0_i32 = arith.constant 0 : i32
    %c0_i32_0 = arith.constant 0 : i32
    %c0_i32_1 = arith.constant 0 : i32
    return %arg0, %c0_i32, %c0_i32_0 : i32, i32, i32
  }
}

</mosaic_0001>

<bundles_post_ra>
// kernel: bup_double_conv_nchw.1
= control target key start
LH: loop header
LB: loop body
LE: loop exit
PB: predicated region body
PF: predicated region fallthrough
CT: control target
= control target key end

     0   :  { %10 = vsyncpa [#allocation5], 0  ;;  %s6508_s0 = inlined_call_operand.hbm [shape: f32[2,16,16,128], index: 0, kind: input, shape index: {}]   ;;  %s6509_s1 = inlined_call_operand.hbm [shape: f32[1152,128], index: 1, kind: input, shape index: {}]   ;;  %s6510_s2 = inlined_call_operand.vmem [shape: f32[1,128], index: 2, kind: input, shape index: {}]   ;;  %s6511_s3 = inlined_call_operand.hbm [shape: f32[1152,128], index: 3, kind: input, shape index: {}]   ;;  %s6512_s4 = inlined_call_operand.vmem [shape: f32[1,128], index: 4, kind: input, shape index: {}]   ;;  %s6513_s5 = inlined_call_operand.hbm [shape: f32[2,256,128], index: 5, kind: output, shape index: {}]  }
   0x1   :  { %12 = vsyncpa [#allocation5 + $0x1], 0 }
   0x2   :  { %13 = vsyncpa [#allocation8], 0 }
   0x3   :  { %14 = vsyncpa [#allocation6], 0 }
   0x4   :  { %16 = vsyncpa [#allocation6 + $0x1], 0  ;;  %s4203_s18 = smov 0   ;;  %s4205_s19 = smov 0  }
   0x5   :  { %s4207_s20 = smov 0   ;;  %s4209_s21 = smov 0  }
   0x6 LB: > { %s4224_s22 = sadd.s32 4294967295, %s4164_s21   ;;  %s3848_s23 = sadd.s32 4294967294, %s4164_s21   ;;  %s4164_s21 = sphi %s4209_s21, %s7126_s21   ;;  %s4160_s20 = sphi %s4207_s20, %s7125_s20   ;;  %s4156_s19 = sphi %s4205_s19, %s7124_s19   ;;  %s4152_s18 = sphi %s4203_s18, %s7123_s18  }
   0x7   : > { %p42_p0 = scmp.ne.s32.totalorder %s4156_s19, %s4152_s18  ;;  %p43_p1 = scmp.eq.s32.totalorder %s4224_s22, 0 }
   0x8   : > { %p150_p2 = scmp.eq.s32.totalorder %s4224_s22, 1  ;;  %p156_p3 = scmp.eq.s32.totalorder %s3848_s23, 1 }
   0x9   : > { %p4233_p4 = por %p43_p1, %p42_p0  ;;  %p3849_p5 = scmp.ge.s32.totalorder %s4164_s21, 1 }
   0xa   : > { %p4238_p6 = por %p156_p3, %p42_p0  ;;  %p163_p7 = scmp.lt.s32.totalorder %s4164_s21, 3 }
   0xb   : > { %s174_s28 = sshll.u32 %s6509_s1, 4  ;;  %s4166_s30 = smov [#allocation7]   ;;  %s175_s28 = int_to_ptr.hbm [resolvable:$true] %s174_s28 }
   0xc   : > { %p4246_p8 = pnand %p3849_p5, %p163_p7  ;;  %s176_s6 = sshll.u32 %s4166_s30, 4  ;;  %s177_s6 = int_to_ptr.vmem [resolvable:$true] %s176_s6 }
   0xd   : > { %s191_s9 = sshll.u32 %s6511_s3, 4  ;;  %s6514_s10 = smov 128   ;;  %s192_s9 = int_to_ptr.hbm [resolvable:$true] %s191_s9 }
   0xe   : > { %p3912_p9 = pneg %p4246_p8  ;;  %s4168_s11 = smov 8  }
   0xf   : > { %s4169_s12 = smov [#allocation9]   ;;  %s4265_s14 = sadd.s32 1, %s4164_s21  }
  0x10   : > { %p3913_p10 = pnand %p3912_p9, %p43_p1  ;;  %s193_s13 = sshll.u32 %s4169_s12, 4  ;;  %s194_s13 = int_to_ptr.vmem [resolvable:$true] %s193_s13 }
  0x11   : > { %s29_s15 = sadd.s32 1, %s4160_s20  ;;  %s26_s16 = ssub.s32 %s4164_s21, %s4265_s14 }
  0x12   : > { %3915 = dma.hbm_to_vmem [thread:$0]  (!%p3913_p10), %s175_s28, 18432, %s177_s6, [#allocation8], %s6514_s10, %s6514_s10, %s4168_s11  }
  0x13   : > { %3918 = dma.hbm_to_vmem [thread:$0]  (!%p3913_p10), %s192_s9, 18432, %s194_s13, [#allocation8], %s6514_s10, %s6514_s10, %s4168_s11  }
  0x14   : > { %p36_p12 = scmp.ne.s32.totalorder %s4160_s20, %s4156_s19  ;;  %p27_p13 = scmp.eq.s32.totalorder %s26_s16, 0 }
  0x15   : > { %p37_p0 = scmp.eq.s32.totalorder %s4164_s21, 0  ;;  %p3929_p5 = scmp.lt.s32.totalorder %s4164_s21, 2 }
  0x16   : > { %p4275_p3 = por %p150_p2, %p36_p12  ;;  %s210_s26 = sand.u32 1, %s4160_s20  }
  0x17   : > { %s4281_s23 = scalar_select %p27_p13, %s4160_s20, %s29_s15  }
  0x18   : > { %p38_p7 = por %p37_p0, %p36_p12  ;;  %s3853_s27 = sshll.u32 %s210_s26, 8 }
  0x19   : > { %s3866_s28 = sshll.u32 %s4164_s21, 8  ;;  %s214_s8 = scalar_lea.vmem [#allocation4], %s3853_s27 }
  0x1a   : > { %s219_s7 = scalar_lea.hbm %s6508_s0, %s3866_s28  ;;  %s222_s9 = sshll.u32 %s214_s8, 4  ;;  %s223_s9 = int_to_ptr.vmem [resolvable:$true] %s222_s9 }
  0x1b   : > { %s220_s12 = sshll.u32 %s219_s7, 4  ;;  %p4288_p2 = pnand %p3929_p5, %p38_p7  ;;  %s221_s12 = int_to_ptr.hbm [resolvable:$true] %s220_s12 }
  0x1c   : > { %s211_s15 = scalar_lea.sflag [#allocation5], %s210_s26  ;;  %s4064_s16 = sshra.s32 %s221_s12, 4  ;;  %s4065_s16 = int_to_ptr.hbm [resolvable:$true] %s4064_s16 }
  0x1d   : > { %s4066_s10 = scalar_lea.hbm %s4065_s16, 256  ;;  %p4068_p10 = pneg %p4288_p2 }
  0x1e   : > { %p4067_p9 = scmp.ne.s32.totalorder %s4065_s16, %s4066_s10  ;;  %s4071_s30 = scalar_lea.hbm %s6508_s0, 512 }
  0x1f   : > { %p4072_p0 = scmp.lt.s32.totalorder %s4065_s16, %s6508_s0  ;;  %p4073_p5 = scmp.lt.s32.totalorder %s4071_s30, %s4066_s10 }
  0x20   : > { %p4069_p12 = pnand %p4068_p10, %p4067_p9 }
  0x21   : > { %p4074_p7 = por %p4073_p5, %p4072_p0 }
  0x22   : > { %p4070_p13 = pneg %p4069_p12 }
  0x24   : > { %p4075_p11 = pnand %p4074_p7, %p4070_p13 }
  0x26   : > { %4078 = shalt.err (!%p4075_p11)
}
  0x27   : > { %s6675_s26 = smov 128   ;;  %234 = sbr.rel (%p4246_p8) target bundleno = 1488 (0x5d0), region = 40 }
  0x28   : > { %3922 = dma.hbm_to_vmem [thread:$0]  (!%p4288_p2), %s221_s12, 4096, %s223_s9, %s211_s15, %s6675_s26, %s6675_s26, %s4168_s11  }
  0x2c   : > { %s4308_s8 = sand.u32 1, %s4156_s19  }
  0x2d   : > { %s3857_s10 = sshll.u32 %s4308_s8, 8  ;;  %s237_s16 = scalar_lea.sflag [#allocation5], %s4308_s8 }
  0x2e   : > { %s4314_s28 = scalar_lea.vmem [#allocation4], %s3857_s10 }
  0x2f   : > { %4139 = dma.done.wait (%p4233_p4), %s237_s16, 4096  }
  0x30   : > { %4141 = vsyncadd (%p4233_p4), %s237_s16, 4294963200 }
  0x31   : > { %4143 = dma.done.wait (%p43_p1), [#allocation8], 36864  }
  0x32   : > { %4145 = vsyncadd (%p43_p1), [#allocation8], 4294930432  ;;  %v828_v0 = vld [vmem:[#allocation7 + $0x78] sm:$0xff]  ;;  %v827_v2 = vld [vmem:[#allocation7 + $0x70] sm:$0xff]  ;;  %v6515_v30 = vmov 0.0   ;;  %vm535_vm0 = vcmask 1040384  }
  0x33   : > { %v844_v1 = vld [vmem:[#allocation7 + $0xf8] sm:$0xff]  ;;  %961 = vmatpush.msra.mxu0 %v828_v0  ;;  %3868 = vmatpush.msra.mxu2 %v828_v0  ;;  %v843_v3 = vld [vmem:[#allocation7 + $0xf0] sm:$0xff]  ;;  %v826_v4 = vld [vmem:[#allocation7 + $0x68] sm:$0xff]  ;;  %v4326_v31 = vrot.slane %v6515_v30, 7  ;;  %vm664_vm1 = vcmask 1046528   ;;  %s6324_s30 = scalar_lea.vmem [#allocation10], %s3857_s10 }
  0x34   : > { %3884 = vmatpush.msra.mxu3 %v844_v1  ;;  %1074 = vmatpush.msra.mxu1 %v844_v1  ;;  %v842_v5 = vld [vmem:[#allocation7 + $0xe8] sm:$0xff]  ;;  %v825_v6 = vld [vmem:[#allocation7 + $0x60] sm:$0xff]  ;;  %v824_v8 = vld [vmem:[#allocation7 + $0x58] sm:$0xff]  ;;  %s3867_s6 = sshll.u32 %s4224_s22, 8  ;;  %s3753_s16 = sshll.u32 %s6324_s30, 4  ;;  %s3754_s16 = int_to_ptr.vmem [resolvable:$true] %s3753_s16 }
  0x35   : > { %962 = vmatpush.msra.mxu0 %v827_v2  ;;  %3869 = vmatpush.msra.mxu2 %v827_v2  ;;  %v841_v7 = vld [vmem:[#allocation7 + $0xe0] sm:$0xff]  ;;  %v840_v9 = vld [vmem:[#allocation7 + $0xd8] sm:$0xff]  ;;  %v823_v10 = vld [vmem:[#allocation7 + $0x50] sm:$0xff]  ;;  %6676 = vst [vmem:[#allocation14_spill] sm:$0xff] %v4326_v31  ;;  %s3752_s10 = scalar_lea.hbm %s6513_s5, %s3867_s6  ;;  %s3741_s24 = scalar_lea.sflag [#allocation6], %s4308_s8 }
  0x36   : > { %3885 = vmatpush.msra.mxu3 %v843_v3  ;;  %1075 = vmatpush.msra.mxu1 %v843_v3  ;;  %v839_v11 = vld [vmem:[#allocation7 + $0xd0] sm:$0xff]  ;;  %v822_v12 = vld [vmem:[#allocation7 + $0x48] sm:$0xff]  ;;  %v821_v14 = vld [vmem:[#allocation7 + $0x40] sm:$0xff]  ;;  %s4114_s12 = scalar_lea.hbm %s6513_s5, 512 }
  0x37   : > { %963 = vmatpush.msra.mxu0 %v826_v4  ;;  %3870 = vmatpush.msra.mxu2 %v826_v4  ;;  %v838_v13 = vld [vmem:[#allocation7 + $0xc8] sm:$0xff]  ;;  %v837_v15 = vld [vmem:[#allocation7 + $0xc0] sm:$0xff]  ;;  %v820_v16 = vld [vmem:[#allocation7 + $0x38] sm:$0xff] }
  0x38   : > { %3886 = vmatpush.msra.mxu3 %v842_v5  ;;  %1076 = vmatpush.msra.mxu1 %v842_v5  ;;  %v836_v17 = vld [vmem:[#allocation7 + $0xb8] sm:$0xff]  ;;  %v819_v18 = vld [vmem:[#allocation7 + $0x30] sm:$0xff]  ;;  %v818_v20 = vld [vmem:[#allocation7 + $0x28] sm:$0xff] }
  0x39   : > { %964 = vmatpush.msra.mxu0 %v825_v6  ;;  %3871 = vmatpush.msra.mxu2 %v825_v6  ;;  %v835_v19 = vld [vmem:[#allocation7 + $0xb0] sm:$0xff]  ;;  %v834_v21 = vld [vmem:[#allocation7 + $0xa8] sm:$0xff]  ;;  %v817_v22 = vld [vmem:[#allocation7 + $0x20] sm:$0xff] }
  0x3a   : > { %3887 = vmatpush.msra.mxu3 %v841_v7  ;;  %1077 = vmatpush.msra.mxu1 %v841_v7  ;;  %v833_v23 = vld [vmem:[#allocation7 + $0xa0] sm:$0xff]  ;;  %v816_v24 = vld [vmem:[#allocation7 + $0x18] sm:$0xff]  ;;  %v292_v26 = vld [vmem:[%s4314_s28 + $0x70] sm:$0xff] }
  0x3b   : > { %965 = vmatpush.msra.mxu0 %v824_v8  ;;  %3872 = vmatpush.msra.mxu2 %v824_v8  ;;  %v832_v25 = vld [vmem:[#allocation7 + $0x98] sm:$0xff]  ;;  %v815_v27 = vld [vmem:[#allocation7 + $0x10] sm:$0xff]  ;;  %v814_v29 = vld [vmem:[#allocation7 + $0x8] sm:$0xff]  ;;  %v577_v32 = vrot.slane %v292_v26, 7 }
  0x3c   : > { %3888 = vmatpush.msra.mxu3 %v840_v9  ;;  %1078 = vmatpush.msra.mxu1 %v840_v9  ;;  %v831_v28 = vld [vmem:[#allocation7 + $0x90] sm:$0xff]  ;;  %v830_v33 = vld [vmem:[#allocation7 + $0x88] sm:$0xff]  ;;  %v813_v34 = vld [vmem:[#allocation7] sm:$0xff] }
  0x3d   : > { %966 = vmatpush.msra.mxu0 %v823_v10  ;;  %3873 = vmatpush.msra.mxu2 %v823_v10  ;;  %v829_v35 = vld [vmem:[#allocation7 + $0x80] sm:$0xff]  ;;  %v4330_v36 = vsel %vm535_vm0, %v4326_v31, %v577_v32  ;;  %v860_v37 = vld [vmem:[#allocation7 + $0x178] sm:$0xff]  ;;  %v859_v41 = vld [vmem:[#allocation7 + $0x170] sm:$0xff] }
  0x3e   : > { %3889 = vmatpush.msra.mxu3 %v839_v11  ;;  %1079 = vmatpush.msra.mxu1 %v839_v11  ;;  %6677 = vst [vmem:[#allocation15_spill] sm:$0xff] %v4330_v36  ;;  %v876_v38 = vld [vmem:[#allocation7 + $0x1f8] sm:$0xff]  ;;  %v875_v42 = vld [vmem:[#allocation7 + $0x1f0] sm:$0xff]  ;;  %v858_v45 = vld [vmem:[#allocation7 + $0x168] sm:$0xff] }
  0x3f   : > { %967 = vmatpush.msra.mxu0 %v822_v12  ;;  %3874 = vmatpush.msra.mxu2 %v822_v12  ;;  %v4333_v39 = vld [vmem:[%s4314_s28 + $0x78] sm:$0xff]  ;;  %v891_v44 = vld [vmem:[#allocation7 + $0x270] sm:$0xff]  ;;  %v874_v46 = vld [vmem:[#allocation7 + $0x1e8] sm:$0xff] }
  0x40   : > { %3890 = vmatpush.msra.mxu3 %v838_v13  ;;  %1080 = vmatpush.msra.mxu1 %v838_v13  ;;  %v892_v40 = vld [vmem:[#allocation7 + $0x278] sm:$0xff]  ;;  %v579_v43 = vrot.slane %v4333_v39, 7  ;;  %v890_v47 = vld [vmem:[#allocation7 + $0x268] sm:$0xff]  ;;  %v857_v48 = vld [vmem:[#allocation7 + $0x160] sm:$0xff] }
  0x41   : > { %968 = vmatpush.msra.mxu0 %v821_v14  ;;  %3875 = vmatpush.msra.mxu2 %v821_v14  ;;  %v4343_v50 = vld [vmem:[%s4314_s28] sm:$0xff]  ;;  %v856_v53 = vld [vmem:[#allocation7 + $0x158] sm:$0xff]  ;;  %v855_v57 = vld [vmem:[#allocation7 + $0x150] sm:$0xff] }
  0x42   : > { %3891 = vmatpush.msra.mxu3 %v837_v15  ;;  %1081 = vmatpush.msra.mxu1 %v837_v15  ;;  %v4340_v49 = vsel %vm535_vm0, %v577_v32, %v579_v43  ;;  %v294_v51 = vld [vmem:[%s4314_s28 + $0x80] sm:$0xff]  ;;  %v542_v55 = vrot.slane %v4343_v50, 7  ;;  %v872_v56 = vld [vmem:[#allocation7 + $0x1d8] sm:$0xff]  ;;  %v871_v60 = vld [vmem:[#allocation7 + $0x1d0] sm:$0xff] }
  0x43   : > { %969 = vmatpush.msra.mxu0 %v820_v16  ;;  %3876 = vmatpush.msra.mxu2 %v820_v16  ;;  %6678 = vst [vmem:[#allocation16_spill] sm:$0xff] %v4340_v49  ;;  %v873_v52 = vld [vmem:[#allocation7 + $0x1e0] sm:$0xff]  ;;  %v582_v58 = vrot.slane %v294_v51, 7  ;;  %v888_v59 = vld [vmem:[#allocation7 + $0x258] sm:$0xff]  ;;  %v4360_v63 = vld [vmem:[%s4314_s28 + $0x8] sm:$0xff] }
  0x44   : > { %3892 = vmatpush.msra.mxu3 %v836_v17  ;;  %1082 = vmatpush.msra.mxu1 %v836_v17  ;;  %v889_v54 = vld [vmem:[#allocation7 + $0x260] sm:$0xff]  ;;  %v4352_v61 = vsel %vm535_vm0, %v4326_v31, %v542_v55  ;;  %v4363_v0 = vld [vmem:[%s4314_s28 + $0x88] sm:$0xff]  ;;  %v544_v1 = vrot.slane %v4360_v63, 7  ;;  %v887_v4 = vld [vmem:[#allocation7 + $0x250] sm:$0xff] }
  0x45   : > { %970 = vmatpush.msra.mxu0 %v819_v18  ;;  %3877 = vmatpush.msra.mxu2 %v819_v18  ;;  %v4357_v62 = vsel %vm535_vm0, %v4326_v31, %v582_v58  ;;  %v854_v2 = vld [vmem:[#allocation7 + $0x148] sm:$0xff]  ;;  %v584_v5 = vrot.slane %v4363_v0, 7  ;;  %v4377_v8 = vld [vmem:[%s4314_s28 + $0x10] sm:$0xff]  ;;  %v853_v11 = vld [vmem:[#allocation7 + $0x140] sm:$0xff] }
  0x46   : > { %3893 = vmatpush.msra.mxu3 %v835_v19  ;;  %1083 = vmatpush.msra.mxu1 %v835_v19  ;;  %v870_v3 = vld [vmem:[#allocation7 + $0x1c8] sm:$0xff]  ;;  %v4370_v6 = vsel %vm535_vm0, %v542_v55, %v544_v1  ;;  %v4380_v9 = vld [vmem:[%s4314_s28 + $0x90] sm:$0xff]  ;;  %v547_v10 = vrot.slane %v4377_v8, 7  ;;  %v869_v12 = vld [vmem:[#allocation7 + $0x1c0] sm:$0xff] }
  0x47   : > { %971 = vmatpush.msra.mxu0 %v818_v20  ;;  %3878 = vmatpush.msra.mxu2 %v818_v20  ;;  %v4374_v7 = vsel %vm535_vm0, %v582_v58, %v584_v5  ;;  %v886_v13 = vld [vmem:[#allocation7 + $0x248] sm:$0xff]  ;;  %v587_v14 = vrot.slane %v4380_v9, 7  ;;  %v4397_v17 = vld [vmem:[%s4314_s28 + $0x18] sm:$0xff]  ;;  %v867_v32 = vld [vmem:[#allocation7 + $0x1b0] sm:$0xff] }
  0x48   : > { %3894 = vmatpush.msra.mxu3 %v834_v21  ;;  %1084 = vmatpush.msra.mxu1 %v834_v21  ;;  %6679 = vst [vmem:[#allocation17_spill] sm:$0xff] %v4374_v7  ;;  %v4389_v15 = vsel %vm535_vm0, %v4326_v31, %v547_v10  ;;  %v4400_v18 = vld [vmem:[%s4314_s28 + $0x98] sm:$0xff]  ;;  %v549_v19 = vrot.slane %v4397_v17, 7  ;;  %v866_v43 = vld [vmem:[#allocation7 + $0x1a8] sm:$0xff] }
  0x49   : > { %972 = vmatpush.msra.mxu0 %v817_v22  ;;  %3879 = vmatpush.msra.mxu2 %v817_v22  ;;  %6680 = vst [vmem:[#allocation18_spill] sm:$0xff] %v4389_v15  ;;  %v4394_v16 = vsel %vm535_vm0, %v4326_v31, %v587_v14  ;;  %v852_v20 = vld [vmem:[#allocation7 + $0x138] sm:$0xff]  ;;  %v885_v22 = vld [vmem:[#allocation7 + $0x240] sm:$0xff]  ;;  %v882_v55 = vld [vmem:[#allocation7 + $0x228] sm:$0xff] }
  0x4a   : > { %3895 = vmatpush.msra.mxu3 %v833_v23  ;;  %1085 = vmatpush.msra.mxu1 %v833_v23  ;;  %v868_v21 = vld [vmem:[#allocation7 + $0x1b8] sm:$0xff]  ;;  %v589_v23 = vrot.slane %v4400_v18, 7 }
  0x4b   : > { %973 = vmatpush.msra.mxu0 %v816_v24  ;;  %3880 = vmatpush.msra.mxu2 %v816_v24  ;;  %v4408_v24 = vsel %vm535_vm0, %v547_v10, %v549_v19  ;;  %v847_v19 = vld [vmem:[#allocation7 + $0x110] sm:$0xff] }
  0x4c   : > { %3896 = vmatpush.msra.mxu3 %v832_v25  ;;  %1086 = vmatpush.msra.mxu1 %v832_v25  ;;  %6681 = vst [vmem:[#allocation19_spill] sm:$0xff] %v4408_v24  ;;  %v4412_v25 = vsel %vm535_vm0, %v587_v14, %v589_v23  ;;  %v908_v23 = vld [vmem:[#allocation7 + $0x2f8] sm:$0xff] }
  0x4d   : > { %974 = vmatpush.msra.mxu0 %v815_v27  ;;  %3881 = vmatpush.msra.mxu2 %v815_v27  ;;  %v298_v27 = vld [vmem:[%s4314_s28 + $0xa0] sm:$0xff] }
  0x4e   : > { %3897 = vmatpush.msra.mxu3 %v831_v28  ;;  %1087 = vmatpush.msra.mxu1 %v831_v28 }
  0x4f   : > { %975 = vmatpush.msra.mxu0 %v814_v29  ;;  %3882 = vmatpush.msra.mxu2 %v814_v29  ;;  %v851_v29 = vld [vmem:[#allocation7 + $0x130] sm:$0xff] }
  0x50   : > { %3898 = vmatpush.msra.mxu3 %v830_v33  ;;  %1088 = vmatpush.msra.mxu1 %v830_v33  ;;  %v884_v33 = vld [vmem:[#allocation7 + $0x238] sm:$0xff] }
  0x51   : > { %976 = vmatpush.msra.mxu0 %v813_v34  ;;  %3883 = vmatpush.msra.mxu2 %v813_v34  ;;  %v592_v34 = vrot.slane %v298_v27, 7 }
  0x52   : > { %3899 = vmatpush.msra.mxu3 %v829_v35  ;;  %977 = vmatmul.f32.vlgmr.msra.gmra.mxu0 %v4326_v31 }
  0x53   : > { %1025 = vmatmul.f32.vlgmr.msra.gmra.mxu2 %v4330_v36  ;;  %1138 = vmatmul.f32.vlgmr.msra.gmra.mxu3 %v292_v26  ;;  %v4415_v26 = vld [vmem:[%s4314_s28 + $0x20] sm:$0xff] }
  0x54   : > { %1187 = vmatpush.msrb.mxu2 %v860_v37  ;;  %1300 = vmatpush.msrb.mxu3 %v876_v38  ;;  %v552_v28 = vrot.slane %v4415_v26, 7  ;;  %v4429_v37 = vsel %vm535_vm0, %v4326_v31, %v592_v34  ;;  %v4432_v38 = vld [vmem:[%s4314_s28 + $0x28] sm:$0xff] }
  0x55   : > { %1413 = vmatpush.msrb.mxu0 %v892_v40  ;;  %1089 = vmatpush.msra.mxu1 %v829_v35  ;;  %v4435_v40 = vld [vmem:[%s4314_s28 + $0xa8] sm:$0xff] }
  0x56   : > { %1188 = vmatpush.msrb.mxu2 %v859_v41  ;;  %1301 = vmatpush.msrb.mxu3 %v875_v42  ;;  %v4424_v35 = vsel %vm535_vm0, %v4326_v31, %v552_v28  ;;  %v554_v41 = vrot.slane %v4432_v38, 7  ;;  %v850_v42 = vld [vmem:[#allocation7 + $0x128] sm:$0xff] }
  0x57   : > { %1090 = vmatmul.f32.vlgmr.msra.gmra.mxu1 %v6515_v30  ;;  %1414 = vmatpush.msrb.mxu0 %v891_v44  ;;  %6682 = vst [vmem:[#allocation20_spill] sm:$0xff] %v4424_v35  ;;  %v883_v44 = vld [vmem:[#allocation7 + $0x230] sm:$0xff] }
  0x58   : > { %1189 = vmatpush.msrb.mxu2 %v858_v45  ;;  %1302 = vmatpush.msrb.mxu3 %v874_v46  ;;  %v594_v45 = vrot.slane %v4435_v40, 7  ;;  %v4442_v46 = vsel %vm535_vm0, %v552_v28, %v554_v41  ;;  %v846_v41 = vld [vmem:[#allocation7 + $0x108] sm:$0xff] }
  0x59   : > { %1415 = vmatpush.msrb.mxu0 %v890_v47  ;;  %6683 = vst [vmem:[#allocation21_spill] sm:$0xff] %v4442_v46  ;;  %1526 = vmatpush.msrb.mxu1 %v908_v23  ;;  %v4530_v23 = vld [vmem:[%s4314_s28 + $0x58] sm:$0xff] }
  0x5a   : > { %980 = vmatmul.f32.gmra.mxu0 %v4326_v31  ;;  %1190 = vmatpush.msrb.mxu2 %v857_v48  ;;  %v4446_v47 = vsel %vm535_vm0, %v592_v34, %v594_v45  ;;  %v4449_v48 = vld [vmem:[%s4314_s28 + $0x30] sm:$0xff] }
  0x5b   : > { %1028 = vmatmul.f32.gmra.mxu2 %v4340_v49  ;;  %1141 = vmatmul.f32.gmra.mxu3 %v4333_v39  ;;  %v879_v45 = vld [vmem:[#allocation7 + $0x210] sm:$0xff] }
  0x5c   : > { %1303 = vmatpush.msrb.mxu3 %v873_v52  ;;  %1191 = vmatpush.msrb.mxu2 %v856_v53  ;;  %v557_v52 = vrot.slane %v4449_v48, 7  ;;  %v849_v53 = vld [vmem:[#allocation7 + $0x120] sm:$0xff] }
  0x5d   : > { %1416 = vmatpush.msrb.mxu0 %v889_v54  ;;  %v865_v54 = vld [vmem:[#allocation7 + $0x1a0] sm:$0xff] }
  0x5e   : > { %1304 = vmatpush.msrb.mxu3 %v872_v56  ;;  %1192 = vmatpush.msrb.mxu2 %v855_v57  ;;  %v4458_v57 = vsel %vm535_vm0, %v4326_v31, %v557_v52 }
  0x5f   : > { %1093 = vmatmul.f32.gmra.mxu1 %v6515_v30  ;;  %1417 = vmatpush.msrb.mxu0 %v888_v59  ;;  %6684 = vst [vmem:[#allocation22_spill] sm:$0xff] %v4458_v57  ;;  %v4466_v59 = vld [vmem:[%s4314_s28 + $0x38] sm:$0xff] }
  0x60   : > { %1305 = vmatpush.msrb.mxu3 %v871_v60  ;;  %1193 = vmatpush.msrb.mxu2 %v854_v2  ;;  %v4469_v60 = vld [vmem:[%s4314_s28 + $0xb8] sm:$0xff]  ;;  %v559_v1 = vrot.slane %v4466_v59, 7 }
  0x61   : > { %1418 = vmatpush.msrb.mxu0 %v887_v4  ;;  %v848_v2 = vld [vmem:[#allocation7 + $0x118] sm:$0xff]  ;;  %v881_v4 = vld [vmem:[#allocation7 + $0x220] sm:$0xff]  ;;  %v599_v5 = vrot.slane %v4469_v60, 7 }
  0x62   : > { %983 = vmatmul.f32.gmra.mxu0 %v4352_v61  ;;  %1306 = vmatpush.msrb.mxu3 %v870_v3  ;;  %v864_v3 = vld [vmem:[#allocation7 + $0x198] sm:$0xff]  ;;  %v4476_v10 = vsel %vm535_vm0, %v557_v52, %v559_v1  ;;  %v304_v1 = vld [vmem:[%s4314_s28 + $0xd0] sm:$0xff] }
  0x63   : > { %1031 = vmatmul.f32.gmra.mxu2 %v4357_v62  ;;  %1144 = vmatmul.f32.gmra.mxu3 %v294_v51  ;;  %v300_v51 = vld [vmem:[%s4314_s28 + $0xb0] sm:$0xff]  ;;  %6685 = vst [vmem:[#allocation23_spill] sm:$0xff] %v4476_v10  ;;  %v904_v52 = vld [vmem:[#allocation7 + $0x2d8] sm:$0xff] }
  0x64   : > { %1194 = vmatpush.msrb.mxu2 %v853_v11  ;;  %1307 = vmatpush.msrb.mxu3 %v869_v12  ;;  %v597_v56 = vrot.slane %v300_v51, 7  ;;  %v4483_v12 = vld [vmem:[%s4314_s28 + $0x40] sm:$0xff] }
  0x65   : > { %1419 = vmatpush.msrb.mxu0 %v886_v13  ;;  %v302_v13 = vld [vmem:[%s4314_s28 + $0xc0] sm:$0xff]  ;;  %v562_v14 = vrot.slane %v4483_v12, 7 }
  0x66   : > { %1195 = vmatpush.msrb.mxu2 %v852_v20  ;;  %1308 = vmatpush.msrb.mxu3 %v868_v21  ;;  %v4463_v58 = vsel %vm535_vm0, %v4326_v31, %v597_v56  ;;  %v4480_v11 = vsel %vm535_vm0, %v597_v56, %v599_v5  ;;  %v863_v20 = vld [vmem:[#allocation7 + $0x190] sm:$0xff]  ;;  %v880_v21 = vld [vmem:[#allocation7 + $0x218] sm:$0xff]  ;;  %v861_v5 = vld [vmem:[#allocation7 + $0x180] sm:$0xff] }
  0x67   : > { %1096 = vmatmul.f32.gmra.mxu1 %v4343_v50  ;;  %1420 = vmatpush.msrb.mxu0 %v885_v22  ;;  %v602_v22 = vrot.slane %v302_v13, 7  ;;  %v4492_v28 = vsel %vm535_vm0, %v4326_v31, %v562_v14  ;;  %v4514_v56 = vld [vmem:[%s4314_s28 + $0x50] sm:$0xff] }
  0x68   : > { %1196 = vmatpush.msrb.mxu2 %v851_v29  ;;  %1309 = vmatpush.msrb.mxu3 %v867_v32  ;;  %6686 = vst [vmem:[#allocation24_spill] sm:$0xff] %v4492_v28  ;;  %v4500_v32 = vld [vmem:[%s4314_s28 + $0x48] sm:$0xff] }
  0x69   : > { %1421 = vmatpush.msrb.mxu0 %v884_v33  ;;  %v4497_v29 = vsel %vm535_vm0, %v4326_v31, %v602_v22  ;;  %v303_v33 = vld [vmem:[%s4314_s28 + $0xc8] sm:$0xff]  ;;  %v564_v34 = vrot.slane %v4500_v32, 7 }
  0x6a   : > { %986 = vmatmul.f32.gmra.mxu0 %v4370_v6  ;;  %1197 = vmatpush.msrb.mxu2 %v850_v42  ;;  %v906_v42 = vld [vmem:[#allocation7 + $0x2e8] sm:$0xff] }
  0x6b   : > { %1034 = vmatmul.f32.gmra.mxu2 %v4374_v7  ;;  %1147 = vmatmul.f32.gmra.mxu3 %v4363_v0 }
  0x6c   : > { %1310 = vmatpush.msrb.mxu3 %v866_v43  ;;  %1422 = vmatpush.msrb.mxu0 %v883_v44  ;;  %v862_v43 = vld [vmem:[#allocation7 + $0x188] sm:$0xff]  ;;  %v604_v44 = vrot.slane %v303_v33, 7 }
  0x6d   : > { %1198 = vmatpush.msrb.mxu2 %v849_v53  ;;  %v4507_v53 = vsel %vm535_vm0, %v562_v14, %v564_v34  ;;  %v878_v14 = vld [vmem:[#allocation7 + $0x208] sm:$0xff]  ;;  %v4533_v34 = vld [vmem:[%s4314_s28 + $0xd8] sm:$0xff] }
  0x6e   : > { %1311 = vmatpush.msrb.mxu3 %v865_v54  ;;  %1423 = vmatpush.msrb.mxu0 %v882_v55  ;;  %6687 = vst [vmem:[#allocation25_spill] sm:$0xff] %v4507_v53  ;;  %v903_v54 = vld [vmem:[#allocation7 + $0x2d0] sm:$0xff]  ;;  %v4511_v55 = vsel %vm535_vm0, %v602_v22, %v604_v44  ;;  %v940_v44 = vld [vmem:[#allocation7 + $0x3f8] sm:$0xff] }
  0x6f   : > { %1099 = vmatmul.f32.gmra.mxu1 %v4360_v63  ;;  %1199 = vmatpush.msrb.mxu2 %v848_v2  ;;  %v567_v2 = vrot.slane %v4514_v56, 7 }
  0x70   : > { %1312 = vmatpush.msrb.mxu3 %v864_v3  ;;  %1424 = vmatpush.msrb.mxu0 %v881_v4  ;;  %v845_v3 = vld [vmem:[#allocation7 + $0x100] sm:$0xff]  ;;  %v902_v4 = vld [vmem:[#allocation7 + $0x2c8] sm:$0xff] }
  0x71   : > { %1200 = vmatpush.msrb.mxu2 %v847_v19  ;;  %v901_v19 = vld [vmem:[#allocation7 + $0x2c0] sm:$0xff] }
  0x72   : > { %989 = vmatmul.f32.gmra.mxu0 %v4389_v15  ;;  %1313 = vmatpush.msrb.mxu3 %v863_v20  ;;  %v4522_v20 = vsel %vm535_vm0, %v4326_v31, %v567_v2 }
  0x73   : > { %1037 = vmatmul.f32.gmra.mxu2 %v4394_v16  ;;  %1150 = vmatmul.f32.gmra.mxu3 %v4380_v9  ;;  %6688 = vst [vmem:[#allocation26_spill] sm:$0xff] %v4522_v20 }
  0x74   : > { %1425 = vmatpush.msrb.mxu0 %v880_v21  ;;  %1201 = vmatpush.msrb.mxu2 %v846_v41  ;;  %v900_v21 = vld [vmem:[#allocation7 + $0x2b8] sm:$0xff]  ;;  %v569_v41 = vrot.slane %v4530_v23, 7 }
  0x75   : > { %1314 = vmatpush.msrb.mxu3 %v862_v43  ;;  %v898_v43 = vld [vmem:[#allocation7 + $0x2a8] sm:$0xff] }
  0x76   : > { %1426 = vmatpush.msrb.mxu0 %v879_v45  ;;  %1202 = vmatpush.msrb.mxu2 %v845_v3  ;;  %v609_v45 = vrot.slane %v4533_v34, 7  ;;  %v4547_v3 = vld [vmem:[%s4314_s28 + $0x60] sm:$0xff] }
  0x77   : > { %1102 = vmatmul.f32.gmra.mxu1 %v4377_v8  ;;  %1315 = vmatpush.msrb.mxu3 %v861_v5  ;;  %v895_v5 = vld [vmem:[#allocation7 + $0x290] sm:$0xff] }
  0x78   : > { %1427 = vmatpush.msrb.mxu0 %v878_v14  ;;  %v894_v14 = vld [vmem:[#allocation7 + $0x288] sm:$0xff] }
  0x79   : > { %1752 = vmatpush.msra.mxu3 %v940_v44  ;;  %v923_v44 = vld [vmem:[#allocation7 + $0x370] sm:$0xff] }
  0x7a   : > { %992 = vmatmul.f32.gmra.mxu0 %v4408_v24 }
  0x7b   : > { %1040 = vmatmul.f32.gmra.mxu2 %v4412_v25  ;;  %1153 = vmatmul.f32.gmra.mxu3 %v4400_v18 }
  0x7f   : > { %1105 = vmatmul.f32.gmra.mxu1 %v4397_v17 }
  0x82   : > { %995 = vmatmul.f32.gmra.mxu0 %v4424_v35 }
  0x83   : > { %1043 = vmatmul.f32.gmra.mxu2 %v4429_v37  ;;  %1156 = vmatmul.f32.gmra.mxu3 %v298_v27  ;;  %v907_v27 = vld [vmem:[#allocation7 + $0x2f0] sm:$0xff] }
  0x84   : > { %1527 = vmatpush.msrb.mxu1 %v907_v27  ;;  %v877_v27 = vld [vmem:[#allocation7 + $0x200] sm:$0xff] }
  0x85   : > { %1428 = vmatpush.msrb.mxu0 %v877_v27 }
  0x86   : > { %1528 = vmatpush.msrb.mxu1 %v906_v42  ;;  %v924_v42 = vld [vmem:[#allocation7 + $0x378] sm:$0xff] }
  0x87   : > { %1108 = vmatmul.f32.gmra.mxu1 %v4415_v26  ;;  %1639 = vmatpush.msra.mxu2 %v924_v42  ;;  %v4567_v42 = vld [vmem:[%s4314_s28 + $0xe8] sm:$0xff] }
  0x88   : > { %6694 = vst [vmem:[#allocation32_spill] sm:$0xff] %v4567_v42 }
  0x89   : > { %1640 = vmatpush.msra.mxu2 %v923_v44  ;;  %v938_v44 = vld [vmem:[#allocation7 + $0x3e8] sm:$0xff] }
  0x8a   : > { %998 = vmatmul.f32.gmra.mxu0 %v4442_v46 }
  0x8b   : > { %1046 = vmatmul.f32.gmra.mxu2 %v4446_v47  ;;  %1159 = vmatmul.f32.gmra.mxu3 %v4435_v40 }
  0x8f   : > { %1111 = vmatmul.f32.gmra.mxu1 %v4432_v38 }
  0x92   : > { %1001 = vmatmul.f32.gmra.mxu0 %v4458_v57 }
  0x93   : > { %1049 = vmatmul.f32.gmra.mxu2 %v4463_v58  ;;  %1162 = vmatmul.f32.gmra.mxu3 %v300_v51  ;;  %v905_v51 = vld [vmem:[#allocation7 + $0x2e0] sm:$0xff] }
  0x94   : > { %1529 = vmatpush.msrb.mxu1 %v905_v51  ;;  %v897_v51 = vld [vmem:[#allocation7 + $0x2a0] sm:$0xff] }
  0x96   : > { %1530 = vmatpush.msrb.mxu1 %v904_v52  ;;  %v4540_v52 = vsel %vm535_vm0, %v567_v2, %v569_v41  ;;  %v572_v2 = vrot.slane %v4547_v3, 7  ;;  %v4564_v41 = vld [vmem:[%s4314_s28 + $0x68] sm:$0xff] }
  0x97   : > { %1114 = vmatmul.f32.gmra.mxu1 %v4449_v48  ;;  %6690 = vst [vmem:[#allocation28_spill] sm:$0xff] %v4540_v52 }
  0x98   : > { %1531 = vmatpush.msrb.mxu1 %v903_v54  ;;  %v896_v54 = vld [vmem:[#allocation7 + $0x298] sm:$0xff]  ;;  %v4556_v27 = vsel %vm535_vm0, %v4326_v31, %v572_v2 }
  0x99   : > { %6692 = vst [vmem:[#allocation30_spill] sm:$0xff] %v4556_v27 }
  0x9a   : > { %1004 = vmatmul.f32.gmra.mxu0 %v4476_v10  ;;  %1532 = vmatpush.msrb.mxu1 %v902_v4  ;;  %v306_v4 = vld [vmem:[%s4314_s28 + $0xe0] sm:$0xff] }
  0x9b   : > { %1052 = vmatmul.f32.gmra.mxu2 %v4480_v11  ;;  %1165 = vmatmul.f32.gmra.mxu3 %v4469_v60 }
  0x9c   : > { %1533 = vmatpush.msrb.mxu1 %v901_v19  ;;  %v956_v19 = vld [vmem:[#allocation7 + $0x478] sm:$0xff] }
  0x9d   : > { %1865 = vmatpush.msra.mxu0 %v956_v19  ;;  %v4586_v19 = vrot.slane %v6515_v30, 1 }
  0x9e   : > { %1534 = vmatpush.msrb.mxu1 %v900_v21  ;;  %v893_v21 = vld [vmem:[#allocation7 + $0x280] sm:$0xff] }
  0x9f   : > { %1117 = vmatmul.f32.gmra.mxu1 %v4466_v59  ;;  %6697 = vst [vmem:[#allocation35_spill] sm:$0xff] %v4586_v19 }
  0xa2   : > { %1007 = vmatmul.f32.gmra.mxu0 %v4492_v28 }
  0xa3   : > { %1055 = vmatmul.f32.gmra.mxu2 %v4497_v29  ;;  %1168 = vmatmul.f32.gmra.mxu3 %v302_v13  ;;  %v607_v13 = vrot.slane %v304_v1, 7 }
  0xa5   : > { %v4527_v22 = vsel %vm535_vm0, %v4326_v31, %v607_v13 }
  0xa6   : > { %6689 = vst [vmem:[#allocation27_spill] sm:$0xff] %v4527_v22 }
  0xa7   : > { %1120 = vmatmul.f32.gmra.mxu1 %v4483_v12 }
  0xaa   : > { %1010 = vmatmul.f32.gmra.mxu0 %v4507_v53 }
  0xab   : > { %1058 = vmatmul.f32.gmra.mxu2 %v4511_v55  ;;  %1171 = vmatmul.f32.gmra.mxu3 %v303_v33  ;;  %v899_v33 = vld [vmem:[#allocation7 + $0x2b0] sm:$0xff] }
  0xac   : > { %1535 = vmatpush.msrb.mxu1 %v899_v33 }
  0xae   : > { %1536 = vmatpush.msrb.mxu1 %v898_v43  ;;  %v574_v43 = vrot.slane %v4564_v41, 7 }
  0xaf   : > { %1123 = vmatmul.f32.gmra.mxu1 %v4500_v32 }
  0xb0   : > { %1537 = vmatpush.msrb.mxu1 %v897_v51  ;;  %v614_v51 = vrot.slane %v4567_v42, 7 }
  0xb2   : > { %1013 = vmatmul.f32.gmra.mxu0 %v4522_v20  ;;  %1538 = vmatpush.msrb.mxu1 %v896_v54  ;;  %v4574_v54 = vsel %vm535_vm0, %v572_v2, %v574_v43  ;;  %v670_v2 = vrot.slane %v4343_v50, 1  ;;  %v922_v43 = vld [vmem:[#allocation7 + $0x368] sm:$0xff] }
  0xb3   : > { %1061 = vmatmul.f32.gmra.mxu2 %v4527_v22  ;;  %1174 = vmatmul.f32.gmra.mxu3 %v304_v1  ;;  %v4544_v1 = vsel %vm535_vm0, %v607_v13, %v609_v45  ;;  %v612_v13 = vrot.slane %v306_v4, 7  ;;  %v939_v45 = vld [vmem:[#allocation7 + $0x3f0] sm:$0xff]  ;;  %6695 = vst [vmem:[#allocation33_spill] sm:$0xff] %v4574_v54 }
  0xb4   : > { %6691 = vst [vmem:[#allocation29_spill] sm:$0xff] %v4544_v1  ;;  %1539 = vmatpush.msrb.mxu1 %v895_v5  ;;  %1753 = vmatpush.msra.mxu3 %v939_v45 }
  0xb5   : > { %v4561_v33 = vsel %vm535_vm0, %v4326_v31, %v612_v13  ;;  %v4578_v5 = vsel %vm535_vm0, %v612_v13, %v614_v51  ;;  %v671_v13 = vrot.slane %v4360_v63, 1  ;;  %1641 = vmatpush.msra.mxu2 %v922_v43 }
  0xb6   : > { %1540 = vmatpush.msrb.mxu1 %v894_v14  ;;  %6693 = vst [vmem:[#allocation31_spill] sm:$0xff] %v4561_v33  ;;  %1754 = vmatpush.msra.mxu3 %v938_v44 }
  0xb7   : > { %1126 = vmatmul.f32.gmra.mxu1 %v4514_v56  ;;  %6696 = vst [vmem:[#allocation34_spill] sm:$0xff] %v4578_v5  ;;  %v672_v51 = vsel %vm664_vm1, %v670_v2, %v671_v13  ;;  %v674_v2 = vsel %vm664_vm1, %v671_v13, %v4586_v19  ;;  %v937_v13 = vld [vmem:[#allocation7 + $0x3e0] sm:$0xff] }
  0xb8   : > { %1541 = vmatpush.msrb.mxu1 %v893_v21  ;;  %v4595_v21 = vld [vmem:[%s6510_s2] ss:$0 sm:$0xff]  ;;  %1755 = vmatpush.msra.mxu3 %v937_v13 }
  0xba   : > { %1016 = vmatmul.f32.gmra.mxu0 %v4540_v52 }
  0xbb   : > { %1064 = vmatmul.f32.gmra.mxu2 %v4544_v1  ;;  %1177 = vmatmul.f32.gmra.mxu3 %v4533_v34 }
  0xbf   : > { %1129 = vmatmul.f32.gmra.mxu1 %v4530_v23 }
  0xc2   : > { %1019 = vmatmul.f32.gmra.mxu0 %v4556_v27 }
  0xc3   : > { %1067 = vmatmul.f32.gmra.mxu2 %v4561_v33  ;;  %1180 = vmatmul.f32.gmra.mxu3 %v306_v4  ;;  %v955_v4 = vld [vmem:[#allocation7 + $0x470] sm:$0xff] }
  0xc4   : > { %1866 = vmatpush.msra.mxu0 %v955_v4 }
  0xc7   : > { %1132 = vmatmul.f32.gmra.mxu1 %v4547_v3 }
  0xca   : > { %1022 = vmatmul.f32.gmra.mxu0 %v4574_v54 }
  0xcb   : > { %1070 = vmatmul.f32.gmra.mxu2 %v4578_v5  ;;  %1183 = vmatmul.f32.gmra.mxu3 %v4567_v42 }
  0xcf   : > { %v4583_v14 = vpop.f32.mrf.mxu0  ;;  %1135 = vmatmul.f32.gmra.mxu1 %v4564_v41 }
  0xd2   : > { %1429 = vmatmul.f32.vlgmr.msrb.gmra.mxu0 %v4343_v50 }
  0xd3   : > { %1203 = vmatmul.f32.vlgmr.msrb.gmra.mxu2 %v4586_v19  ;;  %1316 = vmatmul.f32.vlgmr.msrb.gmra.mxu3 %v4352_v61  ;;  %v954_v61 = vld [vmem:[#allocation7 + $0x468] sm:$0xff] }
  0xd4   : > { %v4599_v45 = vpop.f32.mrf.mxu1  ;;  %1867 = vmatpush.msra.mxu0 %v954_v61 }
  0xd6   : > { %v1026_v4 = vpop.f32.mrf.mxu2  ;;  %v1139_v30 = vpop.f32.mrf.mxu3 }
  0xd7   : > { %v1027_v50 = vadd.f32 %v4595_v21, %v1026_v4  ;;  %v4603_v31 = vpop.f32.mrf.mxu0  ;;  %1542 = vmatmul.f32.vlgmr.msrb.gmra.mxu1 %v672_v51 }
  0xd9   : > { %v4605_v5 = vadd.f32 %v1139_v30, %v1027_v50  ;;  %v675_v30 = vrot.slane %v4377_v8, 1 }
  0xda   : > { %1432 = vmatmul.f32.gmra.mxu0 %v4360_v63  ;;  %v676_v63 = vrot.slane %v4397_v17, 1 }
  0xdb   : > { %6698 = vst [vmem:[#allocation36_spill] sm:$0xff] %v4605_v5  ;;  %1206 = vmatmul.f32.gmra.mxu2 %v4586_v19  ;;  %1319 = vmatmul.f32.gmra.mxu3 %v4370_v6  ;;  %v921_v6 = vld [vmem:[#allocation7 + $0x360] sm:$0xff] }
  0xdc   : > { %v4610_v33 = vpop.f32.mrf.mxu1  ;;  %1642 = vmatpush.msra.mxu2 %v921_v6 }
  0xde   : > { %v1029_v43 = vpop.f32.mrf.mxu2  ;;  %v1142_v44 = vpop.f32.mrf.mxu3 }
  0xdf   : > { %v1030_v4 = vadd.f32 %v4595_v21, %v1029_v43  ;;  %v4615_v42 = vpop.f32.mrf.mxu0  ;;  %1545 = vmatmul.f32.gmra.mxu1 %v674_v2  ;;  %v4626_v43 = vsel %vm664_vm1, %v675_v30, %v676_v63  ;;  %v4640_v30 = vsel %vm664_vm1, %v676_v63, %v4586_v19  ;;  %v936_v63 = vld [vmem:[#allocation7 + $0x3d8] sm:$0xff] }
  0xe0   : > { %6700 = vst [vmem:[#allocation38_spill] sm:$0xff] %v4626_v43  ;;  %1756 = vmatpush.msra.mxu3 %v936_v63 }
  0xe1   : > { %v4619_v50 = vadd.f32 %v1142_v44, %v1030_v4  ;;  %6702 = vst [vmem:[#allocation40_spill] sm:$0xff] %v4640_v30 }
  0xe2   : > { %1435 = vmatmul.f32.gmra.mxu0 %v4377_v8 }
  0xe3   : > { %6699 = vst [vmem:[#allocation37_spill] sm:$0xff] %v4619_v50  ;;  %1209 = vmatmul.f32.gmra.mxu2 %v672_v51  ;;  %1322 = vmatmul.f32.gmra.mxu3 %v4389_v15  ;;  %v953_v51 = vld [vmem:[#allocation7 + $0x460] sm:$0xff] }
  0xe4   : > { %v4623_v61 = vpop.f32.mrf.mxu1  ;;  %1868 = vmatpush.msra.mxu0 %v953_v51 }
  0xe6   : > { %v1032_v5 = vpop.f32.mrf.mxu2  ;;  %v1145_v1 = vpop.f32.mrf.mxu3 }
  0xe7   : > { %v1033_v22 = vadd.f32 %v4595_v21, %v1032_v5  ;;  %v4629_v44 = vpop.f32.mrf.mxu0  ;;  %1548 = vmatmul.f32.gmra.mxu1 %v4626_v43 }
  0xe9   : > { %v4632_v8 = vadd.f32 %v1145_v1, %v1033_v22  ;;  %v681_v22 = vrot.slane %v4432_v38, 1 }
  0xea   : > { %1438 = vmatmul.f32.gmra.mxu0 %v4397_v17  ;;  %v680_v17 = vrot.slane %v4415_v26, 1 }
  0xeb   : > { %6701 = vst [vmem:[#allocation39_spill] sm:$0xff] %v4632_v8  ;;  %1212 = vmatmul.f32.gmra.mxu2 %v674_v2  ;;  %1325 = vmatmul.f32.gmra.mxu3 %v4408_v24  ;;  %v920_v2 = vld [vmem:[#allocation7 + $0x358] sm:$0xff] }
  0xec   : > { %v4636_v4 = vpop.f32.mrf.mxu1  ;;  %1643 = vmatpush.msra.mxu2 %v920_v2  ;;  %v4671_v2 = vsel %vm664_vm1, %v681_v22, %v4586_v19 }
  0xed   : > { %6706 = vst [vmem:[#allocation44_spill] sm:$0xff] %v4671_v2 }
  0xee   : > { %v1035_v5 = vpop.f32.mrf.mxu2  ;;  %v1148_v6 = vpop.f32.mrf.mxu3 }
  0xef   : > { %v1036_v13 = vadd.f32 %v4595_v21, %v1035_v5  ;;  %v4643_v50 = vpop.f32.mrf.mxu0  ;;  %1551 = vmatmul.f32.gmra.mxu1 %v4640_v30  ;;  %v4656_v5 = vsel %vm664_vm1, %v680_v17, %v681_v22  ;;  %v952_v17 = vld [vmem:[#allocation7 + $0x458] sm:$0xff]  ;;  %v919_v22 = vld [vmem:[#allocation7 + $0x350] sm:$0xff] }
  0xf0   : > { %6704 = vst [vmem:[#allocation42_spill] sm:$0xff] %v4656_v5  ;;  %1869 = vmatpush.msra.mxu0 %v952_v17  ;;  %v935_v17 = vld [vmem:[#allocation7 + $0x3d0] sm:$0xff]  ;;  %1644 = vmatpush.msra.mxu2 %v919_v22 }
  0xf1   : > { %v4648_v1 = vadd.f32 %v1148_v6, %v1036_v13  ;;  %1757 = vmatpush.msra.mxu3 %v935_v17 }
  0xf2   : > { %1441 = vmatmul.f32.gmra.mxu0 %v4415_v26 }
  0xf3   : > { %6703 = vst [vmem:[#allocation41_spill] sm:$0xff] %v4648_v1  ;;  %1215 = vmatmul.f32.gmra.mxu2 %v4626_v43  ;;  %1328 = vmatmul.f32.gmra.mxu3 %v4424_v35 }
  0xf4   : > { %v4653_v51 = vpop.f32.mrf.mxu1 }
  0xf6   : > { %v1038_v8 = vpop.f32.mrf.mxu2  ;;  %v1151_v24 = vpop.f32.mrf.mxu3 }
  0xf7   : > { %v1039_v6 = vadd.f32 %v4595_v21, %v1038_v8  ;;  %v4659_v13 = vpop.f32.mrf.mxu0  ;;  %1554 = vmatmul.f32.gmra.mxu1 %v4656_v5 }
  0xf9   : > { %v4662_v26 = vadd.f32 %v1151_v24, %v1039_v6  ;;  %v686_v6 = vrot.slane %v4466_v59, 1 }
  0xfa   : > { %1444 = vmatmul.f32.gmra.mxu0 %v4432_v38  ;;  %v685_v38 = vrot.slane %v4449_v48, 1 }
  0xfb   : > { %6705 = vst [vmem:[#allocation43_spill] sm:$0xff] %v4662_v26  ;;  %1218 = vmatmul.f32.gmra.mxu2 %v4640_v30  ;;  %1331 = vmatmul.f32.gmra.mxu3 %v4442_v46  ;;  %v4702_v22 = vsel %vm664_vm1, %v686_v6, %v4586_v19 }
  0xfc   : > { %v4667_v1 = vpop.f32.mrf.mxu1  ;;  %6710 = vst [vmem:[#allocation48_spill] sm:$0xff] %v4702_v22 }
  0xfe   : > { %v1041_v8 = vpop.f32.mrf.mxu2  ;;  %v1154_v63 = vpop.f32.mrf.mxu3 }
  0xff   : > { %v1042_v35 = vadd.f32 %v4595_v21, %v1041_v8  ;;  %v4674_v24 = vpop.f32.mrf.mxu0  ;;  %1557 = vmatmul.f32.gmra.mxu1 %v4671_v2  ;;  %v4687_v8 = vsel %vm664_vm1, %v685_v38, %v686_v6  ;;  %v951_v38 = vld [vmem:[#allocation7 + $0x450] sm:$0xff]  ;;  %v918_v6 = vld [vmem:[#allocation7 + $0x348] sm:$0xff] }
 0x100   : > { %6708 = vst [vmem:[#allocation46_spill] sm:$0xff] %v4687_v8  ;;  %1870 = vmatpush.msra.mxu0 %v951_v38  ;;  %v934_v38 = vld [vmem:[#allocation7 + $0x3c8] sm:$0xff]  ;;  %1645 = vmatpush.msra.mxu2 %v918_v6 }
 0x101   : > { %v4679_v26 = vadd.f32 %v1154_v63, %v1042_v35  ;;  %1758 = vmatpush.msra.mxu3 %v934_v38 }
 0x102   : > { %1447 = vmatmul.f32.gmra.mxu0 %v4449_v48 }
 0x103   : > { %6707 = vst [vmem:[#allocation45_spill] sm:$0xff] %v4679_v26  ;;  %1221 = vmatmul.f32.gmra.mxu2 %v4656_v5  ;;  %1334 = vmatmul.f32.gmra.mxu3 %v4458_v57 }
 0x104   : > { %v4684_v46 = vpop.f32.mrf.mxu1 }
 0x106   : > { %v1044_v30 = vpop.f32.mrf.mxu2  ;;  %v1157_v15 = vpop.f32.mrf.mxu3 }
 0x107   : > { %v1045_v35 = vadd.f32 %v4595_v21, %v1044_v30  ;;  %v4690_v63 = vpop.f32.mrf.mxu0  ;;  %1560 = vmatmul.f32.gmra.mxu1 %v4687_v8 }
 0x109   : > { %v4693_v48 = vadd.f32 %v1157_v15, %v1045_v35  ;;  %v691_v35 = vrot.slane %v4500_v32, 1 }
 0x10a   : > { %1450 = vmatmul.f32.gmra.mxu0 %v4466_v59  ;;  %v690_v59 = vrot.slane %v4483_v12, 1 }
 0x10b   : > { %6709 = vst [vmem:[#allocation47_spill] sm:$0xff] %v4693_v48  ;;  %1224 = vmatmul.f32.gmra.mxu2 %v4671_v2  ;;  %1337 = vmatmul.f32.gmra.mxu3 %v4476_v10  ;;  %v4733_v6 = vsel %vm664_vm1, %v691_v35, %v4586_v19 }
 0x10c   : > { %v4698_v26 = vpop.f32.mrf.mxu1  ;;  %6714 = vst [vmem:[#allocation52_spill] sm:$0xff] %v4733_v6 }
 0x10e   : > { %v1047_v30 = vpop.f32.mrf.mxu2  ;;  %v1160_v17 = vpop.f32.mrf.mxu3 }
 0x10f   : > { %v1048_v57 = vadd.f32 %v4595_v21, %v1047_v30  ;;  %v4705_v15 = vpop.f32.mrf.mxu0  ;;  %1563 = vmatmul.f32.gmra.mxu1 %v4702_v22  ;;  %v4718_v30 = vsel %vm664_vm1, %v690_v59, %v691_v35  ;;  %v950_v59 = vld [vmem:[#allocation7 + $0x448] sm:$0xff]  ;;  %v917_v35 = vld [vmem:[#allocation7 + $0x340] sm:$0xff] }
 0x110   : > { %6712 = vst [vmem:[#allocation50_spill] sm:$0xff] %v4718_v30  ;;  %1871 = vmatpush.msra.mxu0 %v950_v59  ;;  %v933_v59 = vld [vmem:[#allocation7 + $0x3c0] sm:$0xff]  ;;  %1646 = vmatpush.msra.mxu2 %v917_v35 }
 0x111   : > { %v4710_v48 = vadd.f32 %v1160_v17, %v1048_v57  ;;  %1759 = vmatpush.msra.mxu3 %v933_v59 }
 0x112   : > { %1453 = vmatmul.f32.gmra.mxu0 %v4483_v12 }
 0x113   : > { %6711 = vst [vmem:[#allocation49_spill] sm:$0xff] %v4710_v48  ;;  %1227 = vmatmul.f32.gmra.mxu2 %v4687_v8  ;;  %1340 = vmatmul.f32.gmra.mxu3 %v4492_v28 }
 0x114   : > { %v4715_v10 = vpop.f32.mrf.mxu1 }
 0x116   : > { %v1050_v2 = vpop.f32.mrf.mxu2  ;;  %v1163_v5 = vpop.f32.mrf.mxu3 }
 0x117   : > { %v1051_v57 = vadd.f32 %v4595_v21, %v1050_v2  ;;  %v4721_v17 = vpop.f32.mrf.mxu0  ;;  %1566 = vmatmul.f32.gmra.mxu1 %v4718_v30 }
 0x119   : > { %v4724_v12 = vadd.f32 %v1163_v5, %v1051_v57  ;;  %v696_v57 = vrot.slane %v4530_v23, 1 }
 0x11a   : > { %1456 = vmatmul.f32.gmra.mxu0 %v4500_v32  ;;  %v695_v32 = vrot.slane %v4514_v56, 1 }
 0x11b   : > { %6713 = vst [vmem:[#allocation51_spill] sm:$0xff] %v4724_v12  ;;  %1230 = vmatmul.f32.gmra.mxu2 %v4702_v22  ;;  %1343 = vmatmul.f32.gmra.mxu3 %v4507_v53  ;;  %v4764_v35 = vsel %vm664_vm1, %v696_v57, %v4586_v19 }
 0x11c   : > { %v4729_v48 = vpop.f32.mrf.mxu1  ;;  %6718 = vst [vmem:[#allocation56_spill] sm:$0xff] %v4764_v35 }
 0x11e   : > { %v1053_v2 = vpop.f32.mrf.mxu2  ;;  %v1166_v38 = vpop.f32.mrf.mxu3 }
 0x11f   : > { %v1054_v28 = vadd.f32 %v4595_v21, %v1053_v2  ;;  %v4736_v5 = vpop.f32.mrf.mxu0  ;;  %1569 = vmatmul.f32.gmra.mxu1 %v4733_v6  ;;  %v4749_v2 = vsel %vm664_vm1, %v695_v32, %v696_v57  ;;  %v949_v32 = vld [vmem:[#allocation7 + $0x440] sm:$0xff]  ;;  %v916_v57 = vld [vmem:[#allocation7 + $0x338] sm:$0xff] }
 0x120   : > { %6716 = vst [vmem:[#allocation54_spill] sm:$0xff] %v4749_v2  ;;  %1872 = vmatpush.msra.mxu0 %v949_v32  ;;  %v932_v32 = vld [vmem:[#allocation7 + $0x3b8] sm:$0xff]  ;;  %1647 = vmatpush.msra.mxu2 %v916_v57 }
 0x121   : > { %v4741_v12 = vadd.f32 %v1166_v38, %v1054_v28  ;;  %1760 = vmatpush.msra.mxu3 %v932_v32 }
 0x122   : > { %1459 = vmatmul.f32.gmra.mxu0 %v4514_v56 }
 0x123   : > { %6715 = vst [vmem:[#allocation53_spill] sm:$0xff] %v4741_v12  ;;  %1233 = vmatmul.f32.gmra.mxu2 %v4718_v30  ;;  %1346 = vmatmul.f32.gmra.mxu3 %v4522_v20 }
 0x124   : > { %v4746_v53 = vpop.f32.mrf.mxu1 }
 0x126   : > { %v1056_v22 = vpop.f32.mrf.mxu2  ;;  %v1169_v8 = vpop.f32.mrf.mxu3 }
 0x127   : > { %v1057_v28 = vadd.f32 %v4595_v21, %v1056_v22  ;;  %v4752_v38 = vpop.f32.mrf.mxu0  ;;  %1572 = vmatmul.f32.gmra.mxu1 %v4749_v2 }
 0x129   : > { %v4755_v56 = vadd.f32 %v1169_v8, %v1057_v28  ;;  %v701_v28 = vrot.slane %v4564_v41, 1 }
 0x12a   : > { %1462 = vmatmul.f32.gmra.mxu0 %v4530_v23  ;;  %v700_v23 = vrot.slane %v4547_v3, 1 }
 0x12b   : > { %6717 = vst [vmem:[#allocation55_spill] sm:$0xff] %v4755_v56  ;;  %1236 = vmatmul.f32.gmra.mxu2 %v4733_v6  ;;  %1349 = vmatmul.f32.gmra.mxu3 %v4540_v52  ;;  %v2526_v52 = vld [vmem:[#allocation9 + $0x78] sm:$0xff]  ;;  %v4795_v57 = vsel %vm664_vm1, %v701_v28, %v4586_v19 }
 0x12c   : > { %v4760_v12 = vpop.f32.mrf.mxu1  ;;  %2659 = vmatpush.msra.mxu1 %v2526_v52  ;;  %v4780_v6 = vsel %vm664_vm1, %v700_v23, %v701_v28  ;;  %6722 = vst [vmem:[#allocation60_spill] sm:$0xff] %v4795_v57  ;;  %v2525_v28 = vld [vmem:[#allocation9 + $0x70] sm:$0xff] }
 0x12d   : > { %6720 = vst [vmem:[#allocation58_spill] sm:$0xff] %v4780_v6 }
 0x12e   : > { %v1059_v22 = vpop.f32.mrf.mxu2  ;;  %v1172_v59 = vpop.f32.mrf.mxu3  ;;  %2660 = vmatpush.msra.mxu1 %v2525_v28 }
 0x12f   : > { %v1060_v20 = vadd.f32 %v4595_v21, %v1059_v22  ;;  %v4767_v8 = vpop.f32.mrf.mxu0  ;;  %1575 = vmatmul.f32.gmra.mxu1 %v4764_v35 }
 0x131   : > { %v4772_v56 = vadd.f32 %v1172_v59, %v1060_v20 }
 0x132   : > { %1465 = vmatmul.f32.gmra.mxu0 %v4547_v3 }
 0x133   : > { %6719 = vst [vmem:[#allocation57_spill] sm:$0xff] %v4772_v56  ;;  %1239 = vmatmul.f32.gmra.mxu2 %v4749_v2  ;;  %1352 = vmatmul.f32.gmra.mxu3 %v4556_v27  ;;  %v931_v2 = vld [vmem:[#allocation7 + $0x3b0] sm:$0xff] }
 0x134   : > { %v4777_v22 = vpop.f32.mrf.mxu1  ;;  %1761 = vmatpush.msra.mxu3 %v931_v2 }
 0x136   : > { %v1062_v30 = vpop.f32.mrf.mxu2  ;;  %v1175_v20 = vpop.f32.mrf.mxu3 }
 0x137   : > { %v1063_v59 = vadd.f32 %v4595_v21, %v1062_v30  ;;  %v4783_v3 = vpop.f32.mrf.mxu0  ;;  %1578 = vmatmul.f32.gmra.mxu1 %v4780_v6  ;;  %v948_v30 = vld [vmem:[#allocation7 + $0x438] sm:$0xff] }
 0x138   : > { %1873 = vmatpush.msra.mxu0 %v948_v30  ;;  %v915_v30 = vld [vmem:[#allocation7 + $0x330] sm:$0xff] }
 0x139   : > { %v4786_v52 = vadd.f32 %v1175_v20, %v1063_v59  ;;  %1648 = vmatpush.msra.mxu2 %v915_v30  ;;  %v947_v30 = vld [vmem:[#allocation7 + $0x430] sm:$0xff] }
 0x13a   : > { %1468 = vmatmul.f32.gmra.mxu0 %v4564_v41  ;;  %v4802_v41 = vld [vmem:[%s4314_s28 + $0x70] sm:$0xff] }
 0x13b   : > { %6721 = vst [vmem:[#allocation59_spill] sm:$0xff] %v4786_v52  ;;  %1242 = vmatmul.f32.gmra.mxu2 %v4764_v35  ;;  %1355 = vmatmul.f32.gmra.mxu3 %v4574_v54  ;;  %v705_v59 = vrot.slane %v4802_v41, 1  ;;  %v706_v52 = vrot.slane %v4333_v39, 1 }
 0x13c   : > { %v4791_v23 = vpop.f32.mrf.mxu1  ;;  %6723 = vst [vmem:[#allocation61_spill] sm:$0xff] %v4802_v41  ;;  %1874 = vmatpush.msra.mxu0 %v947_v30  ;;  %v914_v30 = vld [vmem:[#allocation7 + $0x328] sm:$0xff] }
 0x13d   : > { %v4814_v35 = vsel %vm664_vm1, %v705_v59, %v706_v52  ;;  %v4832_v2 = vsel %vm664_vm1, %v706_v52, %v4586_v19  ;;  %1649 = vmatpush.msra.mxu2 %v914_v30  ;;  %v946_v30 = vld [vmem:[#allocation7 + $0x428] sm:$0xff] }
 0x13e   : > { %v1065_v32 = vpop.f32.mrf.mxu2  ;;  %v1178_v56 = vpop.f32.mrf.mxu3  ;;  %1875 = vmatpush.msra.mxu0 %v946_v30 }
 0x13f   : > { %v1066_v27 = vadd.f32 %v4595_v21, %v1065_v32  ;;  %v4798_v20 = vpop.f32.mrf.mxu0  ;;  %1581 = vmatmul.f32.gmra.mxu1 %v4795_v57 }
 0x141   : > { %v4806_v54 = vadd.f32 %v1178_v56, %v1066_v27 }
 0x142   : > { %1471 = vmatmul.f32.gmra.mxu0 %v4802_v41  ;;  %v4823_v41 = vld [vmem:[%s4314_s28 + $0x78] sm:$0xff] }
 0x143   : > { %6724 = vst [vmem:[#allocation62_spill] sm:$0xff] %v4806_v54  ;;  %1245 = vmatmul.f32.gmra.mxu2 %v4780_v6  ;;  %1358 = vmatmul.f32.gmra.mxu3 %v4330_v36  ;;  %v2524_v6 = vld [vmem:[#allocation9 + $0x68] sm:$0xff] }
 0x144   : > { %v4811_v32 = vpop.f32.mrf.mxu1  ;;  %6727 = vst [vmem:[#allocation65_spill] sm:$0xff] %v4823_v41  ;;  %2661 = vmatpush.msra.mxu1 %v2524_v6  ;;  %v982_v6 = vadd.f32 %v4595_v21, %v4603_v31 }
 0x146   : > { %v1068_v39 = vpop.f32.mrf.mxu2  ;;  %v1181_v27 = vpop.f32.mrf.mxu3 }
 0x147   : > { %v1069_v56 = vadd.f32 %v4595_v21, %v1068_v39  ;;  %v4817_v54 = vpop.f32.mrf.mxu0  ;;  %1584 = vmatmul.f32.gmra.mxu1 %v4814_v35 }
 0x148   : > { %6725 = vst [vmem:[#allocation63_spill] sm:$0xff] %v4817_v54  ;;  %v930_v54 = vld [vmem:[#allocation7 + $0x3a8] sm:$0xff] }
 0x149   : > { %v4820_v28 = vadd.f32 %v1181_v27, %v1069_v56  ;;  %1762 = vmatpush.msra.mxu3 %v930_v54 }
 0x14a   : > { %1474 = vmatmul.f32.gmra.mxu0 %v4823_v41 }
 0x14b   : > { %6726 = vst [vmem:[#allocation64_spill] sm:$0xff] %v4820_v28  ;;  %1248 = vmatmul.f32.gmra.mxu2 %v4795_v57  ;;  %1361 = vmatmul.f32.gmra.mxu3 %v4340_v49  ;;  %v4837_v28 = vld [vmem:[%s4314_s28 + $0x80] sm:$0xff]  ;;  %v711_v49 = vrot.slane %v4363_v0, 1  ;;  %v979_v57 = vadd.f32 %v4595_v21, %v4583_v14 }
 0x14c   : > { %v4828_v59 = vpop.f32.mrf.mxu1  ;;  %6729 = vst [vmem:[#allocation67_spill] sm:$0xff] %v4837_v28  ;;  %v710_v41 = vrot.slane %v4837_v28, 1 }
 0x14d   : > { %6728 = vst [vmem:[#allocation66_spill] sm:$0xff] %v4828_v59  ;;  %v1092_v59 = vadd.f32 %v4599_v45, %v979_v57  ;;  %v4860_v54 = vsel %vm664_vm1, %v711_v49, %v4586_v19  ;;  %v1095_v57 = vadd.f32 %v4610_v33, %v982_v6  ;;  %v4871_v33 = vld [vmem:[%s4314_s28 + $0x90] sm:$0xff]  ;;  %v913_v6 = vld [vmem:[#allocation7 + $0x320] sm:$0xff] }
 0x14e   : > { %v1071_v39 = vpop.f32.mrf.mxu2  ;;  %v1184_v36 = vpop.f32.mrf.mxu3  ;;  %v4849_v43 = vsel %vm664_vm1, %v710_v41, %v711_v49  ;;  %v985_v49 = vadd.f32 %v4595_v21, %v4615_v42  ;;  %1650 = vmatpush.msra.mxu2 %v913_v6 }
 0x14f   : > { %v1072_v27 = vadd.f32 %v4595_v21, %v1071_v39  ;;  %v1430_v56 = vpop.f32.mrf.mxu0  ;;  %1587 = vmatmul.f32.gmra.mxu1 %v4832_v2 }
 0x150   : > { %v1098_v42 = vadd.f32 %v4623_v61, %v985_v49 }
 0x151   : > { %v4843_v52 = vadd.f32 %v1184_v36, %v1072_v27 }
 0x152   : > { %1477 = vmatmul.f32.gmra.mxu0 %v4837_v28 }
 0x153   : > { %6730 = vst [vmem:[#allocation68_spill] sm:$0xff] %v4843_v52  ;;  %1251 = vmatmul.f32.gmra.mxu2 %v4814_v35  ;;  %1364 = vmatmul.f32.gmra.mxu3 %v4357_v62 }
 0x154   : > { %v1543_v39 = vpop.f32.mrf.mxu1 }
 0x156   : > { %v1204_v14 = vpop.f32.mrf.mxu2  ;;  %v1317_v36 = vpop.f32.mrf.mxu3 }
 0x157   : > { %v1205_v27 = vadd.f32 %v1204_v14, %v1092_v59  ;;  %v1433_v52 = vpop.f32.mrf.mxu0  ;;  %1590 = vmatmul.f32.gmra.mxu1 %v4849_v43 }
 0x159   : > { %v1318_v28 = vadd.f32 %v1317_v36, %v1205_v27 }
 0x15a   : > { %1480 = vmatmul.f32.gmra.mxu0 %v4363_v0 }
 0x15b   : > { %1254 = vmatmul.f32.gmra.mxu2 %v4832_v2  ;;  %1367 = vmatmul.f32.gmra.mxu3 %v4374_v7  ;;  %v1431_v41 = vadd.f32 %v1430_v56, %v1318_v28  ;;  %v715_v28 = vrot.slane %v4380_v9, 1  ;;  %v716_v56 = vrot.slane %v4400_v18, 1  ;;  %v2523_v7 = vld [vmem:[#allocation9 + $0x60] sm:$0xff] }
 0x15c   : > { %v1546_v45 = vpop.f32.mrf.mxu1  ;;  %2662 = vmatpush.msra.mxu1 %v2523_v7 }
 0x15d   : > { %v4863_v59 = vadd.f32 %v1543_v39, %v1431_v41  ;;  %v4877_v18 = vsel %vm664_vm1, %v715_v28, %v716_v56  ;;  %v4893_v28 = vsel %vm664_vm1, %v716_v56, %v4586_v19  ;;  %v991_v56 = vadd.f32 %v4595_v21, %v4643_v50 }
 0x15e   : > { %v1207_v31 = vpop.f32.mrf.mxu2  ;;  %v1320_v14 = vpop.f32.mrf.mxu3 }
 0x15f   : > { %v1208_v0 = vadd.f32 %v1207_v31, %v1095_v57  ;;  %v1436_v36 = vpop.f32.mrf.mxu0  ;;  %1593 = vmatmul.f32.gmra.mxu1 %v4860_v54  ;;  %v929_v57 = vld [vmem:[#allocation7 + $0x3a0] sm:$0xff] }
 0x160   : > { %1763 = vmatpush.msra.mxu3 %v929_v57 }
 0x161   : > { %v1321_v27 = vadd.f32 %v1320_v14, %v1208_v0 }
 0x162   : > { %1483 = vmatmul.f32.gmra.mxu0 %v4871_v33 }
 0x163   : > { %1257 = vmatmul.f32.gmra.mxu2 %v4849_v43  ;;  %1370 = vmatmul.f32.gmra.mxu3 %v4394_v16  ;;  %v1434_v39 = vadd.f32 %v1433_v52, %v1321_v27  ;;  %v988_v52 = vadd.f32 %v4595_v21, %v4629_v44  ;;  %v4886_v27 = vld [vmem:[%s4314_s28 + $0x98] sm:$0xff]  ;;  %v945_v44 = vld [vmem:[#allocation7 + $0x420] sm:$0xff] }
 0x164   : > { %v1549_v9 = vpop.f32.mrf.mxu1  ;;  %1876 = vmatpush.msra.mxu0 %v945_v44  ;;  %v928_v44 = vld [vmem:[#allocation7 + $0x398] sm:$0xff] }
 0x165   : > { %v4880_v41 = vadd.f32 %v1546_v45, %v1434_v39  ;;  %v1101_v49 = vadd.f32 %v4636_v4, %v988_v52  ;;  %1764 = vmatpush.msra.mxu3 %v928_v44 }
 0x166   : > { %v1210_v30 = vpop.f32.mrf.mxu2  ;;  %v1323_v31 = vpop.f32.mrf.mxu3 }
 0x167   : > { %v1211_v7 = vadd.f32 %v1210_v30, %v1098_v42  ;;  %v1439_v14 = vpop.f32.mrf.mxu0  ;;  %1596 = vmatmul.f32.gmra.mxu1 %v4877_v18 }
 0x169   : > { %v1324_v0 = vadd.f32 %v1323_v31, %v1211_v7  ;;  %v4900_v31 = vld [vmem:[%s4314_s28 + $0xa0] sm:$0xff]  ;;  %v721_v7 = vrot.slane %v4435_v40, 1  ;;  %v1104_v40 = vadd.f32 %v4653_v51, %v991_v56 }
 0x16a   : > { %1486 = vmatmul.f32.gmra.mxu0 %v4886_v27 }
 0x16b   : > { %1260 = vmatmul.f32.gmra.mxu2 %v4860_v54  ;;  %1373 = vmatmul.f32.gmra.mxu3 %v4412_v25  ;;  %v1437_v61 = vadd.f32 %v1436_v36, %v1324_v0  ;;  %v720_v36 = vrot.slane %v4900_v31, 1  ;;  %v912_v0 = vld [vmem:[#allocation7 + $0x318] sm:$0xff] }
 0x16c   : > { %v1552_v45 = vpop.f32.mrf.mxu1  ;;  %1651 = vmatpush.msra.mxu2 %v912_v0 }
 0x16d   : > { %v4896_v39 = vadd.f32 %v1549_v9, %v1437_v61  ;;  %v2522_v9 = vld [vmem:[#allocation9 + $0x58] sm:$0xff] }
 0x16e   : > { %v1213_v6 = vpop.f32.mrf.mxu2  ;;  %v1326_v42 = vpop.f32.mrf.mxu3  ;;  %2663 = vmatpush.msra.mxu1 %v2522_v9 }
 0x16f   : > { %6731 = vst [vmem:[#allocation69_spill] sm:$0xff] %v4896_v39  ;;  %v1214_v57 = vadd.f32 %v1213_v6, %v1101_v49  ;;  %v1442_v30 = vpop.f32.mrf.mxu0  ;;  %1599 = vmatmul.f32.gmra.mxu1 %v4893_v28  ;;  %v4910_v49 = vsel %vm664_vm1, %v720_v36, %v721_v7  ;;  %v4919_v39 = vld [vmem:[%s4314_s28 + $0xa8] sm:$0xff] }
 0x171   : > { %v1327_v4 = vadd.f32 %v1326_v42, %v1214_v57 }
 0x172   : > { %1489 = vmatmul.f32.gmra.mxu0 %v4900_v31 }
 0x173   : > { %1263 = vmatmul.f32.gmra.mxu2 %v4877_v18  ;;  %1376 = vmatmul.f32.gmra.mxu3 %v4429_v37  ;;  %v1440_v52 = vadd.f32 %v1439_v14, %v1327_v4  ;;  %v994_v14 = vadd.f32 %v4595_v21, %v4659_v13 }
 0x174   : > { %v1555_v61 = vpop.f32.mrf.mxu1 }
 0x175   : > { %v4913_v50 = vadd.f32 %v1552_v45, %v1440_v52  ;;  %v4926_v45 = vsel %vm664_vm1, %v721_v7, %v4586_v19  ;;  %v1107_v36 = vadd.f32 %v4667_v1, %v994_v14  ;;  %v944_v52 = vld [vmem:[#allocation7 + $0x418] sm:$0xff]  ;;  %v726_v7 = vrot.slane %v4469_v60, 1 }
 0x176   : > { %v1216_v6 = vpop.f32.mrf.mxu2  ;;  %v1329_v42 = vpop.f32.mrf.mxu3  ;;  %1877 = vmatpush.msra.mxu0 %v944_v52  ;;  %v997_v1 = vadd.f32 %v4595_v21, %v4674_v24  ;;  %v927_v24 = vld [vmem:[#allocation7 + $0x390] sm:$0xff] }
 0x177   : > { %v1217_v57 = vadd.f32 %v1216_v6, %v1104_v40  ;;  %v1445_v9 = vpop.f32.mrf.mxu0  ;;  %1602 = vmatmul.f32.gmra.mxu1 %v4910_v49  ;;  %1765 = vmatpush.msra.mxu3 %v927_v24 }
 0x178   : > { %v1110_v60 = vadd.f32 %v4684_v46, %v997_v1 }
 0x179   : > { %v1330_v4 = vadd.f32 %v1329_v42, %v1217_v57  ;;  %v4933_v42 = vld [vmem:[%s4314_s28 + $0xb0] sm:$0xff] }
 0x17a   : > { %1492 = vmatmul.f32.gmra.mxu0 %v4919_v39  ;;  %v2521_v57 = vld [vmem:[#allocation9 + $0x50] sm:$0xff] }
 0x17b   : > { %1266 = vmatmul.f32.gmra.mxu2 %v4893_v28  ;;  %1379 = vmatmul.f32.gmra.mxu3 %v4446_v47  ;;  %v1443_v51 = vadd.f32 %v1442_v30, %v1330_v4  ;;  %v725_v30 = vrot.slane %v4933_v42, 1  ;;  %v911_v4 = vld [vmem:[#allocation7 + $0x310] sm:$0xff] }
 0x17c   : > { %v1558_v13 = vpop.f32.mrf.mxu1  ;;  %2664 = vmatpush.msra.mxu1 %v2521_v57  ;;  %1652 = vmatpush.msra.mxu2 %v911_v4 }
 0x17d   : > { %v4929_v56 = vadd.f32 %v1555_v61, %v1443_v51  ;;  %v4943_v51 = vsel %vm664_vm1, %v725_v30, %v726_v7  ;;  %v4952_v30 = vld [vmem:[%s4314_s28 + $0xb8] sm:$0xff] }
 0x17e   : > { %v1219_v0 = vpop.f32.mrf.mxu2  ;;  %v1332_v40 = vpop.f32.mrf.mxu3 }
 0x17f   : > { %v1220_v44 = vadd.f32 %v1219_v0, %v1107_v36  ;;  %v1448_v6 = vpop.f32.mrf.mxu0  ;;  %1605 = vmatmul.f32.gmra.mxu1 %v4926_v45 }
 0x181   : > { %v1333_v61 = vadd.f32 %v1332_v40, %v1220_v44 }
 0x182   : > { %1495 = vmatmul.f32.gmra.mxu0 %v4933_v42 }
 0x183   : > { %1269 = vmatmul.f32.gmra.mxu2 %v4910_v49  ;;  %1382 = vmatmul.f32.gmra.mxu3 %v4463_v58  ;;  %v1446_v14 = vadd.f32 %v1445_v9, %v1333_v61  ;;  %v1000_v9 = vadd.f32 %v4595_v21, %v4690_v63  ;;  %v943_v63 = vld [vmem:[#allocation7 + $0x410] sm:$0xff] }
 0x184   : > { %v1561_v57 = vpop.f32.mrf.mxu1  ;;  %1878 = vmatpush.msra.mxu0 %v943_v63 }
 0x185   : > { %v4946_v36 = vadd.f32 %v1558_v13, %v1446_v14  ;;  %v4959_v13 = vsel %vm664_vm1, %v726_v7, %v4586_v19  ;;  %v1113_v1 = vadd.f32 %v4698_v26, %v1000_v9  ;;  %v1003_v26 = vadd.f32 %v4595_v21, %v4705_v15  ;;  %v2520_v9 = vld [vmem:[#allocation9 + $0x48] sm:$0xff] }
 0x186   : > { %v1222_v52 = vpop.f32.mrf.mxu2  ;;  %v1335_v0 = vpop.f32.mrf.mxu3  ;;  %2665 = vmatpush.msra.mxu1 %v2520_v9  ;;  %v926_v15 = vld [vmem:[#allocation7 + $0x388] sm:$0xff] }
 0x187   : > { %v1223_v40 = vadd.f32 %v1222_v52, %v1110_v60  ;;  %v1451_v44 = vpop.f32.mrf.mxu0  ;;  %1608 = vmatmul.f32.gmra.mxu1 %v4943_v51  ;;  %1766 = vmatpush.msra.mxu3 %v926_v15 }
 0x189   : > { %v1336_v61 = vadd.f32 %v1335_v0, %v1223_v40  ;;  %v4966_v0 = vld [vmem:[%s4314_s28 + $0xc0] sm:$0xff]  ;;  %v4970_v40 = vld [vmem:[%s4314_s28 + $0xc8] sm:$0xff] }
 0x18a   : > { %1498 = vmatmul.f32.gmra.mxu0 %v4952_v30  ;;  %6733 = vst [vmem:[#allocation71_spill] sm:$0xff] %v4966_v0  ;;  %v731_v7 = vrot.slane %v4970_v40, 1 }
 0x18b   : > { %1272 = vmatmul.f32.gmra.mxu2 %v4926_v45  ;;  %1385 = vmatmul.f32.gmra.mxu3 %v4480_v11  ;;  %v1449_v46 = vadd.f32 %v1448_v6, %v1336_v61  ;;  %v730_v6 = vrot.slane %v4966_v0, 1 }
 0x18c   : > { %v1564_v61 = vpop.f32.mrf.mxu1 }
 0x18d   : > { %v4962_v14 = vadd.f32 %v1561_v57, %v1449_v46  ;;  %v4979_v63 = vsel %vm664_vm1, %v730_v6, %v731_v7  ;;  %v4994_v6 = vsel %vm664_vm1, %v731_v7, %v4586_v19  ;;  %v1009_v7 = vadd.f32 %v4595_v21, %v4736_v5  ;;  %v925_v5 = vld [vmem:[#allocation7 + $0x380] sm:$0xff] }
 0x18e   : > { %v1225_v4 = vpop.f32.mrf.mxu2  ;;  %v1338_v60 = vpop.f32.mrf.mxu3  ;;  %1767 = vmatpush.msra.mxu3 %v925_v5 }
 0x18f   : > { %6732 = vst [vmem:[#allocation70_spill] sm:$0xff] %v4962_v14  ;;  %v1226_v24 = vadd.f32 %v1225_v4, %v1113_v1  ;;  %v1454_v52 = vpop.f32.mrf.mxu0  ;;  %1611 = vmatmul.f32.gmra.mxu1 %v4959_v13  ;;  %v910_v1 = vld [vmem:[#allocation7 + $0x308] sm:$0xff]  ;;  %v1116_v4 = vadd.f32 %v4715_v10, %v1003_v26 }
 0x190   : > { %1653 = vmatpush.msra.mxu2 %v910_v1 }
 0x191   : > { %v1339_v57 = vadd.f32 %v1338_v60, %v1226_v24 }
 0x192   : > { %1501 = vmatmul.f32.gmra.mxu0 %v4966_v0 }
 0x193   : > { %1275 = vmatmul.f32.gmra.mxu2 %v4943_v51  ;;  %1388 = vmatmul.f32.gmra.mxu3 %v4497_v29  ;;  %v1452_v46 = vadd.f32 %v1451_v44, %v1339_v57  ;;  %v1006_v44 = vadd.f32 %v4595_v21, %v4721_v17 }
 0x195   : > { %v4982_v14 = vadd.f32 %v1564_v61, %v1452_v46  ;;  %v1119_v26 = vadd.f32 %v4729_v48, %v1006_v44  ;;  %v942_v61 = vld [vmem:[#allocation7 + $0x408] sm:$0xff] }
 0x196   : > { %v1228_v60 = vpop.f32.mrf.mxu2  ;;  %v1341_v24 = vpop.f32.mrf.mxu3  ;;  %1879 = vmatpush.msra.mxu0 %v942_v61  ;;  %v6734_v48 = vld [vmem:[#allocation27_spill] sm:$0xff] }
 0x197   : > { %v1229_v0 = vadd.f32 %v1228_v60, %v1116_v4  ;;  %v1457_v9 = vpop.f32.mrf.mxu0  ;;  %1614 = vmatmul.f32.gmra.mxu1 %v4979_v63  ;;  %v4999_v4 = vld [vmem:[%s4314_s28 + $0xd0] sm:$0xff] }
 0x198   : > { %v735_v15 = vrot.slane %v4999_v4, 1 }
 0x199   : > { %v1342_v57 = vadd.f32 %v1341_v24, %v1229_v0  ;;  %v2519_v24 = vld [vmem:[#allocation9 + $0x40] sm:$0xff] }
 0x19a   : > { %1504 = vmatmul.f32.gmra.mxu0 %v4970_v40  ;;  %2666 = vmatpush.msra.mxu1 %v2519_v24  ;;  %v1012_v24 = vadd.f32 %v4595_v21, %v4752_v38 }
 0x19b   : > { %1278 = vmatmul.f32.gmra.mxu2 %v4959_v13  ;;  %1391 = vmatmul.f32.gmra.mxu3 %v4511_v55  ;;  %v4990_v10 = vadd.f32 %v1454_v52, %v1342_v57  ;;  %v736_v52 = vrot.slane %v4533_v34, 1  ;;  %v909_v57 = vld [vmem:[#allocation7 + $0x300] sm:$0xff]  ;;  %v1122_v34 = vadd.f32 %v4746_v53, %v1009_v7  ;;  %v6737_v53 = vld [vmem:[#allocation29_spill] sm:$0xff] }
 0x19c   : > { %1654 = vmatpush.msra.mxu2 %v909_v57  ;;  %v1125_v57 = vadd.f32 %v4760_v12, %v1012_v24  ;;  %v2518_v12 = vld [vmem:[#allocation9 + $0x38] sm:$0xff]  ;;  %v6741_v24 = vld [vmem:[#allocation31_spill] sm:$0xff] }
 0x19d   : > { %v5027_v7 = vsel %vm664_vm1, %v736_v52, %v4586_v19  ;;  %2667 = vmatpush.msra.mxu1 %v2518_v12  ;;  %v1018_v12 = vadd.f32 %v4595_v21, %v4783_v3 }
 0x19e   : > { %v1231_v46 = vpop.f32.mrf.mxu2  ;;  %v1344_v1 = vpop.f32.mrf.mxu3 }
 0x19f   : > { %v1232_v17 = vadd.f32 %v1231_v46, %v1119_v26  ;;  %v1460_v0 = vpop.f32.mrf.mxu0  ;;  %1617 = vmatmul.f32.gmra.mxu1 %v4994_v6  ;;  %v5011_v26 = vsel %vm664_vm1, %v735_v15, %v736_v52  ;;  %v1015_v52 = vadd.f32 %v4595_v21, %v4767_v8  ;;  %v1131_v3 = vadd.f32 %v4791_v23, %v1018_v12  ;;  %v2517_v12 = vld [vmem:[#allocation9 + $0x30] sm:$0xff] }
 0x1a0   : > { %2668 = vmatpush.msra.mxu1 %v2517_v12 }
 0x1a1   : > { %v1345_v60 = vadd.f32 %v1344_v1, %v1232_v17 }
 0x1a2   : > { %1507 = vmatmul.f32.gmra.mxu0 %v4999_v4 }
 0x1a3   : > { %1281 = vmatmul.f32.gmra.mxu2 %v4979_v63  ;;  %1394 = vmatmul.f32.gmra.mxu3 %v6734_v48  ;;  %v5008_v44 = vadd.f32 %v1457_v9, %v1345_v60  ;;  %v5018_v60 = vld [vmem:[%s4314_s28 + $0xd8] sm:$0xff] }
 0x1a4   : > { %6736 = vst [vmem:[#allocation72_spill] sm:$0xff] %v5018_v60 }
 0x1a5   : > { %6735 = vst [vmem:[#allocation27_spill] sm:$0xff] %v5008_v44 }
 0x1a6   : > { %v1234_v61 = vpop.f32.mrf.mxu2  ;;  %v1347_v46 = vpop.f32.mrf.mxu3 }
 0x1a7   : > { %v1235_v1 = vadd.f32 %v1234_v61, %v1122_v34  ;;  %v1463_v17 = vpop.f32.mrf.mxu0  ;;  %1620 = vmatmul.f32.gmra.mxu1 %v5011_v26  ;;  %v941_v34 = vld [vmem:[#allocation7 + $0x400] sm:$0xff] }
 0x1a8   : > { %1880 = vmatpush.msra.mxu0 %v941_v34 }
 0x1a9   : > { %v1348_v9 = vadd.f32 %v1347_v46, %v1235_v1  ;;  %v5032_v1 = vld [vmem:[%s4314_s28 + $0xe0] sm:$0xff] }
 0x1aa   : > { %1510 = vmatmul.f32.gmra.mxu0 %v5018_v60  ;;  %6739 = vst [vmem:[#allocation74_spill] sm:$0xff] %v5032_v1  ;;  %v740_v44 = vrot.slane %v5032_v1, 1  ;;  %v5051_v60 = vld [vmem:[%s4314_s28 + $0xf0] sm:$0xff] }
 0x1ab   : > { %1284 = vmatmul.f32.gmra.mxu2 %v4994_v6  ;;  %1397 = vmatmul.f32.gmra.mxu3 %v6737_v53  ;;  %v5023_v15 = vadd.f32 %v1460_v0, %v1348_v9  ;;  %v6740_v0 = vld [vmem:[#allocation32_spill] sm:$0xff]  ;;  %6743 = vst [vmem:[#allocation75_spill] sm:$0xff] %v5051_v60 }
 0x1ac   : > { %v741_v9 = vrot.slane %v6740_v0, 1 }
 0x1ad   : > { %6738 = vst [vmem:[#allocation73_spill] sm:$0xff] %v5023_v15 }
 0x1ae   : > { %v1237_v38 = vpop.f32.mrf.mxu2  ;;  %v1350_v5 = vpop.f32.mrf.mxu3  ;;  %v5044_v34 = vsel %vm664_vm1, %v740_v44, %v741_v9 }
 0x1af   : > { %v1238_v61 = vadd.f32 %v1237_v38, %v1125_v57  ;;  %v1466_v46 = vpop.f32.mrf.mxu0  ;;  %1623 = vmatmul.f32.gmra.mxu1 %v5027_v7  ;;  %v1128_v38 = vadd.f32 %v4777_v22, %v1015_v52  ;;  %v6745_v22 = vld [vmem:[#allocation34_spill] sm:$0xff]  ;;  %v5064_v52 = vsel %vm664_vm1, %v741_v9, %v4586_v19  ;;  %v1021_v9 = vadd.f32 %v4595_v21, %v4798_v20 }
 0x1b1   : > { %v1351_v15 = vadd.f32 %v1350_v5, %v1238_v61 }
 0x1b2   : > { %1513 = vmatmul.f32.gmra.mxu0 %v5032_v1 }
 0x1b3   : > { %1287 = vmatmul.f32.gmra.mxu2 %v5011_v26  ;;  %1400 = vmatmul.f32.gmra.mxu3 %v6741_v24  ;;  %v5041_v57 = vadd.f32 %v1463_v17, %v1351_v15  ;;  %v5054_v17 = vld [vmem:[%s4314_s28 + $0xe8] sm:$0xff]  ;;  %v781_v15 = vrot.slane %v5051_v60, 7  ;;  %v1134_v24 = vadd.f32 %v4811_v32, %v1021_v9 }
 0x1b4   : > { %6744 = vst [vmem:[#allocation76_spill] sm:$0xff] %v5054_v17 }
 0x1b5   : > { %6742 = vst [vmem:[#allocation32_spill] sm:$0xff] %v5041_v57  ;;  %v5069_v57 = vld [vmem:[%s4314_s28 + $0xf8] sm:$0xff] }
 0x1b6   : > { %v1240_v0 = vpop.f32.mrf.mxu2  ;;  %v1353_v8 = vpop.f32.mrf.mxu3  ;;  %6747 = vst [vmem:[#allocation78_spill] sm:$0xff] %v5069_v57 }
 0x1b7   : > { %v1241_v5 = vadd.f32 %v1240_v0, %v1128_v38  ;;  %v1469_v61 = vpop.f32.mrf.mxu0  ;;  %1626 = vmatmul.f32.gmra.mxu1 %v5044_v34 }
 0x1b9   : > { %v1354_v1 = vadd.f32 %v1353_v8, %v1241_v5 }
 0x1ba   : > { %1516 = vmatmul.f32.gmra.mxu0 %v5054_v17  ;;  %v6748_v17 = vld [vmem:[#allocation14_spill] sm:$0xff] }
 0x1bb   : > { %1290 = vmatmul.f32.gmra.mxu2 %v5027_v7  ;;  %1403 = vmatmul.f32.gmra.mxu3 %v6745_v22  ;;  %v5059_v44 = vadd.f32 %v1466_v46, %v1354_v1  ;;  %v5073_v46 = vsel %vm535_vm0, %v6748_v17, %v781_v15  ;;  %v788_v1 = vrot.slane %v5051_v60, 1 }
 0x1bc   : > { %6749 = vst [vmem:[#allocation79_spill] sm:$0xff] %v5073_v46 }
 0x1bd   : > { %6746 = vst [vmem:[#allocation77_spill] sm:$0xff] %v5059_v44  ;;  %v789_v44 = vrot.slane %v5069_v57, 1 }
 0x1be   : > { %v1243_v38 = vpop.f32.mrf.mxu2  ;;  %v1356_v0 = vpop.f32.mrf.mxu3 }
 0x1bf   : > { %v1244_v8 = vadd.f32 %v1243_v38, %v1131_v3  ;;  %v1472_v5 = vpop.f32.mrf.mxu0  ;;  %1629 = vmatmul.f32.gmra.mxu1 %v5064_v52  ;;  %v783_v38 = vrot.slane %v5069_v57, 7  ;;  %v5086_v22 = vsel %vm664_vm1, %v788_v1, %v789_v44 }
 0x1c0   : > { %6751 = vst [vmem:[#allocation81_spill] sm:$0xff] %v5086_v22 }
 0x1c1   : > { %v1357_v23 = vadd.f32 %v1356_v0, %v1244_v8  ;;  %v5091_v8 = vsel %vm535_vm0, %v781_v15, %v783_v38 }
 0x1c2   : > { %1519 = vmatmul.f32.gmra.mxu0 %v5051_v60  ;;  %6752 = vst [vmem:[#allocation82_spill] sm:$0xff] %v5091_v8 }
 0x1c3   : > { %1293 = vmatmul.f32.gmra.mxu2 %v5044_v34  ;;  %1406 = vmatmul.f32.gmra.mxu3 %v5073_v46  ;;  %v5082_v3 = vadd.f32 %v1469_v61, %v1357_v23  ;;  %v3989_v61 = vld [vmem:[%s6510_s2] ss:$0 sm:$0xff]  ;;  %v6753_v23 = vld [vmem:[#allocation63_spill] sm:$0xff] }
 0x1c4   : > { %v1024_v12 = vadd.f32 %v3989_v61, %v6753_v23  ;;  %v6757_v23 = vld [vmem:[#allocation38_spill] sm:$0xff] }
 0x1c5   : > { %6750 = vst [vmem:[#allocation80_spill] sm:$0xff] %v5082_v3 }
 0x1c6   : > { %v1246_v53 = vpop.f32.mrf.mxu2  ;;  %v1359_v21 = vpop.f32.mrf.mxu3 }
 0x1c7   : > { %v1247_v20 = vadd.f32 %v1246_v53, %v1134_v24  ;;  %v1475_v0 = vpop.f32.mrf.mxu0  ;;  %1632 = vmatmul.f32.gmra.mxu1 %v5086_v22  ;;  %v5104_v53 = vsel %vm664_vm1, %v789_v44, %v4586_v19  ;;  %v6756_v24 = vld [vmem:[#allocation66_spill] sm:$0xff] }
 0x1c8   : > { %6755 = vst [vmem:[#allocation83_spill] sm:$0xff] %v5104_v53  ;;  %v1137_v15 = vadd.f32 %v6756_v24, %v1024_v12  ;;  %v6760_v24 = vld [vmem:[#allocation36_spill] sm:$0xff] }
 0x1c9   : > { %v1360_v3 = vadd.f32 %v1359_v21, %v1247_v20  ;;  %v2516_v20 = vld [vmem:[#allocation9 + $0x28] sm:$0xff] }
 0x1ca   : > { %1522 = vmatmul.f32.gmra.mxu0 %v5069_v57  ;;  %2669 = vmatpush.msra.mxu1 %v2516_v20  ;;  %v6761_v57 = vld [vmem:[#allocation40_spill] sm:$0xff] }
 0x1cb   : > { %1296 = vmatmul.f32.gmra.mxu2 %v5064_v52  ;;  %1409 = vmatmul.f32.gmra.mxu3 %v5091_v8  ;;  %v5100_v32 = vadd.f32 %v1472_v5, %v1360_v3  ;;  %v6758_v5 = vld [vmem:[#allocation18_spill] sm:$0xff]  ;;  %v3990_v3 = vld [vmem:[%s4314_s28 + $0x10] sm:$0xff] }
 0x1cd   : > { %6754 = vst [vmem:[#allocation63_spill] sm:$0xff] %v5100_v32 }
 0x1ce   : > { %v1249_v1 = vpop.f32.mrf.mxu2  ;;  %v1362_v9 = vpop.f32.mrf.mxu3 }
 0x1cf   : > { %v1250_v38 = vadd.f32 %v1249_v1, %v1137_v15  ;;  %v1478_v61 = vpop.f32.mrf.mxu0  ;;  %1635 = vmatmul.f32.gmra.mxu1 %v5104_v53 }
 0x1d1   : > { %v1363_v21 = vadd.f32 %v1362_v9, %v1250_v38  ;;  %v6762_v9 = vld [vmem:[#allocation19_spill] sm:$0xff]  ;;  %v3991_v38 = vld [vmem:[%s4314_s28 + $0x18] sm:$0xff] }
 0x1d2   : > { %1881 = vmatmul.f32.vlgmr.msra.gmra.mxu0 %v6757_v23  ;;  %v5119_v23 = vpop.f32.mrf.mxu1 }
 0x1d3   : > { %1655 = vmatmul.f32.vlgmr.msra.gmra.mxu2 %v6758_v5  ;;  %1768 = vmatmul.f32.vlgmr.msra.gmra.mxu3 %v3990_v3  ;;  %v5111_v44 = vadd.f32 %v1475_v0, %v1363_v21  ;;  %v6764_v21 = vld [vmem:[#allocation37_spill] sm:$0xff] }
 0x1d5   : > { %6759 = vst [vmem:[#allocation66_spill] sm:$0xff] %v5111_v44 }
 0x1d6   : > { %v1252_v32 = vpop.f32.mrf.mxu2  ;;  %v1365_v12 = vpop.f32.mrf.mxu3 }
 0x1d7   : > { %v1253_v19 = vadd.f32 %v1252_v32, %v6760_v24  ;;  %v1481_v15 = vpop.f32.mrf.mxu0  ;;  %v2515_v32 = vld [vmem:[#allocation9 + $0x20] sm:$0xff] }
 0x1d8   : > { %2670 = vmatpush.msra.mxu1 %v2515_v32  ;;  %v3993_v32 = vld [vmem:[%s4314_s28 + $0x28] sm:$0xff] }
 0x1d9   : > { %v1366_v1 = vadd.f32 %v1365_v12, %v1253_v19  ;;  %v6765_v19 = vld [vmem:[#allocation42_spill] sm:$0xff] }
 0x1da   : > { %1884 = vmatmul.f32.gmra.mxu0 %v6761_v57  ;;  %v6766_v57 = vld [vmem:[#allocation20_spill] sm:$0xff]  ;;  %v3992_v12 = vld [vmem:[%s4314_s28 + $0x20] sm:$0xff] }
 0x1db   : > { %1658 = vmatmul.f32.gmra.mxu2 %v6762_v9  ;;  %1771 = vmatmul.f32.gmra.mxu3 %v3991_v38  ;;  %v5117_v20 = vadd.f32 %v1478_v61, %v1366_v1  ;;  %v5127_v9 = vpop.f32.mrf.mxu1  ;;  %v6768_v38 = vld [vmem:[#allocation39_spill] sm:$0xff] }
 0x1dd   : > { %6763 = vst [vmem:[#allocation38_spill] sm:$0xff] %v5117_v20 }
 0x1de   : > { %v1255_v5 = vpop.f32.mrf.mxu2  ;;  %v1368_v0 = vpop.f32.mrf.mxu3 }
 0x1df   : > { %v1256_v3 = vadd.f32 %v1255_v5, %v6764_v21  ;;  %v1484_v44 = vpop.f32.mrf.mxu0 }
 0x1e1   : > { %v1369_v8 = vadd.f32 %v1368_v0, %v1256_v3  ;;  %v6769_v0 = vld [vmem:[#allocation44_spill] sm:$0xff]  ;;  %v6770_v3 = vld [vmem:[#allocation21_spill] sm:$0xff] }
 0x1e2   : > { %1887 = vmatmul.f32.gmra.mxu0 %v6765_v19 }
 0x1e3   : > { %1661 = vmatmul.f32.gmra.mxu2 %v6766_v57  ;;  %1774 = vmatmul.f32.gmra.mxu3 %v3992_v12  ;;  %v5125_v24 = vadd.f32 %v1481_v15, %v1369_v8  ;;  %v6772_v15 = vld [vmem:[#allocation41_spill] sm:$0xff]  ;;  %v5136_v53 = vpop.f32.mrf.mxu1 }
 0x1e5   : > { %6767 = vst [vmem:[#allocation18_spill] sm:$0xff] %v5125_v24 }
 0x1e6   : > { %v1258_v61 = vpop.f32.mrf.mxu2  ;;  %v1371_v1 = vpop.f32.mrf.mxu3 }
 0x1e7   : > { %v1259_v20 = vadd.f32 %v1258_v61, %v6768_v38  ;;  %v1487_v5 = vpop.f32.mrf.mxu0  ;;  %v2514_v61 = vld [vmem:[#allocation9 + $0x18] sm:$0xff]  ;;  %v3994_v38 = vld [vmem:[%s4314_s28 + $0x30] sm:$0xff] }
 0x1e8   : > { %2671 = vmatpush.msra.mxu1 %v2514_v61  ;;  %v3995_v61 = vld [vmem:[%s4314_s28 + $0x38] sm:$0xff] }
 0x1e9   : > { %v1372_v21 = vadd.f32 %v1371_v1, %v1259_v20  ;;  %v6773_v20 = vld [vmem:[#allocation46_spill] sm:$0xff] }
 0x1ea   : > { %1890 = vmatmul.f32.gmra.mxu0 %v6769_v0  ;;  %v6774_v1 = vld [vmem:[#allocation22_spill] sm:$0xff] }
 0x1eb   : > { %1664 = vmatmul.f32.gmra.mxu2 %v6770_v3  ;;  %1777 = vmatmul.f32.gmra.mxu3 %v3993_v32  ;;  %v5133_v19 = vadd.f32 %v1484_v44, %v1372_v21  ;;  %v6776_v3 = vld [vmem:[#allocation43_spill] sm:$0xff] }
 0x1ed   : > { %6771 = vst [vmem:[#allocation36_spill] sm:$0xff] %v5133_v19  ;;  %v6777_v19 = vld [vmem:[#allocation48_spill] sm:$0xff] }
 0x1ee   : > { %v1261_v57 = vpop.f32.mrf.mxu2  ;;  %v1374_v8 = vpop.f32.mrf.mxu3 }
 0x1ef   : > { %v1262_v12 = vadd.f32 %v1261_v57, %v6772_v15  ;;  %v1490_v24 = vpop.f32.mrf.mxu0 }
 0x1f1   : > { %v1375_v60 = vadd.f32 %v1374_v8, %v1262_v12  ;;  %v5145_v8 = vpop.f32.mrf.mxu1  ;;  %v6778_v12 = vld [vmem:[#allocation23_spill] sm:$0xff] }
 0x1f2   : > { %1893 = vmatmul.f32.gmra.mxu0 %v6773_v20 }
 0x1f3   : > { %1667 = vmatmul.f32.gmra.mxu2 %v6774_v1  ;;  %1780 = vmatmul.f32.gmra.mxu3 %v3994_v38  ;;  %v5141_v0 = vadd.f32 %v1487_v5, %v1375_v60  ;;  %v6780_v5 = vld [vmem:[#allocation45_spill] sm:$0xff] }
 0x1f5   : > { %6775 = vst [vmem:[#allocation40_spill] sm:$0xff] %v5141_v0 }
 0x1f6   : > { %v1264_v44 = vpop.f32.mrf.mxu2  ;;  %v1377_v21 = vpop.f32.mrf.mxu3 }
 0x1f7   : > { %v1265_v32 = vadd.f32 %v1264_v44, %v6776_v3  ;;  %v1493_v57 = vpop.f32.mrf.mxu0  ;;  %v2513_v44 = vld [vmem:[#allocation9 + $0x10] sm:$0xff]  ;;  %v3996_v3 = vld [vmem:[%s4314_s28 + $0x40] sm:$0xff] }
 0x1f8   : > { %2672 = vmatpush.msra.mxu1 %v2513_v44  ;;  %v3997_v44 = vld [vmem:[%s4314_s28 + $0x48] sm:$0xff] }
 0x1f9   : > { %v1378_v15 = vadd.f32 %v1377_v21, %v1265_v32  ;;  %v6781_v21 = vld [vmem:[#allocation50_spill] sm:$0xff] }
 0x1fa   : > { %1896 = vmatmul.f32.gmra.mxu0 %v6777_v19  ;;  %v6782_v19 = vld [vmem:[#allocation24_spill] sm:$0xff] }
 0x1fb   : > { %1670 = vmatmul.f32.gmra.mxu2 %v6778_v12  ;;  %1783 = vmatmul.f32.gmra.mxu3 %v3995_v61  ;;  %v5149_v20 = vadd.f32 %v1490_v24, %v1378_v15  ;;  %v5157_v12 = vpop.f32.mrf.mxu1  ;;  %v6785_v61 = vld [vmem:[#allocation47_spill] sm:$0xff] }
 0x1fc   : > { %6784 = vst [vmem:[#allocation42_spill] sm:$0xff] %v5157_v12 }
 0x1fd   : > { %6779 = vst [vmem:[#allocation19_spill] sm:$0xff] %v5149_v20 }
 0x1fe   : > { %v1267_v1 = vpop.f32.mrf.mxu2  ;;  %v1380_v60 = vpop.f32.mrf.mxu3 }
 0x1ff   : > { %v1268_v38 = vadd.f32 %v1267_v1, %v6780_v5  ;;  %v1496_v0 = vpop.f32.mrf.mxu0 }
 0x201   : > { %v1381_v46 = vadd.f32 %v1380_v60, %v1268_v38  ;;  %v6786_v60 = vld [vmem:[#allocation52_spill] sm:$0xff]  ;;  %v6787_v38 = vld [vmem:[#allocation25_spill] sm:$0xff] }
 0x202   : > { %1899 = vmatmul.f32.gmra.mxu0 %v6781_v21 }
 0x203   : > { %1673 = vmatmul.f32.gmra.mxu2 %v6782_v19  ;;  %1786 = vmatmul.f32.gmra.mxu3 %v3996_v3  ;;  %v5155_v32 = vadd.f32 %v1493_v57, %v1381_v46  ;;  %v5165_v57 = vpop.f32.mrf.mxu1  ;;  %v6790_v3 = vld [vmem:[#allocation49_spill] sm:$0xff] }
 0x204   : > { %6789 = vst [vmem:[#allocation39_spill] sm:$0xff] %v5165_v57 }
 0x205   : > { %6783 = vst [vmem:[#allocation37_spill] sm:$0xff] %v5155_v32 }
 0x206   : > { %v1270_v24 = vpop.f32.mrf.mxu2  ;;  %v1383_v15 = vpop.f32.mrf.mxu3 }
 0x207   : > { %v1271_v20 = vadd.f32 %v1270_v24, %v6785_v61  ;;  %v1499_v1 = vpop.f32.mrf.mxu0  ;;  %v2512_v24 = vld [vmem:[#allocation9 + $0x8] sm:$0xff]  ;;  %v3998_v61 = vld [vmem:[%s4314_s28 + $0x50] sm:$0xff] }
 0x208   : > { %2673 = vmatpush.msra.mxu1 %v2512_v24 }
 0x209   : > { %v1384_v5 = vadd.f32 %v1383_v15, %v1271_v20  ;;  %v6791_v20 = vld [vmem:[#allocation54_spill] sm:$0xff] }
 0x20a   : > { %1902 = vmatmul.f32.gmra.mxu0 %v6786_v60  ;;  %v6792_v15 = vld [vmem:[#allocation26_spill] sm:$0xff] }
 0x20b   : > { %1676 = vmatmul.f32.gmra.mxu2 %v6787_v38  ;;  %1789 = vmatmul.f32.gmra.mxu3 %v3997_v44  ;;  %v5163_v21 = vadd.f32 %v1496_v0, %v1384_v5  ;;  %v6794_v38 = vld [vmem:[#allocation51_spill] sm:$0xff]  ;;  %v5174_v57 = vpop.f32.mrf.mxu1 }
 0x20d   : > { %6788 = vst [vmem:[#allocation20_spill] sm:$0xff] %v5163_v21 }
 0x20e   : > { %v1273_v19 = vpop.f32.mrf.mxu2  ;;  %v1386_v46 = vpop.f32.mrf.mxu3 }
 0x20f   : > { %v1274_v32 = vadd.f32 %v1273_v19, %v6790_v3  ;;  %v1502_v12 = vpop.f32.mrf.mxu0  ;;  %v3999_v3 = vld [vmem:[%s4314_s28 + $0x58] sm:$0xff] }
 0x211   : > { %v1387_v22 = vadd.f32 %v1386_v46, %v1274_v32  ;;  %v6795_v32 = vld [vmem:[#allocation56_spill] sm:$0xff] }
 0x212   : > { %1905 = vmatmul.f32.gmra.mxu0 %v6791_v20  ;;  %v6796_v46 = vld [vmem:[#allocation28_spill] sm:$0xff] }
 0x213   : > { %1679 = vmatmul.f32.gmra.mxu2 %v6792_v15  ;;  %1792 = vmatmul.f32.gmra.mxu3 %v3998_v61  ;;  %v5171_v60 = vadd.f32 %v1499_v1, %v1387_v22  ;;  %v6798_v1 = vld [vmem:[#allocation53_spill] sm:$0xff] }
 0x215   : > { %6793 = vst [vmem:[#allocation44_spill] sm:$0xff] %v5171_v60 }
 0x216   : > { %v1276_v0 = vpop.f32.mrf.mxu2  ;;  %v1389_v5 = vpop.f32.mrf.mxu3 }
 0x217   : > { %v1277_v44 = vadd.f32 %v1276_v0, %v6794_v38  ;;  %v1505_v21 = vpop.f32.mrf.mxu0  ;;  %v2511_v0 = vld [vmem:[#allocation9] sm:$0xff] }
 0x218   : > { %v6799_v38 = vld [vmem:[#allocation58_spill] sm:$0xff]  ;;  %2674 = vmatpush.msra.mxu1 %v2511_v0  ;;  %v6804_v0 = vld [vmem:[#allocation60_spill] sm:$0xff] }
 0x219   : > { %v1390_v19 = vadd.f32 %v1389_v5, %v1277_v44  ;;  %v5183_v5 = vpop.f32.mrf.mxu1  ;;  %v6801_v44 = vld [vmem:[#allocation30_spill] sm:$0xff]  ;;  %2675 = vmatmul.f32.vlgmr.msra.gmra.mxu1 %v6748_v17 }
 0x21a   : > { %1908 = vmatmul.f32.gmra.mxu0 %v6795_v32  ;;  %6800 = vst [vmem:[#allocation41_spill] sm:$0xff] %v5183_v5  ;;  %v4000_v32 = vld [vmem:[%s4314_s28 + $0x60] sm:$0xff]  ;;  %v2574_v5 = vld [vmem:[#allocation9 + $0x1f8] sm:$0xff] }
 0x21b   : > { %1682 = vmatmul.f32.gmra.mxu2 %v6796_v46  ;;  %1795 = vmatmul.f32.gmra.mxu3 %v3999_v3  ;;  %v5179_v24 = vadd.f32 %v1502_v12, %v1390_v19  ;;  %v6803_v3 = vld [vmem:[#allocation55_spill] sm:$0xff] }
 0x21c   : > { %2998 = vmatpush.msrb.mxu0 %v2574_v5 }
 0x21d   : > { %6797 = vst [vmem:[#allocation21_spill] sm:$0xff] %v5179_v24  ;;  %v6805_v24 = vld [vmem:[#allocation33_spill] sm:$0xff] }
 0x21e   : > { %v1279_v20 = vpop.f32.mrf.mxu2  ;;  %v1392_v22 = vpop.f32.mrf.mxu3 }
 0x21f   : > { %v1280_v15 = vadd.f32 %v1279_v20, %v6798_v1  ;;  %v1508_v61 = vpop.f32.mrf.mxu0 }
 0x221   : > { %v1393_v60 = vadd.f32 %v1392_v22, %v1280_v15  ;;  %v2542_v15 = vld [vmem:[#allocation9 + $0xf8] sm:$0xff]  ;;  %2678 = vmatmul.f32.gmra.mxu1 %v6748_v17 }
 0x222   : > { %1911 = vmatmul.f32.gmra.mxu0 %v6799_v38  ;;  %v2558_v38 = vld [vmem:[#allocation9 + $0x178] sm:$0xff]  ;;  %2772 = vmatpush.msrb.mxu2 %v2542_v15 }
 0x223   : > { %1685 = vmatmul.f32.gmra.mxu2 %v6801_v44  ;;  %1798 = vmatmul.f32.gmra.mxu3 %v4000_v32  ;;  %v5187_v46 = vadd.f32 %v1505_v21, %v1393_v60  ;;  %v4001_v44 = vld [vmem:[%s4314_s28 + $0x68] sm:$0xff]  ;;  %v5197_v21 = vpop.f32.mrf.mxu1 }
 0x224   : > { %2885 = vmatpush.msrb.mxu3 %v2558_v38 }
 0x225   : > { %6802 = vst [vmem:[#allocation46_spill] sm:$0xff] %v5187_v46 }
 0x226   : > { %v1282_v12 = vpop.f32.mrf.mxu2  ;;  %v1395_v19 = vpop.f32.mrf.mxu3 }
 0x227   : > { %v1283_v20 = vadd.f32 %v1282_v12, %v6803_v3  ;;  %v1511_v22 = vpop.f32.mrf.mxu0  ;;  %v6807_v3 = vld [vmem:[#allocation57_spill] sm:$0xff] }
 0x229   : > { %v1396_v1 = vadd.f32 %v1395_v19, %v1283_v20 }
 0x22a   : > { %1914 = vmatmul.f32.gmra.mxu0 %v6804_v0  ;;  %v2590_v0 = vld [vmem:[#allocation9 + $0x278] sm:$0xff] }
 0x22b   : > { %1688 = vmatmul.f32.gmra.mxu2 %v6805_v24  ;;  %1801 = vmatmul.f32.gmra.mxu3 %v4001_v44  ;;  %v5194_v32 = vadd.f32 %v1508_v61, %v1396_v1  ;;  %v6808_v24 = vld [vmem:[#allocation15_spill] sm:$0xff]  ;;  %v6809_v61 = vld [vmem:[#allocation61_spill] sm:$0xff]  ;;  %v5205_v44 = vpop.f32.mrf.mxu1 }
 0x22c   : > { %3111 = vmatpush.msrb.mxu1 %v2590_v0  ;;  %6811 = vst [vmem:[#allocation48_spill] sm:$0xff] %v5205_v44 }
 0x22d   : > { %6806 = vst [vmem:[#allocation22_spill] sm:$0xff] %v5194_v32  ;;  %v6812_v32 = vld [vmem:[#allocation59_spill] sm:$0xff] }
 0x22e   : > { %v1285_v60 = vpop.f32.mrf.mxu2  ;;  %v1398_v12 = vpop.f32.mrf.mxu3 }
 0x22f   : > { %v1286_v19 = vadd.f32 %v1285_v60, %v6807_v3  ;;  %v1514_v20 = vpop.f32.mrf.mxu0 }
 0x231   : > { %v1399_v46 = vadd.f32 %v1398_v12, %v1286_v19  ;;  %v6813_v19 = vld [vmem:[#allocation16_spill] sm:$0xff] }
 0x232   : > { %1917 = vmatmul.f32.gmra.mxu0 %v4814_v35  ;;  %v6814_v35 = vld [vmem:[#allocation65_spill] sm:$0xff] }
 0x233   : > { %1691 = vmatmul.f32.gmra.mxu2 %v6808_v24  ;;  %1804 = vmatmul.f32.gmra.mxu3 %v6809_v61  ;;  %v5203_v1 = vadd.f32 %v1511_v22, %v1399_v46  ;;  %v2541_v24 = vld [vmem:[#allocation9 + $0xf0] sm:$0xff]  ;;  %v6815_v61 = vld [vmem:[#allocation62_spill] sm:$0xff] }
 0x234   : > { %v2557_v46 = vld [vmem:[#allocation9 + $0x170] sm:$0xff]  ;;  %2773 = vmatpush.msrb.mxu2 %v2541_v24 }
 0x235   : > { %6810 = vst [vmem:[#allocation43_spill] sm:$0xff] %v5203_v1  ;;  %2886 = vmatpush.msrb.mxu3 %v2557_v46 }
 0x236   : > { %v1288_v15 = vpop.f32.mrf.mxu2  ;;  %v1401_v38 = vpop.f32.mrf.mxu3 }
 0x237   : > { %v1289_v60 = vadd.f32 %v1288_v15, %v6812_v32  ;;  %v1517_v3 = vpop.f32.mrf.mxu0  ;;  %v5214_v32 = vpop.f32.mrf.mxu1 }
 0x239   : > { %v1402_v12 = vadd.f32 %v1401_v38, %v1289_v60  ;;  %v2573_v38 = vld [vmem:[#allocation9 + $0x1f0] sm:$0xff] }
 0x23a   : > { %1920 = vmatmul.f32.gmra.mxu0 %v4832_v2  ;;  %v6816_v2 = vld [vmem:[#allocation67_spill] sm:$0xff]  ;;  %v2589_v60 = vld [vmem:[#allocation9 + $0x270] sm:$0xff] }
 0x23b   : > { %1694 = vmatmul.f32.gmra.mxu2 %v6813_v19  ;;  %1807 = vmatmul.f32.gmra.mxu3 %v6814_v35  ;;  %v5211_v0 = vadd.f32 %v1514_v20, %v1402_v12  ;;  %v6817_v35 = vld [vmem:[#allocation64_spill] sm:$0xff] }
 0x23c   : > { %2999 = vmatpush.msrb.mxu0 %v2573_v38  ;;  %3112 = vmatpush.msrb.mxu1 %v2589_v60  ;;  %v6820_v38 = vld [vmem:[#allocation68_spill] sm:$0xff] }
 0x23e   : > { %v1291_v22 = vpop.f32.mrf.mxu2  ;;  %v1404_v5 = vpop.f32.mrf.mxu3 }
 0x23f   : > { %v1292_v1 = vadd.f32 %v1291_v22, %v6815_v61  ;;  %v1520_v44 = vpop.f32.mrf.mxu0  ;;  %v2556_v61 = vld [vmem:[#allocation9 + $0x168] sm:$0xff] }
 0x240   : > { %2887 = vmatpush.msrb.mxu3 %v2556_v61 }
 0x241   : > { %v1405_v15 = vadd.f32 %v1404_v5, %v1292_v1  ;;  %v6818_v1 = vld [vmem:[#allocation17_spill] sm:$0xff]  ;;  %v2540_v5 = vld [vmem:[#allocation9 + $0xe8] sm:$0xff] }
 0x242   : > { %1923 = vmatmul.f32.gmra.mxu0 %v4849_v43  ;;  %v5223_v43 = vpop.f32.mrf.mxu1  ;;  %2774 = vmatpush.msrb.mxu2 %v2540_v5 }
 0x243   : > { %1697 = vmatmul.f32.gmra.mxu2 %v4357_v62  ;;  %1810 = vmatmul.f32.gmra.mxu3 %v6816_v2  ;;  %v5219_v20 = vadd.f32 %v1517_v3, %v1405_v15  ;;  %v4002_v62 = vld [vmem:[%s4314_s28 + $0x88] sm:$0xff]  ;;  %s3755_s28 = sshll.u32 %s3752_s10, 4  ;;  %s3756_s28 = int_to_ptr.hbm [resolvable:$true] %s3755_s28 }
 0x244   : > { %s4108_s22 = sshra.s32 %s3756_s28, 4  ;;  %s4109_s22 = int_to_ptr.hbm [resolvable:$true] %s4108_s22 }
 0x245   : > { %s4110_s29 = scalar_lea.hbm %s4109_s22, 256  ;;  %p4115_p11 = scmp.lt.s32.totalorder %s4109_s22, %s6513_s5 }
 0x246   : > { %v1294_v12 = vpop.f32.mrf.mxu2  ;;  %v1407_v19 = vpop.f32.mrf.mxu3  ;;  %p4111_p1 = scmp.ne.s32.totalorder %s4109_s22, %s4110_s29  ;;  %p4116_p2 = scmp.lt.s32.totalorder %s4114_s12, %s4110_s29 }
 0x247   : > { %v1295_v24 = vadd.f32 %v1294_v12, %v6817_v35  ;;  %v1523_v46 = vpop.f32.mrf.mxu0  ;;  %v2572_v35 = vld [vmem:[#allocation9 + $0x1e8] sm:$0xff] }
 0x248   : > { %3000 = vmatpush.msrb.mxu0 %v2572_v35  ;;  %v2587_v35 = vld [vmem:[#allocation9 + $0x260] sm:$0xff]  ;;  %p4112_p4 = pnand %p4111_p1, %p4275_p3  ;;  %p4117_p9 = por %p4116_p2, %p4115_p11 }
 0x249   : > { %v1408_v22 = vadd.f32 %v1407_v19, %v1295_v24  ;;  %v2588_v24 = vld [vmem:[#allocation9 + $0x268] sm:$0xff] }
 0x24a   : > { %1926 = vmatmul.f32.gmra.mxu0 %v4860_v54  ;;  %3113 = vmatpush.msrb.mxu1 %v2588_v24  ;;  %p4113_p8 = pneg %p4112_p4 }
 0x24b   : > { %1700 = vmatmul.f32.gmra.mxu2 %v6818_v1  ;;  %1813 = vmatmul.f32.gmra.mxu3 %v4002_v62  ;;  %v5227_v3 = vadd.f32 %v1520_v44, %v1408_v22  ;;  %v5235_v44 = vpop.f32.mrf.mxu1 }
 0x24c   : > { %3114 = vmatpush.msrb.mxu1 %v2587_v35  ;;  %v2586_v35 = vld [vmem:[#allocation9 + $0x258] sm:$0xff]  ;;  %p4118_p10 = pnand %p4117_p9, %p4113_p8 }
 0x24d   : > { %6819 = vst [vmem:[#allocation23_spill] sm:$0xff] %v5227_v3 }
 0x24e   : > { %v1297_v15 = vpop.f32.mrf.mxu2  ;;  %v1410_v2 = vpop.f32.mrf.mxu3  ;;  %3115 = vmatpush.msrb.mxu1 %v2586_v35 }
 0x24f   : > { %v1298_v60 = vadd.f32 %v1297_v15, %v6820_v38  ;;  %v1882_v12 = vpop.f32.mrf.mxu0 }
 0x251   : > { %v1411_v19 = vadd.f32 %v1410_v2, %v1298_v60 }
 0x252   : > { %1929 = vmatmul.f32.gmra.mxu0 %v4877_v18 }
 0x253   : > { %1703 = vmatmul.f32.gmra.mxu2 %v4394_v16  ;;  %1816 = vmatmul.f32.gmra.mxu3 %v4871_v33  ;;  %v5233_v54 = vadd.f32 %v1523_v46, %v1411_v19  ;;  %v2539_v33 = vld [vmem:[#allocation9 + $0xe0] sm:$0xff]  ;;  %v5243_v38 = vpop.f32.mrf.mxu1 }
 0x254   : > { %v2555_v46 = vld [vmem:[#allocation9 + $0x160] sm:$0xff]  ;;  %2775 = vmatpush.msrb.mxu2 %v2539_v33 }
 0x255   : > { %6821 = vst [vmem:[#allocation45_spill] sm:$0xff] %v5233_v54  ;;  %2888 = vmatpush.msrb.mxu3 %v2555_v46  ;;  %v2538_v46 = vld [vmem:[#allocation9 + $0xd8] sm:$0xff] }
 0x256   : > { %v1656_v22 = vpop.f32.mrf.mxu2  ;;  %v1769_v1 = vpop.f32.mrf.mxu3  ;;  %2776 = vmatpush.msrb.mxu2 %v2538_v46 }
 0x257   : > { %v1657_v62 = vadd.f32 %v1656_v22, %v4863_v59  ;;  %v1885_v5 = vpop.f32.mrf.mxu0 }
 0x259   : > { %v1770_v61 = vadd.f32 %v1769_v1, %v1657_v62  ;;  %v6822_v1 = vld [vmem:[#allocation69_spill] sm:$0xff] }
 0x25a   : > { %1932 = vmatmul.f32.gmra.mxu0 %v4893_v28 }
 0x25b   : > { %v1883_v18 = vadd.f32 %v1882_v12, %v1770_v61  ;;  %1706 = vmatmul.f32.gmra.mxu2 %v4412_v25  ;;  %1819 = vmatmul.f32.gmra.mxu3 %v4886_v27  ;;  %v5259_v33 = vpop.f32.mrf.mxu1 }
 0x25d   : > { %v5241_v16 = vmax.f32 %v1883_v18, 0.0 }
 0x25e   : > { %v1659_v15 = vpop.f32.mrf.mxu2  ;;  %v1772_v2 = vpop.f32.mrf.mxu3 }
 0x25f   : > { %v1660_v59 = vadd.f32 %v1659_v15, %v4880_v41  ;;  %v1888_v60 = vpop.f32.mrf.mxu0  ;;  %v2241_v28 = vrot.slane %v5241_v16, 7  ;;  %v2571_v41 = vld [vmem:[#allocation9 + $0x1e0] sm:$0xff]  ;;  %v2554_v15 = vld [vmem:[#allocation9 + $0x158] sm:$0xff] }
 0x260   : > { %3001 = vmatpush.msrb.mxu0 %v2571_v41  ;;  %2889 = vmatpush.msrb.mxu3 %v2554_v15 }
 0x261   : > { %v1773_v12 = vadd.f32 %v1772_v2, %v1660_v59  ;;  %v5249_v25 = vsel %vm535_vm0, %v6748_v17, %v2241_v28 }
 0x262   : > { %2681 = vmatmul.f32.gmra.mxu1 %v5249_v25  ;;  %1935 = vmatmul.f32.gmra.mxu0 %v4910_v49 }
 0x263   : > { %v1886_v27 = vadd.f32 %v1885_v5, %v1773_v12  ;;  %1709 = vmatmul.f32.gmra.mxu2 %v4429_v37  ;;  %1822 = vmatmul.f32.gmra.mxu3 %v4900_v31 }
 0x265   : > { %v5255_v19 = vmax.f32 %v1886_v27, 0.0 }
 0x266   : > { %v1662_v24 = vpop.f32.mrf.mxu2  ;;  %v1775_v22 = vpop.f32.mrf.mxu3 }
 0x267   : > { %v1663_v62 = vadd.f32 %v1662_v24, %v6822_v1  ;;  %v1891_v61 = vpop.f32.mrf.mxu0  ;;  %v2243_v18 = vrot.slane %v5255_v19, 7 }
 0x269   : > { %v1776_v49 = vadd.f32 %v1775_v22, %v1663_v62  ;;  %v5262_v37 = vsel %vm535_vm0, %v2241_v28, %v2243_v18 }
 0x26a   : > { %2684 = vmatmul.f32.gmra.mxu1 %v5262_v37  ;;  %1938 = vmatmul.f32.gmra.mxu0 %v4926_v45 }
 0x26b   : > { %v1889_v31 = vadd.f32 %v1888_v60, %v1776_v49  ;;  %1712 = vmatmul.f32.gmra.mxu2 %v4446_v47  ;;  %1825 = vmatmul.f32.gmra.mxu3 %v4919_v39  ;;  %v5278_v47 = vpop.f32.mrf.mxu1  ;;  %v2570_v60 = vld [vmem:[#allocation9 + $0x1d8] sm:$0xff] }
 0x26c   : > { %3002 = vmatpush.msrb.mxu0 %v2570_v60 }
 0x26d   : > { %v5268_v5 = vmax.f32 %v1889_v31, 0.0  ;;  %v2553_v31 = vld [vmem:[#allocation9 + $0x150] sm:$0xff] }
 0x26e   : > { %v1665_v2 = vpop.f32.mrf.mxu2  ;;  %v1778_v59 = vpop.f32.mrf.mxu3  ;;  %2890 = vmatpush.msrb.mxu3 %v2553_v31 }
 0x26f   : > { %v1666_v28 = vadd.f32 %v1665_v2, %v4913_v50  ;;  %v1894_v12 = vpop.f32.mrf.mxu0  ;;  %v2246_v27 = vrot.slane %v5268_v5, 7 }
 0x271   : > { %v1779_v41 = vadd.f32 %v1778_v59, %v1666_v28  ;;  %v5274_v45 = vsel %vm535_vm0, %v6748_v17, %v2246_v27 }
 0x272   : > { %6823 = vst [vmem:[#allocation50_spill] sm:$0xff] %v5274_v45  ;;  %2687 = vmatmul.f32.gmra.mxu1 %v5274_v45  ;;  %1941 = vmatmul.f32.gmra.mxu0 %v4943_v51 }
 0x273   : > { %v1892_v39 = vadd.f32 %v1891_v61, %v1779_v41  ;;  %1715 = vmatmul.f32.gmra.mxu2 %v4463_v58  ;;  %1828 = vmatmul.f32.gmra.mxu3 %v4933_v42  ;;  %v5293_v42 = vpop.f32.mrf.mxu1  ;;  %v2585_v41 = vld [vmem:[#allocation9 + $0x250] sm:$0xff] }
 0x274   : > { %3116 = vmatpush.msrb.mxu1 %v2585_v41 }
 0x275   : > { %v5282_v50 = vmax.f32 %v1892_v39, 0.0 }
 0x276   : > { %v1668_v24 = vpop.f32.mrf.mxu2  ;;  %v1781_v22 = vpop.f32.mrf.mxu3 }
 0x277   : > { %v1669_v1 = vadd.f32 %v1668_v24, %v4929_v56  ;;  %v1897_v62 = vpop.f32.mrf.mxu0  ;;  %v2248_v51 = vrot.slane %v5282_v50, 7  ;;  %v2537_v56 = vld [vmem:[#allocation9 + $0xd0] sm:$0xff]  ;;  %v6827_v24 = vld [vmem:[#allocation70_spill] sm:$0xff] }
 0x278   : > { %2777 = vmatpush.msrb.mxu2 %v2537_v56  ;;  %v2552_v56 = vld [vmem:[#allocation9 + $0x148] sm:$0xff] }
 0x279   : > { %v1782_v18 = vadd.f32 %v1781_v22, %v1669_v1  ;;  %v5287_v61 = vsel %vm535_vm0, %v2246_v27, %v2248_v51  ;;  %2891 = vmatpush.msrb.mxu3 %v2552_v56 }
 0x27a   : > { %6824 = vst [vmem:[#allocation24_spill] sm:$0xff] %v5287_v61  ;;  %2690 = vmatmul.f32.gmra.mxu1 %v5287_v61  ;;  %1944 = vmatmul.f32.gmra.mxu0 %v4959_v13 }
 0x27b   : > { %v1895_v58 = vadd.f32 %v1894_v12, %v1782_v18  ;;  %1718 = vmatmul.f32.gmra.mxu2 %v4480_v11  ;;  %1831 = vmatmul.f32.gmra.mxu3 %v4952_v30  ;;  %v6826_v12 = vld [vmem:[#allocation71_spill] sm:$0xff]  ;;  %v5309_v35 = vpop.f32.mrf.mxu1 }
 0x27d   : > { %v5295_v49 = vmax.f32 %v1895_v58, 0.0  ;;  %v2536_v58 = vld [vmem:[#allocation9 + $0xc8] sm:$0xff] }
 0x27e   : > { %v1671_v46 = vpop.f32.mrf.mxu2  ;;  %v1784_v15 = vpop.f32.mrf.mxu3  ;;  %2778 = vmatpush.msrb.mxu2 %v2536_v58  ;;  %v2551_v58 = vld [vmem:[#allocation9 + $0x140] sm:$0xff] }
 0x27f   : > { %v1672_v2 = vadd.f32 %v1671_v46, %v4946_v36  ;;  %v1900_v59 = vpop.f32.mrf.mxu0  ;;  %v2251_v13 = vrot.slane %v5295_v49, 7  ;;  %v2569_v36 = vld [vmem:[#allocation9 + $0x1d0] sm:$0xff]  ;;  %2892 = vmatpush.msrb.mxu3 %v2551_v58 }
 0x280   : > { %3003 = vmatpush.msrb.mxu0 %v2569_v36 }
 0x281   : > { %v1785_v28 = vadd.f32 %v1784_v15, %v1672_v2  ;;  %v5301_v11 = vsel %vm535_vm0, %v6748_v17, %v2251_v13 }
 0x282   : > { %6825 = vst [vmem:[#allocation47_spill] sm:$0xff] %v5301_v11  ;;  %2693 = vmatmul.f32.gmra.mxu1 %v5301_v11  ;;  %1947 = vmatmul.f32.gmra.mxu0 %v4979_v63 }
 0x283   : > { %v1898_v30 = vadd.f32 %v1897_v62, %v1785_v28  ;;  %1721 = vmatmul.f32.gmra.mxu2 %v4497_v29  ;;  %1834 = vmatmul.f32.gmra.mxu3 %v6826_v12  ;;  %v5324_v28 = vpop.f32.mrf.mxu1  ;;  %v2584_v12 = vld [vmem:[#allocation9 + $0x248] sm:$0xff] }
 0x284   : > { %3117 = vmatpush.msrb.mxu1 %v2584_v12  ;;  %v2550_v12 = vld [vmem:[#allocation9 + $0x138] sm:$0xff] }
 0x285   : > { %v5307_v27 = vmax.f32 %v1898_v30, 0.0  ;;  %v2568_v30 = vld [vmem:[#allocation9 + $0x1c8] sm:$0xff]  ;;  %2893 = vmatpush.msrb.mxu3 %v2550_v12  ;;  %v2563_v12 = vld [vmem:[#allocation9 + $0x1a0] sm:$0xff] }
 0x286   : > { %v1674_v39 = vpop.f32.mrf.mxu2  ;;  %v1787_v60 = vpop.f32.mrf.mxu3  ;;  %3004 = vmatpush.msrb.mxu0 %v2568_v30  ;;  %v2534_v30 = vld [vmem:[#allocation9 + $0xb8] sm:$0xff] }
 0x287   : > { %v1675_v22 = vadd.f32 %v1674_v39, %v6827_v24  ;;  %v1903_v1 = vpop.f32.mrf.mxu0  ;;  %v2253_v63 = vrot.slane %v5307_v27, 7 }
 0x289   : > { %v1788_v62 = vadd.f32 %v1787_v60, %v1675_v22  ;;  %v5314_v29 = vsel %vm535_vm0, %v2251_v13, %v2253_v63  ;;  %v6832_v22 = vld [vmem:[#allocation72_spill] sm:$0xff] }
 0x28a   : > { %6828 = vst [vmem:[#allocation52_spill] sm:$0xff] %v5314_v29  ;;  %2696 = vmatmul.f32.gmra.mxu1 %v5314_v29  ;;  %1950 = vmatmul.f32.gmra.mxu0 %v4994_v6 }
 0x28b   : > { %v1901_v51 = vadd.f32 %v1900_v59, %v1788_v62  ;;  %1724 = vmatmul.f32.gmra.mxu2 %v4511_v55  ;;  %1837 = vmatmul.f32.gmra.mxu3 %v4970_v40 }
 0x28d   : > { %v5320_v18 = vmax.f32 %v1901_v51, 0.0  ;;  %v2535_v51 = vld [vmem:[#allocation9 + $0xc0] sm:$0xff] }
 0x28e   : > { %v1677_v31 = vpop.f32.mrf.mxu2  ;;  %v1790_v46 = vpop.f32.mrf.mxu3  ;;  %2779 = vmatpush.msrb.mxu2 %v2535_v51 }
 0x28f   : > { %v1678_v15 = vadd.f32 %v1677_v31, %v4982_v14  ;;  %v1906_v2 = vpop.f32.mrf.mxu0  ;;  %v2256_v13 = vrot.slane %v5320_v18, 7  ;;  %v1568_v14 = vadd.f32 %v5119_v23, %v4990_v10  ;;  %v5344_v10 = vpop.f32.mrf.mxu1  ;;  %v6831_v23 = vld [vmem:[#allocation29_spill] sm:$0xff] }
 0x290   : > { %2780 = vmatpush.msrb.mxu2 %v2534_v30  ;;  %v6840_v30 = vld [vmem:[#allocation76_spill] sm:$0xff] }
 0x291   : > { %v1791_v6 = vadd.f32 %v1790_v46, %v1678_v15  ;;  %v5328_v55 = vsel %vm535_vm0, %v6748_v17, %v2256_v13 }
 0x292   : > { %6829 = vst [vmem:[#allocation25_spill] sm:$0xff] %v5328_v55  ;;  %2699 = vmatmul.f32.gmra.mxu1 %v5328_v55  ;;  %1953 = vmatmul.f32.gmra.mxu0 %v5011_v26 }
 0x293   : > { %v1904_v40 = vadd.f32 %v1903_v1, %v1791_v6  ;;  %1727 = vmatmul.f32.gmra.mxu2 %v6734_v48  ;;  %1840 = vmatmul.f32.gmra.mxu3 %v4999_v4  ;;  %v6833_v1 = vld [vmem:[#allocation27_spill] sm:$0xff]  ;;  %v2567_v6 = vld [vmem:[#allocation9 + $0x1c0] sm:$0xff] }
 0x294   : > { %v1571_v63 = vadd.f32 %v5127_v9, %v6833_v1  ;;  %3005 = vmatpush.msrb.mxu0 %v2567_v6  ;;  %v2565_v1 = vld [vmem:[#allocation9 + $0x1b0] sm:$0xff]  ;;  %v2531_v6 = vld [vmem:[#allocation9 + $0xa0] sm:$0xff] }
 0x295   : > { %v5336_v59 = vmax.f32 %v1904_v40, 0.0  ;;  %v6835_v40 = vld [vmem:[#allocation31_spill] sm:$0xff] }
 0x296   : > { %v1680_v36 = vpop.f32.mrf.mxu2  ;;  %v1793_v41 = vpop.f32.mrf.mxu3 }
 0x297   : > { %v1681_v39 = vadd.f32 %v1680_v36, %v1568_v14  ;;  %v1909_v60 = vpop.f32.mrf.mxu0  ;;  %v2258_v26 = vrot.slane %v5336_v59, 7  ;;  %v6836_v14 = vld [vmem:[#allocation74_spill] sm:$0xff]  ;;  %v2566_v36 = vld [vmem:[#allocation9 + $0x1b8] sm:$0xff] }
 0x298   : > { %3006 = vmatpush.msrb.mxu0 %v2566_v36  ;;  %v2530_v36 = vld [vmem:[#allocation9 + $0x98] sm:$0xff] }
 0x299   : > { %v1794_v24 = vadd.f32 %v1793_v41, %v1681_v39  ;;  %v5340_v48 = vsel %vm535_vm0, %v2256_v13, %v2258_v26  ;;  %v6837_v41 = vld [vmem:[#allocation73_spill] sm:$0xff]  ;;  %v5363_v26 = vpop.f32.mrf.mxu1 }
 0x29a   : > { %6830 = vst [vmem:[#allocation49_spill] sm:$0xff] %v5340_v48  ;;  %2702 = vmatmul.f32.gmra.mxu1 %v5340_v48  ;;  %1956 = vmatmul.f32.gmra.mxu0 %v5027_v7  ;;  %v1574_v39 = vadd.f32 %v5136_v53, %v6837_v41  ;;  %v2532_v53 = vld [vmem:[#allocation9 + $0xa8] sm:$0xff]  ;;  %v6841_v41 = vld [vmem:[#allocation32_spill] sm:$0xff] }
 0x29b   : > { %v1907_v4 = vadd.f32 %v1906_v2, %v1794_v24  ;;  %1730 = vmatmul.f32.gmra.mxu2 %v6831_v23  ;;  %1843 = vmatmul.f32.gmra.mxu3 %v6832_v22 }
 0x29c   : > { %3007 = vmatpush.msrb.mxu0 %v2565_v1 }
 0x29d   : > { %v5350_v62 = vmax.f32 %v1907_v4, 0.0  ;;  %v2583_v4 = vld [vmem:[#allocation9 + $0x240] sm:$0xff] }
 0x29e   : > { %v1683_v56 = vpop.f32.mrf.mxu2  ;;  %v1796_v31 = vpop.f32.mrf.mxu3  ;;  %3118 = vmatpush.msrb.mxu1 %v2583_v4 }
 0x29f   : > { %v1684_v46 = vadd.f32 %v1683_v56, %v1571_v63  ;;  %v1912_v7 = vpop.f32.mrf.mxu0  ;;  %v2261_v15 = vrot.slane %v5350_v62, 7  ;;  %v2548_v56 = vld [vmem:[#allocation9 + $0x128] sm:$0xff] }
 0x2a1   : > { %v1797_v2 = vadd.f32 %v1796_v31, %v1684_v46  ;;  %v5355_v13 = vsel %vm535_vm0, %v6748_v17, %v2261_v15 }
 0x2a2   : > { %6834 = vst [vmem:[#allocation54_spill] sm:$0xff] %v5355_v13  ;;  %2705 = vmatmul.f32.gmra.mxu1 %v5355_v13  ;;  %1959 = vmatmul.f32.gmra.mxu0 %v5044_v34  ;;  %v2533_v34 = vld [vmem:[#allocation9 + $0xb0] sm:$0xff] }
 0x2a3   : > { %v1910_v9 = vadd.f32 %v1909_v60, %v1797_v2  ;;  %1733 = vmatmul.f32.gmra.mxu2 %v6835_v40  ;;  %1846 = vmatmul.f32.gmra.mxu3 %v6836_v14  ;;  %v2549_v60 = vld [vmem:[#allocation9 + $0x130] sm:$0xff]  ;;  %v2564_v2 = vld [vmem:[#allocation9 + $0x1a8] sm:$0xff]  ;;  %v6839_v14 = vld [vmem:[#allocation34_spill] sm:$0xff] }
 0x2a4   : > { %2781 = vmatpush.msrb.mxu2 %v2533_v34  ;;  %2894 = vmatpush.msrb.mxu3 %v2549_v60  ;;  %v2562_v34 = vld [vmem:[#allocation9 + $0x198] sm:$0xff]  ;;  %v2529_v60 = vld [vmem:[#allocation9 + $0x90] sm:$0xff] }
 0x2a5   : > { %v5365_v24 = vmax.f32 %v1910_v9, 0.0  ;;  %v2547_v9 = vld [vmem:[#allocation9 + $0x120] sm:$0xff]  ;;  %3008 = vmatpush.msrb.mxu0 %v2564_v2  ;;  %v6843_v2 = vld [vmem:[#allocation81_spill] sm:$0xff] }
 0x2a6   : > { %v1686_v23 = vpop.f32.mrf.mxu2  ;;  %v1799_v22 = vpop.f32.mrf.mxu3  ;;  %2782 = vmatpush.msrb.mxu2 %v2532_v53  ;;  %2895 = vmatpush.msrb.mxu3 %v2548_v56  ;;  %v2561_v56 = vld [vmem:[#allocation9 + $0x190] sm:$0xff] }
 0x2a7   : > { %v1687_v63 = vadd.f32 %v1686_v23, %v1574_v39  ;;  %v1915_v51 = vpop.f32.mrf.mxu0  ;;  %v2263_v58 = vrot.slane %v5365_v24, 7  ;;  %v1577_v39 = vadd.f32 %v5145_v8, %v6841_v41  ;;  %3009 = vmatpush.msrb.mxu0 %v2563_v12  ;;  %v2527_v12 = vld [vmem:[#allocation9 + $0x80] sm:$0xff] }
 0x2a8   : > { %2783 = vmatpush.msrb.mxu2 %v2531_v6  ;;  %2896 = vmatpush.msrb.mxu3 %v2547_v9  ;;  %v2544_v6 = vld [vmem:[#allocation9 + $0x108] sm:$0xff]  ;;  %v6847_v41 = vld [vmem:[#allocation42_spill] sm:$0xff] }
 0x2a9   : > { %v1800_v31 = vadd.f32 %v1799_v22, %v1687_v63  ;;  %v5369_v46 = vsel %vm535_vm0, %v2261_v15, %v2263_v58  ;;  %v2546_v15 = vld [vmem:[#allocation9 + $0x118] sm:$0xff]  ;;  %v5379_v22 = vpop.f32.mrf.mxu1  ;;  %3010 = vmatpush.msrb.mxu0 %v2562_v34 }
 0x2aa   : > { %6838 = vst [vmem:[#allocation26_spill] sm:$0xff] %v5369_v46  ;;  %2708 = vmatmul.f32.gmra.mxu1 %v5369_v46  ;;  %1962 = vmatmul.f32.gmra.mxu0 %v5064_v52 }
 0x2ab   : > { %v1913_v40 = vadd.f32 %v1912_v7, %v1800_v31  ;;  %1736 = vmatmul.f32.gmra.mxu2 %v6839_v14  ;;  %1849 = vmatmul.f32.gmra.mxu3 %v6840_v30  ;;  %v2545_v7 = vld [vmem:[#allocation9 + $0x110] sm:$0xff]  ;;  %v2528_v31 = vld [vmem:[#allocation9 + $0x88] sm:$0xff] }
 0x2ac   : > { %2784 = vmatpush.msrb.mxu2 %v2530_v36  ;;  %2897 = vmatpush.msrb.mxu3 %v2546_v15  ;;  %v6845_v14 = vld [vmem:[#allocation75_spill] sm:$0xff]  ;;  %v2543_v36 = vld [vmem:[#allocation9 + $0x100] sm:$0xff]  ;;  %v6846_v15 = vld [vmem:[#allocation77_spill] sm:$0xff] }
 0x2ad   : > { %v5377_v4 = vmax.f32 %v1913_v40, 0.0  ;;  %v6844_v40 = vld [vmem:[#allocation79_spill] sm:$0xff]  ;;  %3011 = vmatpush.msrb.mxu0 %v2561_v56 }
 0x2ae   : > { %v1689_v52 = vpop.f32.mrf.mxu2  ;;  %v1802_v23 = vpop.f32.mrf.mxu3  ;;  %2785 = vmatpush.msrb.mxu2 %v2529_v60  ;;  %2898 = vmatpush.msrb.mxu3 %v2545_v7  ;;  %v2560_v30 = vld [vmem:[#allocation9 + $0x188] sm:$0xff]  ;;  %v2559_v60 = vld [vmem:[#allocation9 + $0x180] sm:$0xff] }
 0x2af   : > { %v1690_v1 = vadd.f32 %v1689_v52, %v1577_v39  ;;  %v1918_v63 = vpop.f32.mrf.mxu0  ;;  %v2266_v58 = vrot.slane %v5377_v4, 7  ;;  %v1580_v39 = vadd.f32 %v6847_v41, %v6846_v15  ;;  %v2582_v52 = vld [vmem:[#allocation9 + $0x238] sm:$0xff]  ;;  %3012 = vmatpush.msrb.mxu0 %v2560_v30  ;;  %v6853_v30 = vld [vmem:[#allocation80_spill] sm:$0xff] }
 0x2b0   : > { %2786 = vmatpush.msrb.mxu2 %v2528_v31  ;;  %2899 = vmatpush.msrb.mxu3 %v2544_v6  ;;  %v6850_v6 = vld [vmem:[#allocation83_spill] sm:$0xff] }
 0x2b1   : > { %v1803_v8 = vadd.f32 %v1802_v23, %v1690_v1  ;;  %v5384_v53 = vsel %vm535_vm0, %v6748_v17, %v2266_v58  ;;  %3119 = vmatpush.msrb.mxu1 %v2582_v52  ;;  %3013 = vmatpush.msrb.mxu0 %v2559_v60  ;;  %v5395_v56 = vpop.f32.mrf.mxu1 }
 0x2b2   : > { %6842 = vst [vmem:[#allocation51_spill] sm:$0xff] %v5384_v53  ;;  %2711 = vmatmul.f32.gmra.mxu1 %v5384_v53  ;;  %1965 = vmatmul.f32.gmra.mxu0 %v6843_v2 }
 0x2b3   : > { %v1916_v9 = vadd.f32 %v1915_v51, %v1803_v8  ;;  %1739 = vmatmul.f32.gmra.mxu2 %v6844_v40  ;;  %1852 = vmatmul.f32.gmra.mxu3 %v6845_v14  ;;  %6848 = vst [vmem:[#allocation56_spill] sm:$0xff] %v5395_v56  ;;  %v6851_v40 = vld [vmem:[#allocation82_spill] sm:$0xff] }
 0x2b4   : > { %2787 = vmatpush.msrb.mxu2 %v2527_v12  ;;  %2900 = vmatpush.msrb.mxu3 %v2543_v36  ;;  %v6852_v14 = vld [vmem:[#allocation78_spill] sm:$0xff]  ;;  %v6854_v12 = vld [vmem:[#allocation39_spill] sm:$0xff] }
 0x2b5   : > { %v5392_v34 = vmax.f32 %v1916_v9, 0.0  ;;  %v1583_v36 = vadd.f32 %v6854_v12, %v6853_v30 }
 0x2b6   : > { %v1692_v23 = vpop.f32.mrf.mxu2  ;;  %v1805_v7 = vpop.f32.mrf.mxu3 }
 0x2b7   : > { %v1693_v51 = vadd.f32 %v1692_v23, %v1580_v39  ;;  %v1921_v1 = vpop.f32.mrf.mxu0  ;;  %v2268_v8 = vrot.slane %v5392_v34, 7 }
 0x2b9   : > { %v1806_v31 = vadd.f32 %v1805_v7, %v1693_v51  ;;  %v5398_v2 = vsel %vm535_vm0, %v2266_v58, %v2268_v8  ;;  %v5415_v51 = vpop.f32.mrf.mxu1 }
 0x2ba   : > { %6849 = vst [vmem:[#allocation28_spill] sm:$0xff] %v5398_v2  ;;  %2714 = vmatmul.f32.gmra.mxu1 %v5398_v2  ;;  %1968 = vmatmul.f32.gmra.mxu0 %v6850_v6  ;;  %v6859_v6 = vld [vmem:[#allocation63_spill] sm:$0xff] }
 0x2bb   : > { %v1919_v9 = vadd.f32 %v1918_v63, %v1806_v31  ;;  %1742 = vmatmul.f32.gmra.mxu2 %v6851_v40  ;;  %1855 = vmatmul.f32.gmra.mxu3 %v6852_v14  ;;  %v6856_v63 = vld [vmem:[#allocation35_spill] sm:$0xff]  ;;  %6857 = vst [vmem:[#allocation58_spill] sm:$0xff] %v5415_v51  ;;  %v6858_v31 = vmov 0.0   ;;  %v2581_v14 = vld [vmem:[#allocation9 + $0x230] sm:$0xff] }
 0x2bc   : > { %3120 = vmatpush.msrb.mxu1 %v2581_v14 }
 0x2bd   : > { %v5406_v15 = vmax.f32 %v1919_v9, 0.0  ;;  %v1586_v9 = vadd.f32 %v5174_v57, %v6859_v6  ;;  %v6862_v6 = vld [vmem:[#allocation41_spill] sm:$0xff] }
 0x2be   : > { %v1695_v41 = vpop.f32.mrf.mxu2  ;;  %v1808_v39 = vpop.f32.mrf.mxu3 }
 0x2bf   : > { %v1696_v60 = vadd.f32 %v1695_v41, %v1583_v36  ;;  %v1924_v52 = vpop.f32.mrf.mxu0  ;;  %v2271_v58 = vrot.slane %v5406_v15, 7 }
 0x2c1   : > { %v1809_v23 = vadd.f32 %v1808_v39, %v1696_v60  ;;  %v5411_v7 = vsel %vm535_vm0, %v6748_v17, %v2271_v58  ;;  %v5431_v57 = vpop.f32.mrf.mxu1 }
 0x2c2   : > { %6855 = vst [vmem:[#allocation53_spill] sm:$0xff] %v5411_v7  ;;  %2717 = vmatmul.f32.gmra.mxu1 %v5411_v7  ;;  %1971 = vmatmul.f32.gmra.mxu0 %v6856_v63 }
 0x2c3   : > { %v1922_v8 = vadd.f32 %v1921_v1, %v1809_v23  ;;  %1745 = vmatmul.f32.gmra.mxu2 %v6748_v17  ;;  %1858 = vmatmul.f32.gmra.mxu3 %v6858_v31 }
 0x2c5   : > { %v5421_v40 = vmax.f32 %v1922_v8, 0.0  ;;  %v6861_v8 = vld [vmem:[#allocation66_spill] sm:$0xff] }
 0x2c6   : > { %v1698_v30 = vpop.f32.mrf.mxu2  ;;  %v1811_v12 = vpop.f32.mrf.mxu3 }
 0x2c7   : > { %v1699_v36 = vadd.f32 %v1698_v30, %v1586_v9  ;;  %v1927_v41 = vpop.f32.mrf.mxu0  ;;  %v2273_v39 = vrot.slane %v5421_v40, 7  ;;  %v1589_v9 = vadd.f32 %v6862_v6, %v6861_v8 }
 0x2c9   : > { %v1812_v60 = vadd.f32 %v1811_v12, %v1699_v36  ;;  %v5425_v1 = vsel %vm535_vm0, %v2271_v58, %v2273_v39 }
 0x2ca   : > { %6860 = vst [vmem:[#allocation30_spill] sm:$0xff] %v5425_v1  ;;  %2720 = vmatmul.f32.gmra.mxu1 %v5425_v1  ;;  %1974 = vmatmul.f32.gmra.mxu0 %v6856_v63 }
 0x2cb   : > { %v1925_v23 = vadd.f32 %v1924_v52, %v1812_v60  ;;  %1748 = vmatmul.f32.gmra.mxu2 %v6748_v17  ;;  %1861 = vmatmul.f32.gmra.mxu3 %v6858_v31 }
 0x2cd   : > { %v5435_v14 = vmax.f32 %v1925_v23, 0.0  ;;  %v6864_v23 = vld [vmem:[#allocation38_spill] sm:$0xff] }
 0x2ce   : > { %v1701_v30 = vpop.f32.mrf.mxu2  ;;  %v1814_v12 = vpop.f32.mrf.mxu3  ;;  %v1592_v8 = vadd.f32 %v5197_v21, %v6864_v23  ;;  %v6869_v23 = vld [vmem:[#allocation48_spill] sm:$0xff] }
 0x2cf   : > { %v1702_v58 = vadd.f32 %v1701_v30, %v1589_v9  ;;  %v1930_v36 = vpop.f32.mrf.mxu0  ;;  %v2276_v39 = vrot.slane %v5435_v14, 7  ;;  %v5450_v9 = vpop.f32.mrf.mxu1  ;;  %v2580_v30 = vld [vmem:[#allocation9 + $0x228] sm:$0xff] }
 0x2d0   : > { %6866 = vst [vmem:[#allocation33_spill] sm:$0xff] %v5450_v9  ;;  %3121 = vmatpush.msrb.mxu1 %v2580_v30 }
 0x2d1   : > { %v1815_v51 = vadd.f32 %v1814_v12, %v1702_v58  ;;  %v5440_v52 = vsel %vm535_vm0, %v6748_v17, %v2276_v39 }
 0x2d2   : > { %6863 = vst [vmem:[#allocation55_spill] sm:$0xff] %v5440_v52  ;;  %2723 = vmatmul.f32.gmra.mxu1 %v5440_v52  ;;  %3014 = vmatmul.f32.vlgmr.msrb.gmra.mxu0 %v5249_v25 }
 0x2d3   : > { %v1928_v60 = vadd.f32 %v1927_v41, %v1815_v51  ;;  %2788 = vmatmul.f32.vlgmr.msrb.gmra.mxu2 %v6858_v31  ;;  %2901 = vmatmul.f32.vlgmr.msrb.gmra.mxu3 %v6856_v63 }
 0x2d5   : > { %v5448_v6 = vmax.f32 %v1928_v60, 0.0  ;;  %v6868_v60 = vld [vmem:[#allocation18_spill] sm:$0xff] }
 0x2d6   : > { %v1704_v12 = vpop.f32.mrf.mxu2  ;;  %v1817_v58 = vpop.f32.mrf.mxu3  ;;  %v1595_v30 = vadd.f32 %v6869_v23, %v6868_v60  ;;  %v6874_v23 = vld [vmem:[#allocation36_spill] sm:$0xff] }
 0x2d7   : > { %6865 = vst [vmem:[#allocation60_spill] sm:$0xff] %v5448_v6  ;;  %v1705_v54 = vadd.f32 %v1704_v12, %v1592_v8  ;;  %v1933_v56 = vpop.f32.mrf.mxu0  ;;  %v2278_v25 = vrot.slane %v5448_v6, 7 }
 0x2d9   : > { %v1818_v51 = vadd.f32 %v1817_v58, %v1705_v54  ;;  %v5454_v41 = vsel %vm535_vm0, %v2276_v39, %v2278_v25  ;;  %v2369_v54 = vrot.slane %v5255_v19, 1 }
 0x2da   : > { %6867 = vst [vmem:[#allocation57_spill] sm:$0xff] %v5454_v41  ;;  %2726 = vmatmul.f32.gmra.mxu1 %v5454_v41  ;;  %3017 = vmatmul.f32.gmra.mxu0 %v5262_v37 }
 0x2db   : > { %v1931_v21 = vadd.f32 %v1930_v36, %v1818_v51  ;;  %2791 = vmatmul.f32.gmra.mxu2 %v6858_v31  ;;  %2904 = vmatmul.f32.gmra.mxu3 %v6856_v63  ;;  %v2368_v36 = vrot.slane %v5241_v16, 1 }
 0x2dd   : > { %v5462_v8 = vmax.f32 %v1931_v21, 0.0  ;;  %v5475_v21 = vsel %vm664_vm1, %v2368_v36, %v2369_v54 }
 0x2de   : > { %v1707_v12 = vpop.f32.mrf.mxu2  ;;  %v1820_v3 = vpop.f32.mrf.mxu3  ;;  %6873 = vst [vmem:[#allocation16_spill] sm:$0xff] %v5475_v21 }
 0x2df   : > { %6870 = vst [vmem:[#allocation15_spill] sm:$0xff] %v5462_v8  ;;  %v1708_v39 = vadd.f32 %v1707_v12, %v1595_v30  ;;  %v5465_v58 = vpop.f32.mrf.mxu1  ;;  %v1936_v25 = vpop.f32.mrf.mxu0  ;;  %v2281_v37 = vrot.slane %v5462_v8, 7  ;;  %v1598_v30 = vadd.f32 %v5214_v32, %v6874_v23  ;;  %v2579_v12 = vld [vmem:[#allocation9 + $0x220] sm:$0xff]  ;;  %v5493_v32 = vsel %vm664_vm1, %v2369_v54, %v6856_v63  ;;  %v6877_v23 = vld [vmem:[#allocation40_spill] sm:$0xff] }
 0x2e0   : > { %6871 = vst [vmem:[#allocation61_spill] sm:$0xff] %v5465_v58  ;;  %3122 = vmatpush.msrb.mxu1 %v2579_v12 }
 0x2e1   : > { %v1821_v51 = vadd.f32 %v1820_v3, %v1708_v39  ;;  %v5471_v31 = vsel %vm535_vm0, %v6748_v17, %v2281_v37  ;;  %6876 = vst [vmem:[#allocation62_spill] sm:$0xff] %v5493_v32 }
 0x2e2   : > { %6872 = vst [vmem:[#allocation59_spill] sm:$0xff] %v5471_v31  ;;  %2729 = vmatmul.f32.gmra.mxu1 %v5471_v31  ;;  %3020 = vmatmul.f32.gmra.mxu0 %v5274_v45 }
 0x2e3   : > { %v1934_v60 = vadd.f32 %v1933_v56, %v1821_v51  ;;  %2794 = vmatmul.f32.gmra.mxu2 %v5241_v16  ;;  %2907 = vmatmul.f32.gmra.mxu3 %v5475_v21 }
 0x2e5   : > { %v5482_v3 = vmax.f32 %v1934_v60, 0.0 }
 0x2e6   : > { %v1710_v39 = vpop.f32.mrf.mxu2  ;;  %v1823_v58 = vpop.f32.mrf.mxu3 }
 0x2e7   : > { %v1711_v8 = vadd.f32 %v1710_v39, %v1598_v30  ;;  %v5484_v9 = vpop.f32.mrf.mxu1  ;;  %v1939_v36 = vpop.f32.mrf.mxu0  ;;  %v2283_v45 = vrot.slane %v5482_v3, 7  ;;  %v1601_v30 = vadd.f32 %v5223_v43, %v6877_v23  ;;  %v6882_v23 = vld [vmem:[#allocation19_spill] sm:$0xff] }
 0x2e9   : > { %v1824_v56 = vadd.f32 %v1823_v58, %v1711_v8  ;;  %v5488_v51 = vsel %vm535_vm0, %v2281_v37, %v2283_v45  ;;  %v2374_v37 = vrot.slane %v5282_v50, 1 }
 0x2ea   : > { %6875 = vst [vmem:[#allocation65_spill] sm:$0xff] %v5488_v51  ;;  %2732 = vmatmul.f32.gmra.mxu1 %v5488_v51  ;;  %3023 = vmatmul.f32.gmra.mxu0 %v5287_v61 }
 0x2eb   : > { %v1937_v60 = vadd.f32 %v1936_v25, %v1824_v56  ;;  %2797 = vmatmul.f32.gmra.mxu2 %v5255_v19  ;;  %2910 = vmatmul.f32.gmra.mxu3 %v5493_v32  ;;  %v2373_v25 = vrot.slane %v5268_v5, 1 }
 0x2ed   : > { %v5500_v8 = vmax.f32 %v1937_v60, 0.0  ;;  %v5513_v43 = vsel %vm664_vm1, %v2373_v25, %v2374_v37 }
 0x2ee   : > { %v1713_v45 = vpop.f32.mrf.mxu2  ;;  %v1826_v58 = vpop.f32.mrf.mxu3  ;;  %6881 = vst [vmem:[#allocation68_spill] sm:$0xff] %v5513_v43 }
 0x2ef   : > { %6878 = vst [vmem:[#allocation67_spill] sm:$0xff] %v5500_v8  ;;  %v1714_v12 = vadd.f32 %v1713_v45, %v1601_v30  ;;  %v5503_v39 = vpop.f32.mrf.mxu1  ;;  %v1942_v54 = vpop.f32.mrf.mxu0  ;;  %v2286_v61 = vrot.slane %v5500_v8, 7  ;;  %v1604_v30 = vadd.f32 %v5235_v44, %v6882_v23  ;;  %v5531_v44 = vsel %vm664_vm1, %v2374_v37, %v6856_v63  ;;  %v6885_v23 = vld [vmem:[#allocation37_spill] sm:$0xff] }
 0x2f0   : > { %6879 = vst [vmem:[#allocation64_spill] sm:$0xff] %v5503_v39 }
 0x2f1   : > { %v1827_v56 = vadd.f32 %v1826_v58, %v1714_v12  ;;  %v5509_v32 = vsel %vm535_vm0, %v6748_v17, %v2286_v61  ;;  %v2578_v58 = vld [vmem:[#allocation9 + $0x218] sm:$0xff]  ;;  %6884 = vst [vmem:[#allocation71_spill] sm:$0xff] %v5531_v44 }
 0x2f2   : > { %6880 = vst [vmem:[#allocation17_spill] sm:$0xff] %v5509_v32  ;;  %2735 = vmatmul.f32.gmra.mxu1 %v5509_v32  ;;  %3026 = vmatmul.f32.gmra.mxu0 %v5301_v11 }
 0x2f3   : > { %v1940_v60 = vadd.f32 %v1939_v36, %v1827_v56  ;;  %2800 = vmatmul.f32.gmra.mxu2 %v5268_v5  ;;  %2913 = vmatmul.f32.gmra.mxu3 %v5513_v43 }
 0x2f4   : > { %3123 = vmatpush.msrb.mxu1 %v2578_v58 }
 0x2f5   : > { %v5520_v45 = vmax.f32 %v1940_v60, 0.0 }
 0x2f6   : > { %v1716_v12 = vpop.f32.mrf.mxu2  ;;  %v1829_v21 = vpop.f32.mrf.mxu3 }
 0x2f7   : > { %v1717_v39 = vadd.f32 %v1716_v12, %v1604_v30  ;;  %v5522_v8 = vpop.f32.mrf.mxu1  ;;  %v1945_v25 = vpop.f32.mrf.mxu0  ;;  %v2288_v11 = vrot.slane %v5520_v45, 7  ;;  %v1607_v30 = vadd.f32 %v5243_v38, %v6885_v23  ;;  %v6890_v23 = vld [vmem:[#allocation20_spill] sm:$0xff] }
 0x2f9   : > { %v1830_v36 = vadd.f32 %v1829_v21, %v1717_v39  ;;  %v5526_v56 = vsel %vm535_vm0, %v2286_v61, %v2288_v11  ;;  %v2379_v39 = vrot.slane %v5307_v27, 1 }
 0x2fa   : > { %6883 = vst [vmem:[#allocation69_spill] sm:$0xff] %v5526_v56  ;;  %2738 = vmatmul.f32.gmra.mxu1 %v5526_v56  ;;  %3029 = vmatmul.f32.gmra.mxu0 %v5314_v29 }
 0x2fb   : > { %v1943_v60 = vadd.f32 %v1942_v54, %v1830_v36  ;;  %2803 = vmatmul.f32.gmra.mxu2 %v5282_v50  ;;  %2916 = vmatmul.f32.gmra.mxu3 %v5531_v44  ;;  %v2378_v54 = vrot.slane %v5295_v49, 1 }
 0x2fd   : > { %v5538_v21 = vmax.f32 %v1943_v60, 0.0  ;;  %v5551_v38 = vsel %vm664_vm1, %v2378_v54, %v2379_v39 }
 0x2fe   : > { %v1719_v61 = vpop.f32.mrf.mxu2  ;;  %v1832_v11 = vpop.f32.mrf.mxu3  ;;  %6889 = vst [vmem:[#allocation27_spill] sm:$0xff] %v5551_v38 }
 0x2ff   : > { %6886 = vst [vmem:[#allocation70_spill] sm:$0xff] %v5538_v21  ;;  %v1720_v58 = vadd.f32 %v1719_v61, %v1607_v30  ;;  %v5541_v12 = vpop.f32.mrf.mxu1  ;;  %v1948_v37 = vpop.f32.mrf.mxu0  ;;  %v2291_v29 = vrot.slane %v5538_v21, 7  ;;  %v1610_v30 = vadd.f32 %v5259_v33, %v6890_v23  ;;  %v5569_v33 = vsel %vm664_vm1, %v2379_v39, %v6856_v63  ;;  %v6893_v23 = vld [vmem:[#allocation44_spill] sm:$0xff] }
 0x300   : > { %6887 = vst [vmem:[#allocation29_spill] sm:$0xff] %v5541_v12 }
 0x301   : > { %v1833_v36 = vadd.f32 %v1832_v11, %v1720_v58  ;;  %v5547_v44 = vsel %vm535_vm0, %v6748_v17, %v2291_v29  ;;  %v2577_v11 = vld [vmem:[#allocation9 + $0x210] sm:$0xff]  ;;  %6892 = vst [vmem:[#allocation74_spill] sm:$0xff] %v5569_v33 }
 0x302   : > { %6888 = vst [vmem:[#allocation72_spill] sm:$0xff] %v5547_v44  ;;  %2741 = vmatmul.f32.gmra.mxu1 %v5547_v44  ;;  %3032 = vmatmul.f32.gmra.mxu0 %v5328_v55 }
 0x303   : > { %v1946_v60 = vadd.f32 %v1945_v25, %v1833_v36  ;;  %2806 = vmatmul.f32.gmra.mxu2 %v5295_v49  ;;  %2919 = vmatmul.f32.gmra.mxu3 %v5551_v38 }
 0x304   : > { %3124 = vmatpush.msrb.mxu1 %v2577_v11 }
 0x305   : > { %v5558_v61 = vmax.f32 %v1946_v60, 0.0 }
 0x306   : > { %v1722_v58 = vpop.f32.mrf.mxu2  ;;  %v1835_v43 = vpop.f32.mrf.mxu3 }
 0x307   : > { %v1723_v12 = vadd.f32 %v1722_v58, %v1610_v30  ;;  %v5560_v21 = vpop.f32.mrf.mxu1  ;;  %v1951_v54 = vpop.f32.mrf.mxu0  ;;  %v2293_v55 = vrot.slane %v5558_v61, 7  ;;  %v1613_v30 = vadd.f32 %v5278_v47, %v6893_v23  ;;  %v6898_v23 = vld [vmem:[#allocation21_spill] sm:$0xff] }
 0x309   : > { %v1836_v25 = vadd.f32 %v1835_v43, %v1723_v12  ;;  %v5564_v36 = vsel %vm535_vm0, %v2291_v29, %v2293_v55  ;;  %v2384_v12 = vrot.slane %v5336_v59, 1 }
 0x30a   : > { %6891 = vst [vmem:[#allocation31_spill] sm:$0xff] %v5564_v36  ;;  %2744 = vmatmul.f32.gmra.mxu1 %v5564_v36  ;;  %3035 = vmatmul.f32.gmra.mxu0 %v5340_v48 }
 0x30b   : > { %v1949_v60 = vadd.f32 %v1948_v37, %v1836_v25  ;;  %2809 = vmatmul.f32.gmra.mxu2 %v5307_v27  ;;  %2922 = vmatmul.f32.gmra.mxu3 %v5569_v33  ;;  %v2383_v37 = vrot.slane %v5320_v18, 1 }
 0x30d   : > { %v5576_v43 = vmax.f32 %v1949_v60, 0.0  ;;  %v5589_v47 = vsel %vm664_vm1, %v2383_v37, %v2384_v12 }
 0x30e   : > { %v1725_v29 = vpop.f32.mrf.mxu2  ;;  %v1838_v55 = vpop.f32.mrf.mxu3  ;;  %6897 = vst [vmem:[#allocation32_spill] sm:$0xff] %v5589_v47 }
 0x30f   : > { %6894 = vst [vmem:[#allocation73_spill] sm:$0xff] %v5576_v43  ;;  %v1726_v11 = vadd.f32 %v1725_v29, %v1613_v30  ;;  %v5579_v58 = vpop.f32.mrf.mxu1  ;;  %v1954_v39 = vpop.f32.mrf.mxu0  ;;  %v2296_v48 = vrot.slane %v5576_v43, 7  ;;  %v1616_v30 = vadd.f32 %v5293_v42, %v6898_v23  ;;  %v5607_v42 = vsel %vm664_vm1, %v2384_v12, %v6856_v63  ;;  %v6901_v23 = vld [vmem:[#allocation46_spill] sm:$0xff] }
 0x310   : > { %6895 = vst [vmem:[#allocation34_spill] sm:$0xff] %v5579_v58 }
 0x311   : > { %v1839_v25 = vadd.f32 %v1838_v55, %v1726_v11  ;;  %v5585_v33 = vsel %vm535_vm0, %v6748_v17, %v2296_v48  ;;  %v2576_v55 = vld [vmem:[#allocation9 + $0x208] sm:$0xff]  ;;  %6900 = vst [vmem:[#allocation79_spill] sm:$0xff] %v5607_v42 }
 0x312   : > { %6896 = vst [vmem:[#allocation76_spill] sm:$0xff] %v5585_v33  ;;  %2747 = vmatmul.f32.gmra.mxu1 %v5585_v33  ;;  %3038 = vmatmul.f32.gmra.mxu0 %v5355_v13 }
 0x313   : > { %v1952_v60 = vadd.f32 %v1951_v54, %v1839_v25  ;;  %2812 = vmatmul.f32.gmra.mxu2 %v5320_v18  ;;  %2925 = vmatmul.f32.gmra.mxu3 %v5589_v47 }
 0x314   : > { %3125 = vmatpush.msrb.mxu1 %v2576_v55 }
 0x315   : > { %v5596_v29 = vmax.f32 %v1952_v60, 0.0 }
 0x316   : > { %v1728_v11 = vpop.f32.mrf.mxu2  ;;  %v1841_v38 = vpop.f32.mrf.mxu3 }
 0x317   : > { %v1729_v58 = vadd.f32 %v1728_v11, %v1616_v30  ;;  %v5598_v43 = vpop.f32.mrf.mxu1  ;;  %v1957_v37 = vpop.f32.mrf.mxu0  ;;  %v2298_v13 = vrot.slane %v5596_v29, 7  ;;  %v1619_v30 = vadd.f32 %v5309_v35, %v6901_v23  ;;  %v6906_v23 = vld [vmem:[#allocation22_spill] sm:$0xff] }
 0x319   : > { %v1842_v54 = vadd.f32 %v1841_v38, %v1729_v58  ;;  %v5602_v25 = vsel %vm535_vm0, %v2296_v48, %v2298_v13  ;;  %v2389_v58 = vrot.slane %v5365_v24, 1 }
 0x31a   : > { %6899 = vst [vmem:[#allocation81_spill] sm:$0xff] %v5602_v25  ;;  %2750 = vmatmul.f32.gmra.mxu1 %v5602_v25  ;;  %3041 = vmatmul.f32.gmra.mxu0 %v5369_v46 }
 0x31b   : > { %v1955_v60 = vadd.f32 %v1954_v39, %v1842_v54  ;;  %2815 = vmatmul.f32.gmra.mxu2 %v5336_v59  ;;  %2928 = vmatmul.f32.gmra.mxu3 %v5607_v42  ;;  %v2388_v39 = vrot.slane %v5350_v62, 1 }
 0x31d   : > { %v5614_v38 = vmax.f32 %v1955_v60, 0.0  ;;  %v5627_v35 = vsel %vm664_vm1, %v2388_v39, %v2389_v58 }
 0x31e   : > { %v1731_v48 = vpop.f32.mrf.mxu2  ;;  %v1844_v13 = vpop.f32.mrf.mxu3  ;;  %6905 = vst [vmem:[#allocation83_spill] sm:$0xff] %v5627_v35 }
 0x31f   : > { %6902 = vst [vmem:[#allocation75_spill] sm:$0xff] %v5614_v38  ;;  %v1732_v55 = vadd.f32 %v1731_v48, %v1619_v30  ;;  %v5617_v11 = vpop.f32.mrf.mxu1  ;;  %v1960_v12 = vpop.f32.mrf.mxu0  ;;  %v2301_v46 = vrot.slane %v5614_v38, 7  ;;  %v1622_v30 = vadd.f32 %v5324_v28, %v6906_v23  ;;  %v5645_v28 = vsel %vm664_vm1, %v2389_v58, %v6856_v63  ;;  %v6909_v23 = vld [vmem:[#allocation43_spill] sm:$0xff] }
 0x320   : > { %6903 = vst [vmem:[#allocation77_spill] sm:$0xff] %v5617_v11 }
 0x321   : > { %v1845_v54 = vadd.f32 %v1844_v13, %v1732_v55  ;;  %v5623_v42 = vsel %vm535_vm0, %v6748_v17, %v2301_v46  ;;  %v2575_v13 = vld [vmem:[#allocation9 + $0x200] sm:$0xff]  ;;  %6908 = vst [vmem:[#allocation78_spill] sm:$0xff] %v5645_v28 }
 0x322   : > { %6904 = vst [vmem:[#allocation42_spill] sm:$0xff] %v5623_v42  ;;  %2753 = vmatmul.f32.gmra.mxu1 %v5623_v42  ;;  %3044 = vmatmul.f32.gmra.mxu0 %v5384_v53 }
 0x323   : > { %v1958_v60 = vadd.f32 %v1957_v37, %v1845_v54  ;;  %2818 = vmatmul.f32.gmra.mxu2 %v5350_v62  ;;  %2931 = vmatmul.f32.gmra.mxu3 %v5627_v35 }
 0x324   : > { %3126 = vmatpush.msrb.mxu1 %v2575_v13 }
 0x325   : > { %v5634_v48 = vmax.f32 %v1958_v60, 0.0 }
 0x326   : > { %v1734_v55 = vpop.f32.mrf.mxu2  ;;  %v1847_v47 = vpop.f32.mrf.mxu3 }
 0x327   : > { %v1735_v11 = vadd.f32 %v1734_v55, %v1622_v30  ;;  %v5636_v38 = vpop.f32.mrf.mxu1  ;;  %v1963_v39 = vpop.f32.mrf.mxu0  ;;  %v2303_v53 = vrot.slane %v5634_v48, 7  ;;  %v1625_v30 = vadd.f32 %v5344_v10, %v6909_v23  ;;  %v2394_v55 = vrot.slane %v5392_v34, 1 }
 0x329   : > { %v1848_v37 = vadd.f32 %v1847_v47, %v1735_v11  ;;  %v5640_v54 = vsel %vm535_vm0, %v2301_v46, %v2303_v53  ;;  %v2606_v46 = vld [vmem:[#allocation9 + $0x2f8] sm:$0xff] }
 0x32a   : > { %6907 = vst [vmem:[#allocation82_spill] sm:$0xff] %v5640_v54  ;;  %2756 = vmatmul.f32.gmra.mxu1 %v5640_v54  ;;  %3047 = vmatmul.f32.gmra.mxu0 %v5398_v2  ;;  %v2622_v53 = vld [vmem:[#allocation9 + $0x378] sm:$0xff] }
 0x32b   : > { %v1961_v60 = vadd.f32 %v1960_v12, %v1848_v37  ;;  %2821 = vmatmul.f32.gmra.mxu2 %v5365_v24  ;;  %2934 = vmatmul.f32.gmra.mxu3 %v5645_v28  ;;  %v2393_v28 = vrot.slane %v5377_v4, 1 }
 0x32c   : > { %3224 = vmatpush.msra.mxu2 %v2606_v46  ;;  %3337 = vmatpush.msra.mxu3 %v2622_v53  ;;  %v2638_v53 = vld [vmem:[#allocation9 + $0x3f8] sm:$0xff] }
 0x32d   : > { %v5652_v47 = vmax.f32 %v1961_v60, 0.0  ;;  %v5665_v60 = vsel %vm664_vm1, %v2393_v28, %v2394_v55  ;;  %3450 = vmatpush.msra.mxu0 %v2638_v53 }
 0x32e   : > { %v1737_v11 = vpop.f32.mrf.mxu2  ;;  %v1850_v13 = vpop.f32.mrf.mxu3  ;;  %6913 = vst [vmem:[#allocation66_spill] sm:$0xff] %v5665_v60 }
 0x32f   : > { %6910 = vst [vmem:[#allocation80_spill] sm:$0xff] %v5652_v47  ;;  %v1738_v58 = vadd.f32 %v1737_v11, %v1625_v30  ;;  %v5655_v2 = vpop.f32.mrf.mxu1  ;;  %v1966_v12 = vpop.f32.mrf.mxu0  ;;  %v2306_v37 = vrot.slane %v5652_v47, 7  ;;  %v1628_v30 = vadd.f32 %v5363_v26, %v5211_v0  ;;  %v2654_v11 = vld [vmem:[#allocation9 + $0x478] sm:$0xff]  ;;  %v2605_v47 = vld [vmem:[#allocation9 + $0x2f0] sm:$0xff]  ;;  %v5683_v26 = vsel %vm664_vm1, %v2394_v55, %v6856_v63 }
 0x330   : > { %6911 = vst [vmem:[#allocation39_spill] sm:$0xff] %v5655_v2  ;;  %3563 = vmatpush.msra.mxu1 %v2654_v11  ;;  %v2621_v0 = vld [vmem:[#allocation9 + $0x370] sm:$0xff]  ;;  %3225 = vmatpush.msra.mxu2 %v2605_v47 }
 0x331   : > { %v1851_v35 = vadd.f32 %v1850_v13, %v1738_v58  ;;  %v5661_v10 = vsel %vm535_vm0, %v6748_v17, %v2306_v37  ;;  %6915 = vst [vmem:[#allocation38_spill] sm:$0xff] %v5683_v26  ;;  %3338 = vmatpush.msra.mxu3 %v2621_v0  ;;  %v2653_v0 = vld [vmem:[#allocation9 + $0x470] sm:$0xff] }
 0x332   : > { %6912 = vst [vmem:[#allocation63_spill] sm:$0xff] %v5661_v10  ;;  %2759 = vmatmul.f32.gmra.mxu1 %v5661_v10  ;;  %3050 = vmatmul.f32.gmra.mxu0 %v5411_v7 }
 0x333   : > { %v1964_v23 = vadd.f32 %v1963_v39, %v1851_v35  ;;  %2824 = vmatmul.f32.gmra.mxu2 %v5377_v4  ;;  %2937 = vmatmul.f32.gmra.mxu3 %v5665_v60 }
 0x334   : > { %3564 = vmatpush.msra.mxu1 %v2653_v0 }
 0x335   : > { %v5672_v46 = vmax.f32 %v1964_v23, 0.0 }
 0x336   : > { %v1740_v13 = vpop.f32.mrf.mxu2  ;;  %v1853_v58 = vpop.f32.mrf.mxu3 }
 0x337   : > { %v1741_v28 = vadd.f32 %v1740_v13, %v1628_v30  ;;  %v5674_v2 = vpop.f32.mrf.mxu1  ;;  %v1969_v7 = vpop.f32.mrf.mxu0  ;;  %v2308_v35 = vrot.slane %v5672_v46, 7  ;;  %v2399_v13 = vrot.slane %v5421_v40, 1 }
 0x339   : > { %v1854_v39 = vadd.f32 %v1853_v58, %v1741_v28  ;;  %v5678_v60 = vsel %vm535_vm0, %v2306_v37, %v2308_v35  ;;  %v1631_v37 = vadd.f32 %v5379_v22, %v5219_v20  ;;  %v2398_v35 = vrot.slane %v5406_v15, 1  ;;  %v2637_v20 = vld [vmem:[#allocation9 + $0x3f0] sm:$0xff] }
 0x33a   : > { %6914 = vst [vmem:[#allocation41_spill] sm:$0xff] %v5678_v60  ;;  %2762 = vmatmul.f32.gmra.mxu1 %v5678_v60  ;;  %3053 = vmatmul.f32.gmra.mxu0 %v5425_v1  ;;  %v2620_v1 = vld [vmem:[#allocation9 + $0x368] sm:$0xff] }
 0x33b   : > { %v1967_v23 = vadd.f32 %v1966_v12, %v1854_v39  ;;  %2827 = vmatmul.f32.gmra.mxu2 %v5392_v34  ;;  %2940 = vmatmul.f32.gmra.mxu3 %v5683_v26  ;;  %v5705_v22 = vsel %vm664_vm1, %v2398_v35, %v2399_v13  ;;  %v2636_v26 = vld [vmem:[#allocation9 + $0x3e8] sm:$0xff] }
 0x33c   : > { %6919 = vst [vmem:[#allocation40_spill] sm:$0xff] %v5705_v22  ;;  %3451 = vmatpush.msra.mxu0 %v2637_v20  ;;  %v5727_v20 = vsel %vm664_vm1, %v2399_v13, %v6856_v63  ;;  %3339 = vmatpush.msra.mxu3 %v2620_v1  ;;  %v2403_v13 = vrot.slane %v5435_v14, 1 }
 0x33d   : > { %v5690_v30 = vmax.f32 %v1967_v23, 0.0  ;;  %6922 = vst [vmem:[#allocation20_spill] sm:$0xff] %v5727_v20 }
 0x33e   : > { %v1743_v53 = vpop.f32.mrf.mxu2  ;;  %v1856_v11 = vpop.f32.mrf.mxu3  ;;  %3452 = vmatpush.msra.mxu0 %v2636_v26  ;;  %v6928_v26 = vld [vmem:[#allocation33_spill] sm:$0xff] }
 0x33f   : > { %6916 = vst [vmem:[#allocation18_spill] sm:$0xff] %v5690_v30  ;;  %v1744_v55 = vadd.f32 %v1743_v53, %v1631_v37  ;;  %v5693_v58 = vpop.f32.mrf.mxu1  ;;  %v5695_v28 = vpop.f32.mrf.mxu0  ;;  %v2311_v12 = vrot.slane %v5690_v30, 7  ;;  %v2603_v30 = vld [vmem:[#allocation9 + $0x2e0] sm:$0xff] }
 0x340   : > { %6917 = vst [vmem:[#allocation48_spill] sm:$0xff] %v5693_v58 }
 0x341   : > { %v1857_v47 = vadd.f32 %v1856_v11, %v1744_v55  ;;  %v5701_v39 = vsel %vm535_vm0, %v6748_v17, %v2311_v12 }
 0x342   : > { %6918 = vst [vmem:[#allocation36_spill] sm:$0xff] %v5701_v39  ;;  %2765 = vmatmul.f32.gmra.mxu1 %v5701_v39  ;;  %3056 = vmatmul.f32.gmra.mxu0 %v5440_v52 }
 0x343   : > { %v1970_v23 = vadd.f32 %v1969_v7, %v1857_v47  ;;  %2830 = vmatmul.f32.gmra.mxu2 %v5406_v15  ;;  %2943 = vmatmul.f32.gmra.mxu3 %v5705_v22  ;;  %v2604_v47 = vld [vmem:[#allocation9 + $0x2e8] sm:$0xff] }
 0x344   : > { %3226 = vmatpush.msra.mxu2 %v2604_v47  ;;  %v2652_v47 = vld [vmem:[#allocation9 + $0x468] sm:$0xff] }
 0x345   : > { %v5710_v37 = vmax.f32 %v1970_v23, 0.0  ;;  %3565 = vmatpush.msra.mxu1 %v2652_v47 }
 0x346   : > { %v5712_v53 = vpop.f32.mrf.mxu2  ;;  %v5714_v11 = vpop.f32.mrf.mxu3  ;;  %3227 = vmatpush.msra.mxu2 %v2603_v30 }
 0x347   : > { %6920 = vst [vmem:[#allocation19_spill] sm:$0xff] %v5710_v37  ;;  %v5716_v55 = vpop.f32.mrf.mxu1  ;;  %v5718_v35 = vpop.f32.mrf.mxu0  ;;  %v2313_v52 = vrot.slane %v5710_v37, 7  ;;  %v2619_v37 = vld [vmem:[#allocation9 + $0x360] sm:$0xff] }
 0x348   : > { %6921 = vst [vmem:[#allocation37_spill] sm:$0xff] %v5716_v55  ;;  %3340 = vmatpush.msra.mxu3 %v2619_v37 }
 0x349   : > { %v5722_v7 = vsel %vm535_vm0, %v2311_v12, %v2313_v52  ;;  %v2404_v12 = vrot.slane %v5448_v6, 1 }
 0x34a   : > { %2768 = vmatmul.f32.gmra.mxu1 %v5722_v7  ;;  %3059 = vmatmul.f32.gmra.mxu0 %v5454_v41  ;;  %v5743_v41 = vld [vmem:[%s6512_s4] ss:$0 sm:$0xff] }
 0x34b   : > { %2833 = vmatmul.f32.gmra.mxu2 %v5421_v40  ;;  %2946 = vmatmul.f32.gmra.mxu3 %v5727_v20  ;;  %v5747_v1 = vsel %vm664_vm1, %v2403_v13, %v2404_v12  ;;  %v2677_v20 = vadd.f32 %v5743_v41, %v5431_v57 }
 0x34c   : > { %6924 = vst [vmem:[#allocation21_spill] sm:$0xff] %v5747_v1 }
 0x34e   : > { %v5732_v0 = vpop.f32.mrf.mxu2  ;;  %v5734_v52 = vpop.f32.mrf.mxu3 }
 0x34f   : > { %v5737_v23 = vpop.f32.mrf.mxu1  ;;  %v3015_v22 = vpop.f32.mrf.mxu0 }
 0x350   : > { %6923 = vst [vmem:[#allocation44_spill] sm:$0xff] %v5737_v23 }
 0x352   : > { %3127 = vmatmul.f32.vlgmr.msrb.gmra.mxu1 %v5241_v16  ;;  %3062 = vmatmul.f32.gmra.mxu0 %v5471_v31  ;;  %v5759_v31 = vsel %vm664_vm1, %v2404_v12, %v6856_v63 }
 0x353   : > { %2836 = vmatmul.f32.gmra.mxu2 %v5435_v14  ;;  %2949 = vmatmul.f32.gmra.mxu3 %v5747_v1  ;;  %6926 = vst [vmem:[#allocation22_spill] sm:$0xff] %v5759_v31 }
 0x356   : > { %v2789_v23 = vpop.f32.mrf.mxu2  ;;  %v2902_v55 = vpop.f32.mrf.mxu3 }
 0x357   : > { %v2790_v58 = vadd.f32 %v2789_v23, %v2677_v20  ;;  %v5754_v17 = vpop.f32.mrf.mxu1  ;;  %v3018_v16 = vpop.f32.mrf.mxu0 }
 0x358   : > { %6925 = vst [vmem:[#allocation46_spill] sm:$0xff] %v5754_v17 }
 0x359   : > { %v2903_v13 = vadd.f32 %v2902_v55, %v2790_v58  ;;  %v2680_v58 = vadd.f32 %v5743_v41, %v6928_v26 }
 0x35a   : > { %3130 = vmatmul.f32.gmra.mxu1 %v5255_v19  ;;  %3065 = vmatmul.f32.gmra.mxu0 %v5488_v51  ;;  %v2409_v19 = vrot.slane %v5482_v3, 1  ;;  %v6929_v51 = vld [vmem:[#allocation15_spill] sm:$0xff] }
 0x35b   : > { %2839 = vmatmul.f32.gmra.mxu2 %v5448_v6  ;;  %2952 = vmatmul.f32.gmra.mxu3 %v5759_v31  ;;  %v5764_v57 = vadd.f32 %v3015_v22, %v2903_v13  ;;  %v2408_v1 = vrot.slane %v6929_v51, 1  ;;  %v2635_v6 = vld [vmem:[#allocation9 + $0x3e0] sm:$0xff]  ;;  %v6932_v13 = vld [vmem:[#allocation61_spill] sm:$0xff] }
 0x35c   : > { %v2651_v22 = vld [vmem:[#allocation9 + $0x460] sm:$0xff]  ;;  %3453 = vmatpush.msra.mxu0 %v2635_v6  ;;  %v2683_v26 = vadd.f32 %v5743_v41, %v6932_v13  ;;  %v2618_v31 = vld [vmem:[#allocation9 + $0x358] sm:$0xff] }
 0x35d   : > { %6927 = vst [vmem:[#allocation43_spill] sm:$0xff] %v5764_v57  ;;  %v5774_v30 = vsel %vm664_vm1, %v2408_v1, %v2409_v19  ;;  %3566 = vmatpush.msra.mxu1 %v2651_v22  ;;  %3341 = vmatpush.msra.mxu3 %v2618_v31  ;;  %v2650_v31 = vld [vmem:[#allocation9 + $0x458] sm:$0xff] }
 0x35e   : > { %v2792_v55 = vpop.f32.mrf.mxu2  ;;  %v2905_v20 = vpop.f32.mrf.mxu3  ;;  %6930 = vst [vmem:[#allocation33_spill] sm:$0xff] %v5774_v30 }
 0x35f   : > { %v2793_v23 = vadd.f32 %v2792_v55, %v2680_v58  ;;  %v5769_v12 = vpop.f32.mrf.mxu1  ;;  %v3021_v47 = vpop.f32.mrf.mxu0  ;;  %3567 = vmatpush.msra.mxu1 %v2650_v31 }
 0x361   : > { %v2906_v17 = vadd.f32 %v2905_v20, %v2793_v23 }
 0x362   : > { %3133 = vmatmul.f32.gmra.mxu1 %v5268_v5  ;;  %3068 = vmatmul.f32.gmra.mxu0 %v5509_v32  ;;  %v2602_v32 = vld [vmem:[#allocation9 + $0x2d8] sm:$0xff] }
 0x363   : > { %2842 = vmatmul.f32.gmra.mxu2 %v6929_v51  ;;  %2955 = vmatmul.f32.gmra.mxu3 %v5774_v30  ;;  %v5779_v37 = vadd.f32 %v3018_v16, %v2906_v17  ;;  %v5788_v17 = vsel %vm664_vm1, %v2409_v19, %v6856_v63  ;;  %v2686_v16 = vadd.f32 %v5743_v41, %v5484_v9  ;;  %v2634_v30 = vld [vmem:[#allocation9 + $0x3d8] sm:$0xff] }
 0x364   : > { %6933 = vst [vmem:[#allocation61_spill] sm:$0xff] %v5788_v17  ;;  %3228 = vmatpush.msra.mxu2 %v2602_v32  ;;  %3454 = vmatpush.msra.mxu0 %v2634_v30 }
 0x365   : > { %6931 = vst [vmem:[#allocation15_spill] sm:$0xff] %v5779_v37 }
 0x366   : > { %v2795_v58 = vpop.f32.mrf.mxu2  ;;  %v2908_v55 = vpop.f32.mrf.mxu3 }
 0x367   : > { %v2796_v20 = vadd.f32 %v2795_v58, %v2683_v26  ;;  %v5783_v23 = vpop.f32.mrf.mxu1  ;;  %v3024_v1 = vpop.f32.mrf.mxu0  ;;  %v2414_v26 = vrot.slane %v5520_v45, 1 }
 0x369   : > { %v2909_v57 = vadd.f32 %v2908_v55, %v2796_v20  ;;  %v6935_v20 = vld [vmem:[#allocation67_spill] sm:$0xff] }
 0x36a   : > { %3136 = vmatmul.f32.gmra.mxu1 %v5282_v50  ;;  %3071 = vmatmul.f32.gmra.mxu0 %v5526_v56  ;;  %v2413_v37 = vrot.slane %v6935_v20, 1 }
 0x36b   : > { %2845 = vmatmul.f32.gmra.mxu2 %v5482_v3  ;;  %2958 = vmatmul.f32.gmra.mxu3 %v5788_v17  ;;  %v5793_v6 = vadd.f32 %v3021_v47, %v2909_v57  ;;  %v6938_v57 = vld [vmem:[#allocation64_spill] sm:$0xff] }
 0x36c   : > { %v5803_v32 = vsel %vm664_vm1, %v2413_v37, %v2414_v26  ;;  %v2689_v47 = vadd.f32 %v5743_v41, %v6938_v57  ;;  %v2617_v17 = vld [vmem:[#allocation9 + $0x350] sm:$0xff] }
 0x36d   : > { %6934 = vst [vmem:[#allocation84_spill] sm:$0xff] %v5793_v6  ;;  %3342 = vmatpush.msra.mxu3 %v2617_v17 }
 0x36e   : > { %v2798_v22 = vpop.f32.mrf.mxu2  ;;  %v2911_v13 = vpop.f32.mrf.mxu3  ;;  %6936 = vst [vmem:[#allocation67_spill] sm:$0xff] %v5803_v32 }
 0x36f   : > { %v2799_v58 = vadd.f32 %v2798_v22, %v2686_v16  ;;  %v5798_v19 = vpop.f32.mrf.mxu1  ;;  %v3027_v55 = vpop.f32.mrf.mxu0 }
 0x371   : > { %v2912_v56 = vadd.f32 %v2911_v13, %v2799_v58 }
 0x372   : > { %3139 = vmatmul.f32.gmra.mxu1 %v5295_v49  ;;  %3074 = vmatmul.f32.gmra.mxu0 %v5547_v44  ;;  %v2601_v44 = vld [vmem:[#allocation9 + $0x2d0] sm:$0xff] }
 0x373   : > { %2848 = vmatmul.f32.gmra.mxu2 %v6935_v20  ;;  %2961 = vmatmul.f32.gmra.mxu3 %v5803_v32  ;;  %v5808_v9 = vadd.f32 %v3024_v1, %v2912_v56  ;;  %v5817_v56 = vsel %vm664_vm1, %v2414_v26, %v6856_v63  ;;  %v2692_v1 = vadd.f32 %v5743_v41, %v5522_v8  ;;  %v2633_v32 = vld [vmem:[#allocation9 + $0x3d0] sm:$0xff] }
 0x374   : > { %6939 = vst [vmem:[#allocation64_spill] sm:$0xff] %v5817_v56  ;;  %3229 = vmatpush.msra.mxu2 %v2601_v44  ;;  %v2649_v8 = vld [vmem:[#allocation9 + $0x450] sm:$0xff]  ;;  %3455 = vmatpush.msra.mxu0 %v2633_v32 }
 0x375   : > { %6937 = vst [vmem:[#allocation85_spill] sm:$0xff] %v5808_v9  ;;  %3568 = vmatpush.msra.mxu1 %v2649_v8 }
 0x376   : > { %v2801_v16 = vpop.f32.mrf.mxu2  ;;  %v2914_v22 = vpop.f32.mrf.mxu3 }
 0x377   : > { %v2802_v13 = vadd.f32 %v2801_v16, %v2689_v47  ;;  %v5812_v58 = vpop.f32.mrf.mxu1  ;;  %v3030_v37 = vpop.f32.mrf.mxu0  ;;  %v2419_v47 = vrot.slane %v5558_v61, 1 }
 0x379   : > { %v2915_v6 = vadd.f32 %v2914_v22, %v2802_v13  ;;  %v6941_v13 = vld [vmem:[#allocation70_spill] sm:$0xff] }
 0x37a   : > { %3142 = vmatmul.f32.gmra.mxu1 %v5307_v27  ;;  %3077 = vmatmul.f32.gmra.mxu0 %v5564_v36  ;;  %v2418_v9 = vrot.slane %v6941_v13, 1 }
 0x37b   : > { %2851 = vmatmul.f32.gmra.mxu2 %v5520_v45  ;;  %2964 = vmatmul.f32.gmra.mxu3 %v5817_v56  ;;  %v5822_v30 = vadd.f32 %v3027_v55, %v2915_v6  ;;  %v6944_v6 = vld [vmem:[#allocation29_spill] sm:$0xff]  ;;  %v2616_v56 = vld [vmem:[#allocation9 + $0x348] sm:$0xff] }
 0x37c   : > { %v5832_v44 = vsel %vm664_vm1, %v2418_v9, %v2419_v47  ;;  %v2695_v55 = vadd.f32 %v5743_v41, %v6944_v6  ;;  %3343 = vmatpush.msra.mxu3 %v2616_v56 }
 0x37d   : > { %6940 = vst [vmem:[#allocation86_spill] sm:$0xff] %v5822_v30 }
 0x37e   : > { %v2804_v31 = vpop.f32.mrf.mxu2  ;;  %v2917_v57 = vpop.f32.mrf.mxu3  ;;  %6942 = vst [vmem:[#allocation70_spill] sm:$0xff] %v5832_v44 }
 0x37f   : > { %v2805_v16 = vadd.f32 %v2804_v31, %v2692_v1  ;;  %v5827_v26 = vpop.f32.mrf.mxu1  ;;  %v3033_v22 = vpop.f32.mrf.mxu0 }
 0x381   : > { %v2918_v36 = vadd.f32 %v2917_v57, %v2805_v16 }
 0x382   : > { %3145 = vmatmul.f32.gmra.mxu1 %v5320_v18  ;;  %3080 = vmatmul.f32.gmra.mxu0 %v5585_v33  ;;  %v2600_v33 = vld [vmem:[#allocation9 + $0x2c8] sm:$0xff] }
 0x383   : > { %2854 = vmatmul.f32.gmra.mxu2 %v6941_v13  ;;  %2967 = vmatmul.f32.gmra.mxu3 %v5832_v44  ;;  %v5837_v17 = vadd.f32 %v3030_v37, %v2918_v36  ;;  %v5846_v36 = vsel %vm664_vm1, %v2419_v47, %v6856_v63  ;;  %v2698_v37 = vadd.f32 %v5743_v41, %v5560_v21  ;;  %v2632_v44 = vld [vmem:[#allocation9 + $0x3c8] sm:$0xff] }
 0x384   : > { %6945 = vst [vmem:[#allocation29_spill] sm:$0xff] %v5846_v36  ;;  %3230 = vmatpush.msra.mxu2 %v2600_v33  ;;  %v2648_v21 = vld [vmem:[#allocation9 + $0x448] sm:$0xff]  ;;  %3456 = vmatpush.msra.mxu0 %v2632_v44 }
 0x385   : > { %6943 = vst [vmem:[#allocation87_spill] sm:$0xff] %v5837_v17  ;;  %3569 = vmatpush.msra.mxu1 %v2648_v21 }
 0x386   : > { %v2807_v1 = vpop.f32.mrf.mxu2  ;;  %v2920_v31 = vpop.f32.mrf.mxu3 }
 0x387   : > { %v2808_v57 = vadd.f32 %v2807_v1, %v2695_v55  ;;  %v5841_v16 = vpop.f32.mrf.mxu1  ;;  %v3036_v9 = vpop.f32.mrf.mxu0  ;;  %v2424_v55 = vrot.slane %v5596_v29, 1 }
 0x389   : > { %v2921_v30 = vadd.f32 %v2920_v31, %v2808_v57  ;;  %v6947_v57 = vld [vmem:[#allocation73_spill] sm:$0xff] }
 0x38a   : > { %3148 = vmatmul.f32.gmra.mxu1 %v5336_v59  ;;  %3083 = vmatmul.f32.gmra.mxu0 %v5602_v25  ;;  %v2423_v17 = vrot.slane %v6947_v57, 1 }
 0x38b   : > { %2857 = vmatmul.f32.gmra.mxu2 %v5558_v61  ;;  %2970 = vmatmul.f32.gmra.mxu3 %v5846_v36  ;;  %v5851_v32 = vadd.f32 %v3033_v22, %v2921_v30  ;;  %v6950_v30 = vld [vmem:[#allocation34_spill] sm:$0xff] }
 0x38c   : > { %v5861_v33 = vsel %vm664_vm1, %v2423_v17, %v2424_v55  ;;  %v2701_v22 = vadd.f32 %v5743_v41, %v6950_v30  ;;  %v2615_v36 = vld [vmem:[#allocation9 + $0x340] sm:$0xff] }
 0x38d   : > { %6946 = vst [vmem:[#allocation88_spill] sm:$0xff] %v5851_v32  ;;  %3344 = vmatpush.msra.mxu3 %v2615_v36  ;;  %v2598_v36 = vld [vmem:[#allocation9 + $0x2b8] sm:$0xff] }
 0x38e   : > { %v2810_v8 = vpop.f32.mrf.mxu2  ;;  %v2923_v6 = vpop.f32.mrf.mxu3  ;;  %6948 = vst [vmem:[#allocation73_spill] sm:$0xff] %v5861_v33 }
 0x38f   : > { %v2811_v1 = vadd.f32 %v2810_v8, %v2698_v37  ;;  %v5856_v47 = vpop.f32.mrf.mxu1  ;;  %v3039_v31 = vpop.f32.mrf.mxu0 }
 0x391   : > { %v2924_v25 = vadd.f32 %v2923_v6, %v2811_v1 }
 0x392   : > { %3151 = vmatmul.f32.gmra.mxu1 %v5350_v62  ;;  %3086 = vmatmul.f32.gmra.mxu0 %v5623_v42  ;;  %v2599_v42 = vld [vmem:[#allocation9 + $0x2c0] sm:$0xff] }
 0x393   : > { %2860 = vmatmul.f32.gmra.mxu2 %v6947_v57  ;;  %2973 = vmatmul.f32.gmra.mxu3 %v5861_v33  ;;  %v5866_v56 = vadd.f32 %v3036_v9, %v2924_v25  ;;  %v5875_v25 = vsel %vm664_vm1, %v2424_v55, %v6856_v63  ;;  %v2704_v9 = vadd.f32 %v5743_v41, %v5598_v43  ;;  %v2631_v33 = vld [vmem:[#allocation9 + $0x3c0] sm:$0xff] }
 0x394   : > { %6952 = vst [vmem:[#allocation90_spill] sm:$0xff] %v5875_v25  ;;  %3231 = vmatpush.msra.mxu2 %v2599_v42  ;;  %v2647_v43 = vld [vmem:[#allocation9 + $0x440] sm:$0xff]  ;;  %3457 = vmatpush.msra.mxu0 %v2631_v33  ;;  %v2612_v33 = vld [vmem:[#allocation9 + $0x328] sm:$0xff] }
 0x395   : > { %6949 = vst [vmem:[#allocation89_spill] sm:$0xff] %v5866_v56  ;;  %3570 = vmatpush.msra.mxu1 %v2647_v43  ;;  %v2628_v43 = vld [vmem:[#allocation9 + $0x3a8] sm:$0xff] }
 0x396   : > { %v2813_v37 = vpop.f32.mrf.mxu2  ;;  %v2926_v8 = vpop.f32.mrf.mxu3  ;;  %3232 = vmatpush.msra.mxu2 %v2598_v36 }
 0x397   : > { %v2814_v6 = vadd.f32 %v2813_v37, %v2701_v22  ;;  %v5870_v1 = vpop.f32.mrf.mxu1  ;;  %v3042_v17 = vpop.f32.mrf.mxu0  ;;  %v2429_v22 = vrot.slane %v5634_v48, 1 }
 0x398   : > { %6951 = vst [vmem:[#allocation34_spill] sm:$0xff] %v5870_v1 }
 0x399   : > { %v2927_v32 = vadd.f32 %v2926_v8, %v2814_v6  ;;  %v6955_v6 = vld [vmem:[#allocation75_spill] sm:$0xff]  ;;  %v5904_v36 = vsel %vm664_vm1, %v2429_v22, %v6856_v63 }
 0x39a   : > { %3154 = vmatmul.f32.gmra.mxu1 %v5365_v24  ;;  %3089 = vmatmul.f32.gmra.mxu0 %v5640_v54  ;;  %v2428_v56 = vrot.slane %v6955_v6, 1 }
 0x39b   : > { %2863 = vmatmul.f32.gmra.mxu2 %v5596_v29  ;;  %2976 = vmatmul.f32.gmra.mxu3 %v5875_v25  ;;  %v5880_v44 = vadd.f32 %v3039_v31, %v2927_v32  ;;  %v2614_v32 = vld [vmem:[#allocation9 + $0x338] sm:$0xff]  ;;  %v2629_v25 = vld [vmem:[#allocation9 + $0x3b0] sm:$0xff] }
 0x39c   : > { %v5890_v42 = vsel %vm664_vm1, %v2428_v56, %v2429_v22  ;;  %v2630_v31 = vld [vmem:[#allocation9 + $0x3b8] sm:$0xff]  ;;  %3345 = vmatpush.msra.mxu3 %v2614_v32  ;;  %v2595_v32 = vld [vmem:[#allocation9 + $0x2a0] sm:$0xff]  ;;  %v2710_v22 = vadd.f32 %v5743_v41, %v5636_v38 }
 0x39d   : > { %6953 = vst [vmem:[#allocation91_spill] sm:$0xff] %v5880_v44  ;;  %3458 = vmatpush.msra.mxu0 %v2630_v31  ;;  %v2597_v44 = vld [vmem:[#allocation9 + $0x2b0] sm:$0xff]  ;;  %v2611_v31 = vld [vmem:[#allocation9 + $0x320] sm:$0xff] }
 0x39e   : > { %v2816_v21 = vpop.f32.mrf.mxu2  ;;  %v2929_v30 = vpop.f32.mrf.mxu3  ;;  %6956 = vst [vmem:[#allocation75_spill] sm:$0xff] %v5890_v42  ;;  %3233 = vmatpush.msra.mxu2 %v2597_v44  ;;  %v6961_v44 = vld [vmem:[#allocation56_spill] sm:$0xff] }
 0x39f   : > { %v2817_v37 = vadd.f32 %v2816_v21, %v2704_v9  ;;  %v5885_v55 = vpop.f32.mrf.mxu1  ;;  %v3045_v8 = vpop.f32.mrf.mxu0  ;;  %v6958_v21 = vld [vmem:[#allocation77_spill] sm:$0xff]  ;;  %3459 = vmatpush.msra.mxu0 %v2629_v25  ;;  %v2627_v25 = vld [vmem:[#allocation9 + $0x3a0] sm:$0xff] }
 0x3a0   : > { %6954 = vst [vmem:[#allocation92_spill] sm:$0xff] %v5885_v55 }
 0x3a1   : > { %v2930_v54 = vadd.f32 %v2929_v30, %v2817_v37  ;;  %v2707_v30 = vadd.f32 %v5743_v41, %v6958_v21  ;;  %6959 = vst [vmem:[#allocation77_spill] sm:$0xff] %v5904_v36  ;;  %v6960_v21 = vld [vmem:[#allocation23_spill] sm:$0xff]  ;;  %3460 = vmatpush.msra.mxu0 %v2628_v43 }
 0x3a2   : > { %3157 = vmatmul.f32.gmra.mxu1 %v5377_v4  ;;  %3092 = vmatmul.f32.gmra.mxu0 %v5661_v10  ;;  %v2613_v10 = vld [vmem:[#allocation9 + $0x330] sm:$0xff] }
 0x3a3   : > { %2866 = vmatmul.f32.gmra.mxu2 %v6955_v6  ;;  %2979 = vmatmul.f32.gmra.mxu3 %v5890_v42  ;;  %v5895_v9 = vadd.f32 %v3042_v17, %v2930_v54  ;;  %v2596_v54 = vld [vmem:[#allocation9 + $0x2a8] sm:$0xff] }
 0x3a4   : > { %3346 = vmatpush.msra.mxu3 %v2613_v10  ;;  %3234 = vmatpush.msra.mxu2 %v2596_v54  ;;  %v1634_v10 = vadd.f32 %v6961_v44, %v6960_v21  ;;  %v2626_v54 = vld [vmem:[#allocation9 + $0x398] sm:$0xff]  ;;  %v2434_v44 = vrot.slane %v5672_v46, 1 }
 0x3a5   : > { %6957 = vst [vmem:[#allocation93_spill] sm:$0xff] %v5895_v9  ;;  %3461 = vmatpush.msra.mxu0 %v2627_v25  ;;  %v2593_v9 = vld [vmem:[#allocation9 + $0x290] sm:$0xff] }
 0x3a6   : > { %v2819_v56 = vpop.f32.mrf.mxu2  ;;  %v2932_v37 = vpop.f32.mrf.mxu3  ;;  %3347 = vmatpush.msra.mxu3 %v2612_v33  ;;  %3235 = vmatpush.msra.mxu2 %v2595_v32  ;;  %v6963_v32 = vld [vmem:[#allocation80_spill] sm:$0xff] }
 0x3a7   : > { %v2820_v55 = vadd.f32 %v2819_v56, %v2707_v30  ;;  %v5899_v42 = vpop.f32.mrf.mxu1  ;;  %v3048_v1 = vpop.f32.mrf.mxu0  ;;  %v2610_v56 = vld [vmem:[#allocation9 + $0x318] sm:$0xff]  ;;  %3462 = vmatpush.msra.mxu0 %v2626_v54  ;;  %v2607_v54 = vld [vmem:[#allocation9 + $0x300] sm:$0xff] }
 0x3a8   : > { %3348 = vmatpush.msra.mxu3 %v2611_v31  ;;  %v2625_v31 = vld [vmem:[#allocation9 + $0x390] sm:$0xff] }
 0x3a9   : > { %v2933_v17 = vadd.f32 %v2932_v37, %v2820_v55  ;;  %v2594_v55 = vld [vmem:[#allocation9 + $0x298] sm:$0xff]  ;;  %v1747_v37 = vadd.f32 %v5712_v53, %v1634_v10  ;;  %v2592_v10 = vld [vmem:[#allocation9 + $0x288] sm:$0xff]  ;;  %3463 = vmatpush.msra.mxu0 %v2625_v31 }
 0x3aa   : > { %3160 = vmatmul.f32.gmra.mxu1 %v5392_v34  ;;  %3095 = vmatmul.f32.gmra.mxu0 %v5678_v60  ;;  %v2609_v60 = vld [vmem:[#allocation9 + $0x310] sm:$0xff] }
 0x3ab   : > { %2869 = vmatmul.f32.gmra.mxu2 %v5634_v48  ;;  %2982 = vmatmul.f32.gmra.mxu3 %v5904_v36  ;;  %v5911_v30 = vadd.f32 %v3045_v8, %v2933_v17  ;;  %v1860_v38 = vadd.f32 %v5714_v11, %v1747_v37  ;;  %v2624_v11 = vld [vmem:[#allocation9 + $0x388] sm:$0xff] }
 0x3ac   : > { %3236 = vmatpush.msra.mxu2 %v2594_v55  ;;  %3349 = vmatpush.msra.mxu3 %v2610_v56  ;;  %v2608_v55 = vld [vmem:[#allocation9 + $0x308] sm:$0xff]  ;;  %v6966_v56 = vld [vmem:[#allocation58_spill] sm:$0xff] }
 0x3ad   : > { %6962 = vst [vmem:[#allocation23_spill] sm:$0xff] %v5911_v30  ;;  %v2433_v30 = vrot.slane %v6963_v32, 1  ;;  %3464 = vmatpush.msra.mxu0 %v2624_v11 }
 0x3ae   : > { %v2822_v33 = vpop.f32.mrf.mxu2  ;;  %v2935_v21 = vpop.f32.mrf.mxu3  ;;  %3237 = vmatpush.msra.mxu2 %v2593_v9  ;;  %3350 = vmatpush.msra.mxu3 %v2609_v60  ;;  %v2591_v9 = vld [vmem:[#allocation9 + $0x280] sm:$0xff]  ;;  %v2646_v60 = vld [vmem:[#allocation9 + $0x438] sm:$0xff] }
 0x3af   : > { %v2823_v8 = vadd.f32 %v2822_v33, %v2710_v22  ;;  %v5917_v17 = vpop.f32.mrf.mxu1  ;;  %v3051_v43 = vpop.f32.mrf.mxu0  ;;  %v5923_v25 = vsel %vm664_vm1, %v2433_v30, %v2434_v44  ;;  %v6965_v22 = vld [vmem:[#allocation45_spill] sm:$0xff]  ;;  %v6968_v30 = vld [vmem:[#allocation39_spill] sm:$0xff]  ;;  %3571 = vmatpush.msra.mxu1 %v2646_v60 }
 0x3b0   : > { %6964 = vst [vmem:[#allocation56_spill] sm:$0xff] %v5923_v25  ;;  %v1637_v33 = vadd.f32 %v6966_v56, %v6965_v22  ;;  %3238 = vmatpush.msra.mxu2 %v2592_v10  ;;  %3351 = vmatpush.msra.mxu3 %v2608_v55  ;;  %v2623_v22 = vld [vmem:[#allocation9 + $0x380] sm:$0xff]  ;;  %v2716_v55 = vadd.f32 %v5743_v41, %v5674_v2 }
 0x3b1   : > { %v2936_v53 = vadd.f32 %v2935_v21, %v2823_v8  ;;  %v2713_v21 = vadd.f32 %v5743_v41, %v6968_v30  ;;  %v1973_v8 = vadd.f32 %v5695_v28, %v1860_v38  ;;  %3465 = vmatpush.msra.mxu0 %v2623_v22  ;;  %v2645_v22 = vld [vmem:[#allocation9 + $0x430] sm:$0xff] }
 0x3b2   : > { %3163 = vmatmul.f32.gmra.mxu1 %v5406_v15  ;;  %3098 = vmatmul.f32.gmra.mxu0 %v5701_v39  ;;  %v1750_v39 = vadd.f32 %v5732_v0, %v1637_v33  ;;  %v5944_v0 = vsel %vm664_vm1, %v2434_v44, %v6856_v63  ;;  %v6970_v33 = vld [vmem:[#allocation19_spill] sm:$0xff] }
 0x3b3   : > { %2872 = vmatmul.f32.gmra.mxu2 %v6963_v32  ;;  %2985 = vmatmul.f32.gmra.mxu3 %v5923_v25  ;;  %v5930_v37 = vadd.f32 %v3048_v1, %v2936_v53  ;;  %v5938_v31 = vmax.f32 %v1973_v8, 0.0  ;;  %v2439_v44 = vrot.slane %v6970_v33, 1  ;;  %v6972_v8 = vld [vmem:[#allocation14_spill] sm:$0xff] }
 0x3b4   : > { %3239 = vmatpush.msra.mxu2 %v2591_v9  ;;  %3352 = vmatpush.msra.mxu3 %v2607_v54  ;;  %v1863_v10 = vadd.f32 %v5734_v52, %v1750_v39  ;;  %v6971_v54 = vld [vmem:[#allocation18_spill] sm:$0xff] }
 0x3b5   : > { %6967 = vst [vmem:[#allocation80_spill] sm:$0xff] %v5930_v37  ;;  %v2479_v52 = vrot.slane %v5938_v31, 7  ;;  %v2438_v30 = vrot.slane %v6971_v54, 1  ;;  %3572 = vmatpush.msra.mxu1 %v2645_v22  ;;  %v6977_v22 = vld [vmem:[#allocation37_spill] sm:$0xff] }
 0x3b6   : > { %v2825_v56 = vpop.f32.mrf.mxu2  ;;  %v2938_v25 = vpop.f32.mrf.mxu3  ;;  %v1976_v39 = vadd.f32 %v5718_v35, %v1863_v10  ;;  %v6974_v10 = vld [vmem:[#allocation48_spill] sm:$0xff] }
 0x3b7   : > { %v2826_v36 = vadd.f32 %v2825_v56, %v2713_v21  ;;  %v5936_v1 = vpop.f32.mrf.mxu1  ;;  %v3054_v53 = vpop.f32.mrf.mxu0  ;;  %v5963_v2 = vsel %vm535_vm0, %v6972_v8, %v2479_v52  ;;  %v5967_v35 = vsel %vm664_vm1, %v2438_v30, %v2439_v44  ;;  %v6975_v8 = vld [vmem:[#allocation60_spill] sm:$0xff] }
 0x3b8   : > { %v5959_v21 = vmax.f32 %v1976_v39, 0.0 }
 0x3b9   : > { %v2939_v28 = vadd.f32 %v2938_v25, %v2826_v36 }
 0x3ba   : > { %3166 = vmatmul.f32.gmra.mxu1 %v5421_v40  ;;  %3101 = vmatmul.f32.gmra.mxu0 %v5722_v7 }
 0x3bb   : > { %2875 = vmatmul.f32.gmra.mxu2 %v5672_v46  ;;  %2988 = vmatmul.f32.gmra.mxu3 %v5944_v0  ;;  %v5949_v38 = vadd.f32 %v3051_v43, %v2939_v28  ;;  %v2719_v28 = vadd.f32 %v5743_v41, %v6974_v10  ;;  %v2722_v10 = vadd.f32 %v5743_v41, %v6977_v22 }
 0x3bd   : > { %6969 = vst [vmem:[#allocation45_spill] sm:$0xff] %v5949_v38 }
 0x3be   : > { %v2828_v36 = vpop.f32.mrf.mxu2  ;;  %v2941_v25 = vpop.f32.mrf.mxu3 }
 0x3bf   : > { %v2829_v11 = vadd.f32 %v2828_v36, %v2716_v55  ;;  %v5956_v9 = vpop.f32.mrf.mxu1  ;;  %v3057_v60 = vpop.f32.mrf.mxu0  ;;  %v2481_v55 = vrot.slane %v5959_v21, 7 }
 0x3c1   : > { %v2942_v43 = vadd.f32 %v2941_v25, %v2829_v11  ;;  %v5980_v37 = vsel %vm535_vm0, %v2479_v52, %v2481_v55 }
 0x3c2   : > { %3169 = vmatmul.f32.gmra.mxu1 %v5435_v14  ;;  %3104 = vmatmul.f32.gmra.mxu0 %v5963_v2 }
 0x3c3   : > { %2878 = vmatmul.f32.gmra.mxu2 %v6971_v54  ;;  %2991 = vmatmul.f32.gmra.mxu3 %v5967_v35  ;;  %v5972_v56 = vadd.f32 %v3054_v53, %v2942_v43  ;;  %v5985_v53 = vsel %vm664_vm1, %v2439_v44, %v6856_v63  ;;  %v2644_v44 = vld [vmem:[#allocation9 + $0x428] sm:$0xff]  ;;  %v6980_v63 = vld [vmem:[#allocation50_spill] sm:$0xff] }
 0x3c4   : > { %3573 = vmatpush.msra.mxu1 %v2644_v44 }
 0x3c5   : > { %6973 = vst [vmem:[#allocation58_spill] sm:$0xff] %v5972_v56  ;;  %v6979_v56 = vld [vmem:[#allocation16_spill] sm:$0xff] }
 0x3c6   : > { %v2831_v39 = vpop.f32.mrf.mxu2  ;;  %v2944_v36 = vpop.f32.mrf.mxu3 }
 0x3c7   : > { %v2832_v25 = vadd.f32 %v2831_v39, %v2719_v28  ;;  %v5977_v11 = vpop.f32.mrf.mxu1  ;;  %v3060_v30 = vpop.f32.mrf.mxu0 }
 0x3c9   : > { %v2945_v38 = vadd.f32 %v2944_v36, %v2832_v25 }
 0x3ca   : > { %3172 = vmatmul.f32.gmra.mxu1 %v6975_v8  ;;  %3107 = vmatmul.f32.gmra.mxu0 %v5980_v37 }
 0x3cb   : > { %2881 = vmatmul.f32.gmra.mxu2 %v6970_v33  ;;  %2994 = vmatmul.f32.gmra.mxu3 %v5985_v53  ;;  %v5990_v43 = vadd.f32 %v3057_v60, %v2945_v38  ;;  %v6982_v60 = vld [vmem:[#allocation44_spill] sm:$0xff] }
 0x3cc   : > { %v2725_v22 = vadd.f32 %v5743_v41, %v6982_v60 }
 0x3cd   : > { %6976 = vst [vmem:[#allocation39_spill] sm:$0xff] %v5990_v43 }
 0x3ce   : > { %v2834_v28 = vpop.f32.mrf.mxu2  ;;  %v2947_v52 = vpop.f32.mrf.mxu3 }
 0x3cf   : > { %v2835_v55 = vadd.f32 %v2834_v28, %v2722_v10  ;;  %v5994_v39 = vpop.f32.mrf.mxu1  ;;  %v3063_v36 = vpop.f32.mrf.mxu0 }
 0x3d0   : > { %6978 = vst [vmem:[#allocation19_spill] sm:$0xff] %v5994_v39 }
 0x3d1   : > { %v2948_v25 = vadd.f32 %v2947_v52, %v2835_v55 }
 0x3d2   : > { %3175 = vmatmul.f32.gmra.mxu1 %v6929_v51  ;;  %3466 = vmatmul.f32.vlgmr.msra.gmra.mxu0 %v5268_v5  ;;  %v6983_v5 = vld [vmem:[#allocation62_spill] sm:$0xff] }
 0x3d3   : > { %3240 = vmatmul.f32.vlgmr.msra.gmra.mxu2 %v6979_v56  ;;  %3353 = vmatmul.f32.vlgmr.msra.gmra.mxu3 %v6980_v63  ;;  %v6000_v38 = vadd.f32 %v3060_v30, %v2948_v25  ;;  %v6984_v63 = vld [vmem:[#allocation24_spill] sm:$0xff]  ;;  %v6986_v30 = vld [vmem:[#allocation46_spill] sm:$0xff] }
 0x3d4   : > { %v2728_v25 = vadd.f32 %v5743_v41, %v6986_v30 }
 0x3d5   : > { %6981 = vst [vmem:[#allocation18_spill] sm:$0xff] %v6000_v38 }
 0x3d6   : > { %v2837_v10 = vpop.f32.mrf.mxu2  ;;  %v2950_v28 = vpop.f32.mrf.mxu3 }
 0x3d7   : > { %v2838_v43 = vadd.f32 %v2837_v10, %v2725_v22  ;;  %v6004_v39 = vpop.f32.mrf.mxu1  ;;  %v3066_v52 = vpop.f32.mrf.mxu0 }
 0x3d9   : > { %v2951_v55 = vadd.f32 %v2950_v28, %v2838_v43  ;;  %v6987_v28 = vld [vmem:[#allocation68_spill] sm:$0xff] }
 0x3da   : > { %3178 = vmatmul.f32.gmra.mxu1 %v5482_v3  ;;  %3469 = vmatmul.f32.gmra.mxu0 %v5282_v50  ;;  %v2643_v50 = vld [vmem:[#allocation9 + $0x420] sm:$0xff] }
 0x3db   : > { %3243 = vmatmul.f32.gmra.mxu2 %v6983_v5  ;;  %3356 = vmatmul.f32.gmra.mxu3 %v6984_v63  ;;  %v6010_v56 = vadd.f32 %v3063_v36, %v2951_v55  ;;  %v6988_v5 = vld [vmem:[#allocation47_spill] sm:$0xff]  ;;  %v2731_v55 = vadd.f32 %v5743_v41, %v5769_v12  ;;  %v2734_v12 = vadd.f32 %v5743_v41, %v5783_v23 }
 0x3dc   : > { %3574 = vmatpush.msra.mxu1 %v2643_v50  ;;  %v2737_v23 = vadd.f32 %v5743_v41, %v5798_v19  ;;  %v2740_v19 = vadd.f32 %v5743_v41, %v5812_v58  ;;  %v2743_v58 = vadd.f32 %v5743_v41, %v5827_v26  ;;  %v2746_v26 = vadd.f32 %v5743_v41, %v5841_v16 }
 0x3dd   : > { %6985 = vst [vmem:[#allocation48_spill] sm:$0xff] %v6010_v56  ;;  %v2749_v16 = vadd.f32 %v5743_v41, %v5856_v47 }
 0x3de   : > { %v2840_v44 = vpop.f32.mrf.mxu2  ;;  %v2953_v60 = vpop.f32.mrf.mxu3 }
 0x3df   : > { %v2841_v22 = vadd.f32 %v2840_v44, %v2728_v25  ;;  %v6014_v10 = vpop.f32.mrf.mxu1  ;;  %v3069_v38 = vpop.f32.mrf.mxu0 }
 0x3e1   : > { %v2954_v43 = vadd.f32 %v2953_v60, %v2841_v22 }
 0x3e2   : > { %3181 = vmatmul.f32.gmra.mxu1 %v6935_v20  ;;  %3472 = vmatmul.f32.gmra.mxu0 %v5295_v49  ;;  %v6990_v49 = vld [vmem:[#allocation71_spill] sm:$0xff] }
 0x3e3   : > { %3246 = vmatmul.f32.gmra.mxu2 %v6987_v28  ;;  %3359 = vmatmul.f32.gmra.mxu3 %v6988_v5  ;;  %v6020_v36 = vadd.f32 %v3066_v52, %v2954_v43  ;;  %v6991_v5 = vld [vmem:[#allocation52_spill] sm:$0xff] }
 0x3e5   : > { %6989 = vst [vmem:[#allocation60_spill] sm:$0xff] %v6020_v36 }
 0x3e6   : > { %v2843_v63 = vpop.f32.mrf.mxu2  ;;  %v2956_v30 = vpop.f32.mrf.mxu3 }
 0x3e7   : > { %v2844_v25 = vadd.f32 %v2843_v63, %v2731_v55  ;;  %v6024_v44 = vpop.f32.mrf.mxu1  ;;  %v3072_v60 = vpop.f32.mrf.mxu0 }
 0x3e9   : > { %v2957_v22 = vadd.f32 %v2956_v30, %v2844_v25  ;;  %v6993_v25 = vld [vmem:[#allocation27_spill] sm:$0xff] }
 0x3ea   : > { %3184 = vmatmul.f32.gmra.mxu1 %v5520_v45  ;;  %3475 = vmatmul.f32.gmra.mxu0 %v5307_v27  ;;  %v2642_v27 = vld [vmem:[#allocation9 + $0x418] sm:$0xff] }
 0x3eb   : > { %3249 = vmatmul.f32.gmra.mxu2 %v6990_v49  ;;  %3362 = vmatmul.f32.gmra.mxu3 %v6991_v5  ;;  %v6030_v52 = vadd.f32 %v3069_v38, %v2957_v22  ;;  %v6994_v5 = vld [vmem:[#allocation25_spill] sm:$0xff] }
 0x3ec   : > { %3575 = vmatpush.msra.mxu1 %v2642_v27 }
 0x3ed   : > { %6992 = vst [vmem:[#allocation37_spill] sm:$0xff] %v6030_v52 }
 0x3ee   : > { %v2846_v43 = vpop.f32.mrf.mxu2  ;;  %v2959_v50 = vpop.f32.mrf.mxu3 }
 0x3ef   : > { %v2847_v55 = vadd.f32 %v2846_v43, %v2734_v12  ;;  %v6034_v63 = vpop.f32.mrf.mxu1  ;;  %v3075_v36 = vpop.f32.mrf.mxu0 }
 0x3f1   : > { %v2960_v30 = vadd.f32 %v2959_v50, %v2847_v55 }
 0x3f2   : > { %3187 = vmatmul.f32.gmra.mxu1 %v6941_v13  ;;  %3478 = vmatmul.f32.gmra.mxu0 %v5320_v18  ;;  %v6996_v18 = vld [vmem:[#allocation74_spill] sm:$0xff] }
 0x3f3   : > { %3252 = vmatmul.f32.gmra.mxu2 %v6993_v25  ;;  %3365 = vmatmul.f32.gmra.mxu3 %v6994_v5  ;;  %v6040_v38 = vadd.f32 %v3072_v60, %v2960_v30  ;;  %v6997_v5 = vld [vmem:[#allocation49_spill] sm:$0xff] }
 0x3f5   : > { %6995 = vst [vmem:[#allocation16_spill] sm:$0xff] %v6040_v38 }
 0x3f6   : > { %v2849_v22 = vpop.f32.mrf.mxu2  ;;  %v2962_v12 = vpop.f32.mrf.mxu3 }
 0x3f7   : > { %v2850_v43 = vadd.f32 %v2849_v22, %v2737_v23  ;;  %v6044_v52 = vpop.f32.mrf.mxu1  ;;  %v3078_v50 = vpop.f32.mrf.mxu0 }
 0x3f9   : > { %v2963_v55 = vadd.f32 %v2962_v12, %v2850_v43  ;;  %v6999_v43 = vld [vmem:[#allocation32_spill] sm:$0xff] }
 0x3fa   : > { %3190 = vmatmul.f32.gmra.mxu1 %v5558_v61  ;;  %3481 = vmatmul.f32.gmra.mxu0 %v5336_v59  ;;  %v2641_v59 = vld [vmem:[#allocation9 + $0x410] sm:$0xff] }
 0x3fb   : > { %3255 = vmatmul.f32.gmra.mxu2 %v6996_v18  ;;  %3368 = vmatmul.f32.gmra.mxu3 %v6997_v5  ;;  %v6050_v60 = vadd.f32 %v3075_v36, %v2963_v55  ;;  %v7000_v5 = vld [vmem:[#allocation54_spill] sm:$0xff] }
 0x3fc   : > { %3576 = vmatpush.msra.mxu1 %v2641_v59 }
 0x3fd   : > { %6998 = vst [vmem:[#allocation50_spill] sm:$0xff] %v6050_v60 }
 0x3fe   : > { %v2852_v30 = vpop.f32.mrf.mxu2  ;;  %v2965_v27 = vpop.f32.mrf.mxu3 }
 0x3ff   : > { %v2853_v23 = vadd.f32 %v2852_v30, %v2740_v19  ;;  %v6054_v22 = vpop.f32.mrf.mxu1  ;;  %v3081_v38 = vpop.f32.mrf.mxu0 }
 0x401   : > { %v2966_v12 = vadd.f32 %v2965_v27, %v2853_v23 }
 0x402   : > { %3193 = vmatmul.f32.gmra.mxu1 %v6947_v57  ;;  %3484 = vmatmul.f32.gmra.mxu0 %v5350_v62  ;;  %v7002_v62 = vld [vmem:[#allocation79_spill] sm:$0xff] }
 0x403   : > { %3258 = vmatmul.f32.gmra.mxu2 %v6999_v43  ;;  %3371 = vmatmul.f32.gmra.mxu3 %v7000_v5  ;;  %v6060_v36 = vadd.f32 %v3078_v50, %v2966_v12  ;;  %v7003_v5 = vld [vmem:[#allocation26_spill] sm:$0xff] }
 0x405   : > { %7001 = vst [vmem:[#allocation44_spill] sm:$0xff] %v6060_v36 }
 0x406   : > { %v2855_v55 = vpop.f32.mrf.mxu2  ;;  %v2968_v19 = vpop.f32.mrf.mxu3 }
 0x407   : > { %v2856_v30 = vadd.f32 %v2855_v55, %v2743_v58  ;;  %v6064_v60 = vpop.f32.mrf.mxu1  ;;  %v3084_v27 = vpop.f32.mrf.mxu0 }
 0x409   : > { %v2969_v23 = vadd.f32 %v2968_v19, %v2856_v30  ;;  %v7005_v30 = vld [vmem:[#allocation83_spill] sm:$0xff] }
 0x40a   : > { %3196 = vmatmul.f32.gmra.mxu1 %v5596_v29  ;;  %3487 = vmatmul.f32.gmra.mxu0 %v5365_v24  ;;  %v2640_v24 = vld [vmem:[#allocation9 + $0x408] sm:$0xff] }
 0x40b   : > { %3261 = vmatmul.f32.gmra.mxu2 %v7002_v62  ;;  %3374 = vmatmul.f32.gmra.mxu3 %v7003_v5  ;;  %v6070_v50 = vadd.f32 %v3081_v38, %v2969_v23  ;;  %v7006_v5 = vld [vmem:[#allocation51_spill] sm:$0xff] }
 0x40c   : > { %3577 = vmatpush.msra.mxu1 %v2640_v24 }
 0x40d   : > { %7004 = vst [vmem:[#allocation62_spill] sm:$0xff] %v6070_v50 }
 0x40e   : > { %v2858_v12 = vpop.f32.mrf.mxu2  ;;  %v2971_v59 = vpop.f32.mrf.mxu3 }
 0x40f   : > { %v2859_v58 = vadd.f32 %v2858_v12, %v2746_v26  ;;  %v6074_v55 = vpop.f32.mrf.mxu1  ;;  %v3087_v36 = vpop.f32.mrf.mxu0 }
 0x411   : > { %v2972_v19 = vadd.f32 %v2971_v59, %v2859_v58 }
 0x412   : > { %3199 = vmatmul.f32.gmra.mxu1 %v6955_v6  ;;  %3490 = vmatmul.f32.gmra.mxu0 %v5377_v4  ;;  %v7008_v4 = vld [vmem:[#allocation78_spill] sm:$0xff] }
 0x413   : > { %3264 = vmatmul.f32.gmra.mxu2 %v7005_v30  ;;  %3377 = vmatmul.f32.gmra.mxu3 %v7006_v5  ;;  %v6080_v38 = vadd.f32 %v3084_v27, %v2972_v19  ;;  %v7009_v5 = vld [vmem:[#allocation28_spill] sm:$0xff]  ;;  %v7011_v19 = vld [vmem:[#allocation34_spill] sm:$0xff] }
 0x414   : > { %v2752_v47 = vadd.f32 %v5743_v41, %v7011_v19 }
 0x415   : > { %7007 = vst [vmem:[#allocation24_spill] sm:$0xff] %v6080_v38 }
 0x416   : > { %v2861_v23 = vpop.f32.mrf.mxu2  ;;  %v2974_v26 = vpop.f32.mrf.mxu3 }
 0x417   : > { %v2862_v12 = vadd.f32 %v2861_v23, %v2749_v16  ;;  %v6084_v50 = vpop.f32.mrf.mxu1  ;;  %v3090_v59 = vpop.f32.mrf.mxu0 }
 0x419   : > { %v2975_v58 = vadd.f32 %v2974_v26, %v2862_v12  ;;  %v7013_v12 = vld [vmem:[#allocation66_spill] sm:$0xff] }
 0x41a   : > { %3202 = vmatmul.f32.gmra.mxu1 %v5634_v48  ;;  %3493 = vmatmul.f32.gmra.mxu0 %v5392_v34  ;;  %v2639_v34 = vld [vmem:[#allocation9 + $0x400] sm:$0xff] }
 0x41b   : > { %3267 = vmatmul.f32.gmra.mxu2 %v7008_v4  ;;  %3380 = vmatmul.f32.gmra.mxu3 %v7009_v5  ;;  %v6090_v27 = vadd.f32 %v3087_v36, %v2975_v58  ;;  %v7014_v5 = vld [vmem:[#allocation53_spill] sm:$0xff]  ;;  %v7016_v58 = vld [vmem:[#allocation92_spill] sm:$0xff] }
 0x41c   : > { %3578 = vmatpush.msra.mxu1 %v2639_v34  ;;  %v2755_v19 = vadd.f32 %v5743_v41, %v7016_v58 }
 0x41d   : > { %7010 = vst [vmem:[#allocation46_spill] sm:$0xff] %v6090_v27 }
 0x41e   : > { %v2864_v24 = vpop.f32.mrf.mxu2  ;;  %v2977_v38 = vpop.f32.mrf.mxu3 }
 0x41f   : > { %v2865_v16 = vadd.f32 %v2864_v24, %v2752_v47  ;;  %v6094_v23 = vpop.f32.mrf.mxu1  ;;  %v3093_v56 = vpop.f32.mrf.mxu0 }
 0x420   : > { %7012 = vst [vmem:[#allocation68_spill] sm:$0xff] %v6094_v23 }
 0x421   : > { %v2978_v26 = vadd.f32 %v2977_v38, %v2865_v16 }
 0x422   : > { %3205 = vmatmul.f32.gmra.mxu1 %v6963_v32  ;;  %3496 = vmatmul.f32.gmra.mxu0 %v5406_v15  ;;  %v7017_v15 = vld [vmem:[#allocation38_spill] sm:$0xff] }
 0x423   : > { %3270 = vmatmul.f32.gmra.mxu2 %v7013_v12  ;;  %3383 = vmatmul.f32.gmra.mxu3 %v7014_v5  ;;  %v6100_v36 = vadd.f32 %v3090_v59, %v2978_v26  ;;  %v7018_v5 = vld [vmem:[#allocation30_spill] sm:$0xff]  ;;  %v2758_v26 = vadd.f32 %v5743_v41, %v5899_v42  ;;  %v2761_v42 = vadd.f32 %v5743_v41, %v5917_v17 }
 0x425   : > { %7015 = vst [vmem:[#allocation47_spill] sm:$0xff] %v6100_v36  ;;  %v7021_v36 = vld [vmem:[#allocation55_spill] sm:$0xff] }
 0x426   : > { %v2867_v47 = vpop.f32.mrf.mxu2  ;;  %v2980_v24 = vpop.f32.mrf.mxu3 }
 0x427   : > { %v2868_v27 = vadd.f32 %v2867_v47, %v2755_v19  ;;  %v6104_v23 = vpop.f32.mrf.mxu1  ;;  %v3096_v16 = vpop.f32.mrf.mxu0 }
 0x429   : > { %v2981_v38 = vadd.f32 %v2980_v24, %v2868_v27  ;;  %v7020_v24 = vld [vmem:[#allocation40_spill] sm:$0xff] }
 0x42a   : > { %3208 = vmatmul.f32.gmra.mxu1 %v5672_v46  ;;  %3499 = vmatmul.f32.gmra.mxu0 %v5421_v40 }
 0x42b   : > { %3273 = vmatmul.f32.gmra.mxu2 %v7017_v15  ;;  %3386 = vmatmul.f32.gmra.mxu3 %v7018_v5  ;;  %v6110_v59 = vadd.f32 %v3093_v56, %v2981_v38 }
 0x42d   : > { %7019 = vst [vmem:[#allocation71_spill] sm:$0xff] %v6110_v59 }
 0x42e   : > { %v2870_v34 = vpop.f32.mrf.mxu2  ;;  %v2983_v58 = vpop.f32.mrf.mxu3 }
 0x42f   : > { %v2871_v19 = vadd.f32 %v2870_v34, %v2758_v26  ;;  %v6114_v47 = vpop.f32.mrf.mxu1  ;;  %v3099_v40 = vpop.f32.mrf.mxu0 }
 0x431   : > { %v2984_v27 = vadd.f32 %v2983_v58, %v2871_v19  ;;  %v7024_v19 = vld [vmem:[#allocation57_spill] sm:$0xff] }
 0x432   : > { %3211 = vmatmul.f32.gmra.mxu1 %v6971_v54  ;;  %3502 = vmatmul.f32.gmra.mxu0 %v5435_v14  ;;  %v7023_v14 = vld [vmem:[#allocation20_spill] sm:$0xff] }
 0x433   : > { %3276 = vmatmul.f32.gmra.mxu2 %v7020_v24  ;;  %3389 = vmatmul.f32.gmra.mxu3 %v7021_v36  ;;  %v6120_v56 = vadd.f32 %v3096_v16, %v2984_v27  ;;  %v2764_v16 = vadd.f32 %v5743_v41, %v5936_v1  ;;  %v4003_v41 = vld [vmem:[%s6512_s4] ss:$0 sm:$0xff] }
 0x434   : > { %v2767_v1 = vadd.f32 %v4003_v41, %v5956_v9 }
 0x435   : > { %7022 = vst [vmem:[#allocation52_spill] sm:$0xff] %v6120_v56 }
 0x436   : > { %v2873_v38 = vpop.f32.mrf.mxu2  ;;  %v2986_v5 = vpop.f32.mrf.mxu3 }
 0x437   : > { %v2874_v26 = vadd.f32 %v2873_v38, %v2761_v42  ;;  %v6124_v34 = vpop.f32.mrf.mxu1  ;;  %v3102_v17 = vpop.f32.mrf.mxu0 }
 0x439   : > { %v2987_v58 = vadd.f32 %v2986_v5, %v2874_v26  ;;  %v7027_v26 = vld [vmem:[#allocation59_spill] sm:$0xff] }
 0x43a   : > { %3214 = vmatmul.f32.gmra.mxu1 %v6970_v33  ;;  %3505 = vmatmul.f32.gmra.mxu0 %v6975_v8  ;;  %v7026_v8 = vld [vmem:[#allocation21_spill] sm:$0xff] }
 0x43b   : > { %3279 = vmatmul.f32.gmra.mxu2 %v7023_v14  ;;  %3392 = vmatmul.f32.gmra.mxu3 %v7024_v19  ;;  %v6130_v36 = vadd.f32 %v3099_v40, %v2987_v58 }
 0x43d   : > { %7025 = vst [vmem:[#allocation27_spill] sm:$0xff] %v6130_v36 }
 0x43e   : > { %v2876_v27 = vpop.f32.mrf.mxu2  ;;  %v2989_v56 = vpop.f32.mrf.mxu3 }
 0x43f   : > { %v2877_v42 = vadd.f32 %v2876_v27, %v2764_v16  ;;  %v6134_v38 = vpop.f32.mrf.mxu1  ;;  %v3105_v27 = vpop.f32.mrf.mxu0 }
 0x441   : > { %v2990_v5 = vadd.f32 %v2989_v56, %v2877_v42 }
 0x442   : > { %3217 = vmatmul.f32.gmra.mxu1 %v5938_v31  ;;  %3508 = vmatmul.f32.gmra.mxu0 %v6929_v51  ;;  %v7029_v51 = vld [vmem:[#allocation22_spill] sm:$0xff] }
 0x443   : > { %3282 = vmatmul.f32.gmra.mxu2 %v7026_v8  ;;  %3395 = vmatmul.f32.gmra.mxu3 %v7027_v26  ;;  %v6140_v40 = vadd.f32 %v3102_v17, %v2990_v5  ;;  %v7030_v17 = vld [vmem:[#allocation65_spill] sm:$0xff]  ;;  %v2770_v26 = vadd.f32 %v4003_v41, %v5977_v11 }
 0x444   : > { %v7036_v11 = vld [vmem:[#allocation61_spill] sm:$0xff] }
 0x445   : > { %7028 = vst [vmem:[#allocation25_spill] sm:$0xff] %v6140_v40 }
 0x446   : > { %v2879_v58 = vpop.f32.mrf.mxu2  ;;  %v2992_v19 = vpop.f32.mrf.mxu3 }
 0x447   : > { %v2880_v16 = vadd.f32 %v2879_v58, %v2767_v1  ;;  %v6146_v56 = vpop.f32.mrf.mxu1  ;;  %v3108_v59 = vpop.f32.mrf.mxu0 }
 0x449   : > { %v2993_v42 = vadd.f32 %v2992_v19, %v2880_v16  ;;  %v7033_v19 = vld [vmem:[#allocation17_spill] sm:$0xff] }
 0x44a   : > { %3220 = vmatmul.f32.gmra.mxu1 %v5959_v21  ;;  %3511 = vmatmul.f32.gmra.mxu0 %v5482_v3  ;;  %v7032_v3 = vld [vmem:[#allocation33_spill] sm:$0xff] }
 0x44b   : > { %3285 = vmatmul.f32.gmra.mxu2 %v7029_v51  ;;  %3398 = vmatmul.f32.gmra.mxu3 %v7030_v17  ;;  %v6152_v5 = vadd.f32 %v3105_v27, %v2993_v42 }
 0x44d   : > { %7031 = vst [vmem:[#allocation74_spill] sm:$0xff] %v6152_v5 }
 0x44e   : > { %v2882_v9 = vpop.f32.mrf.mxu2  ;;  %v2995_v1 = vpop.f32.mrf.mxu3 }
 0x44f   : > { %v2883_v40 = vadd.f32 %v2882_v9, %v2770_v26  ;;  %v6155_v36 = vpop.f32.mrf.mxu1  ;;  %v6199_v9 = vpop.f32.mrf.mxu0 }
 0x451   : > { %v2996_v58 = vadd.f32 %v2995_v1, %v2883_v40  ;;  %v7037_v40 = vld [vmem:[#allocation69_spill] sm:$0xff] }
 0x452   : > { %3579 = vmatmul.f32.vlgmr.msra.gmra.mxu1 %v6987_v28  ;;  %3514 = vmatmul.f32.gmra.mxu0 %v6935_v20  ;;  %v7039_v20 = vld [vmem:[#allocation67_spill] sm:$0xff]  ;;  %v7040_v28 = vld [vmem:[#allocation72_spill] sm:$0xff] }
 0x453   : > { %3288 = vmatmul.f32.gmra.mxu2 %v7032_v3  ;;  %3401 = vmatmul.f32.gmra.mxu3 %v7033_v19  ;;  %v6161_v16 = vadd.f32 %v3108_v59, %v2996_v58  ;;  %v7054_v58 = vld [vmem:[#allocation90_spill] sm:$0xff] }
 0x455   : > { %7034 = vst [vmem:[#allocation49_spill] sm:$0xff] %v6161_v16 }
 0x456   : > { %v6201_v1 = vpop.f32.mrf.mxu2 }
 0x457   : > { %v6163_v27 = vpop.f32.mrf.mxu1 }
 0x458   : > { %7035 = vst [vmem:[#allocation32_spill] sm:$0xff] %v6163_v27 }
 0x45a   : > { %3582 = vmatmul.f32.gmra.mxu1 %v6990_v49  ;;  %3517 = vmatmul.f32.gmra.mxu0 %v5520_v45  ;;  %v7042_v45 = vld [vmem:[#allocation64_spill] sm:$0xff]  ;;  %v7043_v49 = vld [vmem:[#allocation31_spill] sm:$0xff] }
 0x45b   : > { %3291 = vmatmul.f32.gmra.mxu2 %v7036_v11  ;;  %3404 = vmatmul.f32.gmra.mxu3 %v7037_v40 }
 0x45e   : > { %v6213_v19 = vpop.f32.mrf.mxu2 }
 0x45f   : > { %v6169_v41 = vpop.f32.mrf.mxu1 }
 0x460   : > { %7038 = vst [vmem:[#allocation54_spill] sm:$0xff] %v6169_v41 }
 0x462   : > { %3585 = vmatmul.f32.gmra.mxu1 %v6993_v25  ;;  %3520 = vmatmul.f32.gmra.mxu0 %v6941_v13  ;;  %v7045_v13 = vld [vmem:[#allocation70_spill] sm:$0xff]  ;;  %v7046_v25 = vld [vmem:[#allocation76_spill] sm:$0xff] }
 0x463   : > { %3294 = vmatmul.f32.gmra.mxu2 %v7039_v20  ;;  %3407 = vmatmul.f32.gmra.mxu3 %v7040_v28 }
 0x467   : > { %v6175_v59 = vpop.f32.mrf.mxu1 }
 0x468   : > { %7041 = vst [vmem:[#allocation79_spill] sm:$0xff] %v6175_v59 }
 0x46a   : > { %3588 = vmatmul.f32.gmra.mxu1 %v6996_v18  ;;  %3523 = vmatmul.f32.gmra.mxu0 %v5558_v61  ;;  %v7048_v61 = vld [vmem:[#allocation29_spill] sm:$0xff] }
 0x46b   : > { %3297 = vmatmul.f32.gmra.mxu2 %v7042_v45  ;;  %3410 = vmatmul.f32.gmra.mxu3 %v7043_v49  ;;  %v7049_v18 = vld [vmem:[#allocation81_spill] sm:$0xff]  ;;  %v7057_v49 = vld [vmem:[#allocation75_spill] sm:$0xff] }
 0x46f   : > { %v6181_v42 = vpop.f32.mrf.mxu1 }
 0x470   : > { %7044 = vst [vmem:[#allocation26_spill] sm:$0xff] %v6181_v42 }
 0x472   : > { %3591 = vmatmul.f32.gmra.mxu1 %v6999_v43  ;;  %3526 = vmatmul.f32.gmra.mxu0 %v6947_v57  ;;  %v7051_v57 = vld [vmem:[#allocation73_spill] sm:$0xff]  ;;  %v7052_v43 = vld [vmem:[#allocation42_spill] sm:$0xff] }
 0x473   : > { %3300 = vmatmul.f32.gmra.mxu2 %v7045_v13  ;;  %3413 = vmatmul.f32.gmra.mxu3 %v7046_v25 }
 0x477   : > { %v6187_v17 = vpop.f32.mrf.mxu1 }
 0x478   : > { %7047 = vst [vmem:[#allocation83_spill] sm:$0xff] %v6187_v17 }
 0x47a   : > { %3594 = vmatmul.f32.gmra.mxu1 %v7002_v62  ;;  %3529 = vmatmul.f32.gmra.mxu0 %v5596_v29  ;;  %v6203_v62 = vpop.f32.mrf.mxu3 }
 0x47b   : > { %3303 = vmatmul.f32.gmra.mxu2 %v7048_v61  ;;  %3416 = vmatmul.f32.gmra.mxu3 %v7049_v18  ;;  %v6227_v18 = vpop.f32.mrf.mxu2 }
 0x47f   : > { %v6193_v26 = vpop.f32.mrf.mxu1 }
 0x480   : > { %7050 = vst [vmem:[#allocation51_spill] sm:$0xff] %v6193_v26 }
 0x482   : > { %3597 = vmatmul.f32.gmra.mxu1 %v7005_v30  ;;  %3532 = vmatmul.f32.gmra.mxu0 %v6955_v6  ;;  %v7055_v30 = vld [vmem:[#allocation82_spill] sm:$0xff]  ;;  %v6211_v6 = vpop.f32.mrf.mxu0  ;;  %v6215_v40 = vpop.f32.mrf.mxu3 }
 0x483   : > { %3306 = vmatmul.f32.gmra.mxu2 %v7051_v57  ;;  %3419 = vmatmul.f32.gmra.mxu3 %v7052_v43 }
 0x487   : > { %v6205_v29 = vpop.f32.mrf.mxu1 }
 0x488   : > { %7053 = vst [vmem:[#allocation78_spill] sm:$0xff] %v6205_v29 }
 0x48a   : > { %3600 = vmatmul.f32.gmra.mxu1 %v7008_v4  ;;  %3535 = vmatmul.f32.gmra.mxu0 %v5634_v48  ;;  %v7058_v4 = vld [vmem:[#allocation63_spill] sm:$0xff]  ;;  %v6225_v25 = vpop.f32.mrf.mxu0  ;;  %v6229_v43 = vpop.f32.mrf.mxu3 }
 0x48b   : > { %3309 = vmatmul.f32.gmra.mxu2 %v7054_v58  ;;  %3422 = vmatmul.f32.gmra.mxu3 %v7055_v30  ;;  %v7060_v30 = vld [vmem:[#allocation77_spill] sm:$0xff] }
 0x48f   : > { %v6217_v28 = vpop.f32.mrf.mxu1 }
 0x490   : > { %7056 = vst [vmem:[#allocation28_spill] sm:$0xff] %v6217_v28 }
 0x492   : > { %3603 = vmatmul.f32.gmra.mxu1 %v7013_v12  ;;  %3538 = vmatmul.f32.gmra.mxu0 %v6963_v32  ;;  %v7061_v12 = vld [vmem:[#allocation41_spill] sm:$0xff]  ;;  %v6237_v16 = vpop.f32.mrf.mxu0  ;;  %v6243_v5 = vpop.f32.mrf.mxu3 }
 0x493   : > { %3312 = vmatmul.f32.gmra.mxu2 %v7057_v49  ;;  %3425 = vmatmul.f32.gmra.mxu3 %v7058_v4  ;;  %v6239_v4 = vpop.f32.mrf.mxu2 }
 0x497   : > { %v6223_v48 = vpop.f32.mrf.mxu1 }
 0x498   : > { %7059 = vst [vmem:[#allocation34_spill] sm:$0xff] %v6223_v48  ;;  %v7063_v48 = vld [vmem:[#allocation56_spill] sm:$0xff] }
 0x49a   : > { %3606 = vmatmul.f32.gmra.mxu1 %v7017_v15  ;;  %3541 = vmatmul.f32.gmra.mxu0 %v5672_v46  ;;  %v7064_v15 = vld [vmem:[#allocation36_spill] sm:$0xff] }
 0x49b   : > { %3315 = vmatmul.f32.gmra.mxu2 %v7060_v30  ;;  %3428 = vmatmul.f32.gmra.mxu3 %v7061_v12  ;;  %v6253_v12 = vpop.f32.mrf.mxu0 }
 0x49f   : > { %v6235_v32 = vpop.f32.mrf.mxu1 }
 0x4a0   : > { %7062 = vst [vmem:[#allocation66_spill] sm:$0xff] %v6235_v32 }
 0x4a2   : > { %3609 = vmatmul.f32.gmra.mxu1 %v7020_v24  ;;  %3544 = vmatmul.f32.gmra.mxu0 %v6971_v54  ;;  %v6255_v24 = vpop.f32.mrf.mxu2  ;;  %v6257_v54 = vpop.f32.mrf.mxu3 }
 0x4a3   : > { %3318 = vmatmul.f32.gmra.mxu2 %v7063_v48  ;;  %3431 = vmatmul.f32.gmra.mxu3 %v7064_v15 }
 0x4a7   : > { %v6247_v46 = vpop.f32.mrf.mxu1 }
 0x4a8   : > { %7065 = vst [vmem:[#allocation53_spill] sm:$0xff] %v6247_v46  ;;  %v2486_v46 = vrot.slane %v5938_v31, 1 }
 0x4aa   : > { %3612 = vmatmul.f32.gmra.mxu1 %v7023_v14  ;;  %3547 = vmatmul.f32.gmra.mxu0 %v6970_v33  ;;  %v6265_v33 = vpop.f32.mrf.mxu0  ;;  %v6267_v14 = vpop.f32.mrf.mxu2 }
 0x4ab   : > { %3321 = vmatmul.f32.gmra.mxu2 %v5944_v0  ;;  %3434 = vmatmul.f32.gmra.mxu3 %v5722_v7  ;;  %v6269_v7 = vpop.f32.mrf.mxu3 }
 0x4af   : > { %v6259_v32 = vpop.f32.mrf.mxu1 }
 0x4b0   : > { %7066 = vst [vmem:[#allocation92_spill] sm:$0xff] %v6259_v32 }
 0x4b2   : > { %3615 = vmatmul.f32.gmra.mxu1 %v7026_v8  ;;  %3550 = vmatmul.f32.gmra.mxu0 %v5938_v31  ;;  %v2487_v8 = vrot.slane %v5959_v21, 1  ;;  %v6283_v28 = vpop.f32.mrf.mxu2 }
 0x4b3   : > { %3324 = vmatmul.f32.gmra.mxu2 %v5967_v35  ;;  %3437 = vmatmul.f32.gmra.mxu3 %v5963_v2  ;;  %v6280_v2 = vpop.f32.mrf.mxu0  ;;  %v6285_v29 = vpop.f32.mrf.mxu3 }
 0x4b7   : > { %v6271_v15 = vpop.f32.mrf.mxu1 }
 0x4b8   : > { %7067 = vst [vmem:[#allocation38_spill] sm:$0xff] %v6271_v15  ;;  %v7069_v15 = vmov 0.0  }
 0x4ba   : > { %3618 = vmatmul.f32.gmra.mxu1 %v7029_v51  ;;  %3553 = vmatmul.f32.gmra.mxu0 %v5959_v21  ;;  %v6289_v51 = vsel %vm664_vm1, %v2486_v46, %v2487_v8  ;;  %v7071_v21 = vld [vmem:[#allocation43_spill] sm:$0xff]  ;;  %v6308_v41 = vpop.f32.mrf.mxu2 }
 0x4bb   : > { %3327 = vmatmul.f32.gmra.mxu2 %v5985_v53  ;;  %3440 = vmatmul.f32.gmra.mxu3 %v5980_v37  ;;  %v7070_v37 = vld [vmem:[#allocation14_spill] sm:$0xff]  ;;  %v6300_v59 = vpop.f32.mrf.mxu0 }
 0x4bf   : > { %v6278_v32 = vpop.f32.mrf.mxu1 }
 0x4c0   : > { %7068 = vst [vmem:[#allocation30_spill] sm:$0xff] %v6278_v32  ;;  %v7072_v32 = vld [vmem:[#allocation19_spill] sm:$0xff] }
 0x4c1   : > { %v3129_v26 = vadd.f32 %v7072_v32, %v7071_v21  ;;  %v6310_v32 = vpop.f32.mrf.mxu3 }
 0x4c2   : > { %3621 = vmatmul.f32.gmra.mxu1 %v7032_v3  ;;  %3556 = vmatmul.f32.gmra.mxu0 %v7069_v15  ;;  %v7074_v3 = vld [vmem:[#allocation35_spill] sm:$0xff] }
 0x4c3   : > { %3330 = vmatmul.f32.gmra.mxu2 %v6289_v51  ;;  %3443 = vmatmul.f32.gmra.mxu3 %v7070_v37  ;;  %v3242_v31 = vadd.f32 %v6201_v1, %v3129_v26  ;;  %v6305_v46 = vsel %vm664_vm1, %v2487_v8, %v7074_v3  ;;  %v7075_v26 = vld [vmem:[#allocation15_spill] sm:$0xff] }
 0x4c4   : > { %v3132_v1 = vadd.f32 %v6004_v39, %v7075_v26  ;;  %v6327_v39 = vpop.f32.mrf.mxu2 }
 0x4c5   : > { %v3355_v42 = vadd.f32 %v6203_v62, %v3242_v31 }
 0x4c7   : > { %v6297_v17 = vpop.f32.mrf.mxu1  ;;  %v3468_v62 = vadd.f32 %v6199_v9, %v3355_v42 }
 0x4c8   : > { %7073 = vst [vmem:[#allocation40_spill] sm:$0xff] %v6297_v17  ;;  %v7076_v17 = vld [vmem:[#allocation84_spill] sm:$0xff] }
 0x4c9   : > { %v3135_v27 = vadd.f32 %v6014_v10, %v7076_v17  ;;  %v6333_v10 = vpop.f32.mrf.mxu3  ;;  %v7077_v17 = vld [vmem:[#allocation85_spill] sm:$0xff] }
 0x4ca   : > { %3624 = vmatmul.f32.gmra.mxu1 %v7036_v11  ;;  %3559 = vmatmul.f32.gmra.mxu0 %v7069_v15  ;;  %v3245_v11 = vadd.f32 %v6213_v19, %v3132_v1  ;;  %v3138_v26 = vadd.f32 %v6024_v44, %v7077_v17 }
 0x4cb   : > { %3333 = vmatmul.f32.gmra.mxu2 %v6305_v46  ;;  %3446 = vmatmul.f32.gmra.mxu3 %v7070_v37  ;;  %v3248_v42 = vadd.f32 %v6227_v18, %v3135_v27 }
 0x4cc   : > { %v3358_v31 = vadd.f32 %v6215_v40, %v3245_v11  ;;  %v3251_v1 = vadd.f32 %v6239_v4, %v3138_v26  ;;  %v6339_v11 = vpop.f32.mrf.mxu0 }
 0x4cd   : > { %v3361_v37 = vadd.f32 %v6229_v43, %v3248_v42 }
 0x4ce   : > { %v3471_v9 = vadd.f32 %v6211_v6, %v3358_v31  ;;  %v6342_v6 = vpop.f32.mrf.mxu2 }
 0x4cf   : > { %v3580_v21 = vpop.f32.mrf.mxu1  ;;  %v3474_v27 = vadd.f32 %v6225_v25, %v3361_v37 }
 0x4d0   : > { %v3581_v8 = vadd.f32 %v3580_v21, %v3468_v62  ;;  %v3364_v62 = vadd.f32 %v6243_v5, %v3251_v1  ;;  %v7078_v21 = vld [vmem:[#allocation86_spill] sm:$0xff]  ;;  %v7080_v1 = vld [vmem:[#allocation88_spill] sm:$0xff] }
 0x4d1   : > { %v3141_v44 = vadd.f32 %v6034_v63, %v7078_v21  ;;  %v7079_v63 = vld [vmem:[#allocation87_spill] sm:$0xff] }
 0x4d2   : > { %v3676_v15 = vmax.f32 %v3581_v8, 0.0  ;;  %3627 = vmatmul.f32.gmra.mxu1 %v7039_v20  ;;  %v6349_v8 = vpop.f32.mrf.mxu3  ;;  %v3477_v25 = vadd.f32 %v6237_v16, %v3364_v62 }
 0x4d3   : > { %v3254_v4 = vadd.f32 %v6255_v24, %v3141_v44 }
 0x4d4   : > { %3708 = vst [vmem:[%s6324_s30] sm:$0xff] %v3676_v15  ;;  %v6353_v15 = vpop.f32.mrf.mxu0 }
 0x4d5   : > { %v3367_v5 = vadd.f32 %v6257_v54, %v3254_v4 }
 0x4d7   : > { %v3583_v19 = vpop.f32.mrf.mxu1  ;;  %v3480_v16 = vadd.f32 %v6253_v12, %v3367_v5 }
 0x4d8   : > { %v3584_v40 = vadd.f32 %v3583_v19, %v3471_v9  ;;  %v6355_v9 = vpop.f32.mrf.mxu2  ;;  %v3144_v19 = vadd.f32 %v6044_v52, %v7079_v63  ;;  %v3147_v52 = vadd.f32 %v6054_v22, %v7080_v1  ;;  %v7085_v1 = vld [vmem:[#allocation68_spill] sm:$0xff] }
 0x4da   : > { %v3677_v20 = vmax.f32 %v3584_v40, 0.0  ;;  %3630 = vmatmul.f32.gmra.mxu1 %v7042_v45  ;;  %v3257_v24 = vadd.f32 %v6267_v14, %v3144_v19  ;;  %v3384_v40 = vpop.f32.mrf.mxu3  ;;  %v3260_v14 = vadd.f32 %v6283_v28, %v3147_v52 }
 0x4dc   : > { %3709 = vst [vmem:[%s6324_s30 + $0x8] sm:$0xff] %v3677_v20  ;;  %v3370_v17 = vadd.f32 %v6269_v7, %v3257_v24  ;;  %v6365_v26 = vpop.f32.mrf.mxu0  ;;  %v3373_v7 = vadd.f32 %v6285_v29, %v3260_v14 }
 0x4de   : > { %v3483_v12 = vadd.f32 %v6265_v33, %v3370_v17  ;;  %v3486_v28 = vadd.f32 %v6280_v2, %v3373_v7 }
 0x4df   : > { %v3586_v18 = vpop.f32.mrf.mxu1 }
 0x4e0   : > { %v3587_v43 = vadd.f32 %v3586_v18, %v3474_v27 }
 0x4e2   : > { %v3678_v45 = vmax.f32 %v3587_v43, 0.0  ;;  %3633 = vmatmul.f32.gmra.mxu1 %v7045_v13  ;;  %v3387_v43 = vpop.f32.mrf.mxu3 }
 0x4e4   : > { %3710 = vst [vmem:[%s6324_s30 + $0x10] sm:$0xff] %v3678_v45  ;;  %v7081_v45 = vld [vmem:[#allocation89_spill] sm:$0xff]  ;;  %v3500_v21 = vpop.f32.mrf.mxu0 }
 0x4e7   : > { %v3589_v31 = vpop.f32.mrf.mxu1 }
 0x4e8   : > { %v3590_v42 = vadd.f32 %v3589_v31, %v3477_v25 }
 0x4ea   : > { %v3679_v13 = vmax.f32 %v3590_v42, 0.0  ;;  %3636 = vmatmul.f32.gmra.mxu1 %v7048_v61  ;;  %v3274_v61 = vpop.f32.mrf.mxu2  ;;  %v3390_v31 = vpop.f32.mrf.mxu3 }
 0x4ec   : > { %3711 = vst [vmem:[%s6324_s30 + $0x18] sm:$0xff] %v3679_v13  ;;  %v3503_v5 = vpop.f32.mrf.mxu0 }
 0x4ef   : > { %v3592_v37 = vpop.f32.mrf.mxu1 }
 0x4f0   : > { %v3593_v20 = vadd.f32 %v3592_v37, %v3480_v16 }
 0x4f2   : > { %v3680_v54 = vmax.f32 %v3593_v20, 0.0  ;;  %3639 = vmatmul.f32.gmra.mxu1 %v7051_v57  ;;  %v3150_v57 = vadd.f32 %v6064_v60, %v7081_v45  ;;  %v3277_v22 = vpop.f32.mrf.mxu2 }
 0x4f4   : > { %3712 = vst [vmem:[%s6324_s30 + $0x20] sm:$0xff] %v3680_v54  ;;  %v3263_v44 = vadd.f32 %v6308_v41, %v3150_v57 }
 0x4f6   : > { %v3376_v25 = vadd.f32 %v6310_v32, %v3263_v44 }
 0x4f7   : > { %v3595_v27 = vpop.f32.mrf.mxu1 }
 0x4f8   : > { %v3596_v18 = vadd.f32 %v3595_v27, %v3483_v12  ;;  %v3489_v41 = vadd.f32 %v6300_v59, %v3376_v25  ;;  %v3506_v59 = vpop.f32.mrf.mxu0 }
 0x4fa   : > { %v3681_v62 = vmax.f32 %v3596_v18, 0.0  ;;  %3642 = vmatmul.f32.gmra.mxu1 %v7054_v58  ;;  %v7082_v58 = vld [vmem:[#allocation91_spill] sm:$0xff]  ;;  %v3280_v13 = vpop.f32.mrf.mxu2 }
 0x4fb   : > { %v3153_v42 = vadd.f32 %v6074_v55, %v7082_v58  ;;  %v3393_v55 = vpop.f32.mrf.mxu3 }
 0x4fc   : > { %3713 = vst [vmem:[%s6324_s30 + $0x28] sm:$0xff] %v3681_v62  ;;  %v7086_v62 = vld [vmem:[#allocation80_spill] sm:$0xff] }
 0x4fd   : > { %v3266_v60 = vadd.f32 %v6327_v39, %v3153_v42 }
 0x4ff   : > { %v3598_v33 = vpop.f32.mrf.mxu1  ;;  %v3379_v19 = vadd.f32 %v6333_v10, %v3266_v60  ;;  %v7088_v60 = vld [vmem:[#allocation58_spill] sm:$0xff] }
 0x500   : > { %v3599_v4 = vadd.f32 %v3598_v33, %v3486_v28  ;;  %v3509_v18 = vpop.f32.mrf.mxu0 }
 0x501   : > { %v3492_v39 = vadd.f32 %v6339_v11, %v3379_v19 }
 0x502   : > { %v3682_v29 = vmax.f32 %v3599_v4, 0.0  ;;  %3645 = vmatmul.f32.gmra.mxu1 %v7057_v49  ;;  %v7083_v49 = vld [vmem:[#allocation93_spill] sm:$0xff]  ;;  %v3283_v17 = vpop.f32.mrf.mxu2 }
 0x503   : > { %v3156_v24 = vadd.f32 %v6084_v50, %v7083_v49  ;;  %v3396_v14 = vpop.f32.mrf.mxu3 }
 0x504   : > { %3714 = vst [vmem:[%s6324_s30 + $0x30] sm:$0xff] %v3682_v29 }
 0x505   : > { %v3269_v16 = vadd.f32 %v6342_v6, %v3156_v24 }
 0x507   : > { %v3601_v2 = vpop.f32.mrf.mxu1  ;;  %v3382_v54 = vadd.f32 %v6349_v8, %v3269_v16 }
 0x508   : > { %v3602_v63 = vadd.f32 %v3601_v2, %v3489_v41  ;;  %v3168_v41 = vadd.f32 %v6124_v34, %v7088_v60  ;;  %v7096_v60 = vld [vmem:[#allocation16_spill] sm:$0xff] }
 0x509   : > { %v3495_v6 = vadd.f32 %v6353_v15, %v3382_v54 }
 0x50a   : > { %v3683_v32 = vmax.f32 %v3602_v63, 0.0  ;;  %3648 = vmatmul.f32.gmra.mxu1 %v7060_v30  ;;  %v7084_v30 = vld [vmem:[#allocation23_spill] sm:$0xff]  ;;  %v3286_v8 = vpop.f32.mrf.mxu2 }
 0x50b   : > { %v3159_v52 = vadd.f32 %v7085_v1, %v7084_v30  ;;  %v3399_v15 = vpop.f32.mrf.mxu3 }
 0x50c   : > { %3715 = vst [vmem:[%s6324_s30 + $0x38] sm:$0xff] %v3683_v32 }
 0x50d   : > { %v3272_v50 = vadd.f32 %v6355_v9, %v3159_v52 }
 0x50f   : > { %v3604_v37 = vpop.f32.mrf.mxu1  ;;  %v3385_v27 = vadd.f32 %v3384_v40, %v3272_v50  ;;  %v7087_v40 = vld [vmem:[#allocation45_spill] sm:$0xff] }
 0x510   : > { %v3605_v20 = vadd.f32 %v3604_v37, %v3492_v39  ;;  %v3165_v4 = vadd.f32 %v6114_v47, %v7087_v40 }
 0x511   : > { %v3498_v57 = vadd.f32 %v6365_v26, %v3385_v27 }
 0x512   : > { %v3684_v10 = vmax.f32 %v3605_v20, 0.0  ;;  %3651 = vmatmul.f32.gmra.mxu1 %v7063_v48  ;;  %v3162_v48 = vadd.f32 %v6104_v23, %v7086_v62  ;;  %v3289_v25 = vpop.f32.mrf.mxu2  ;;  %v3278_v29 = vadd.f32 %v3277_v22, %v3165_v4  ;;  %v7093_v62 = vld [vmem:[#allocation32_spill] sm:$0xff]  ;;  %v7094_v4 = vld [vmem:[#allocation37_spill] sm:$0xff] }
 0x514   : > { %3716 = vst [vmem:[%s6324_s30 + $0x40] sm:$0xff] %v3684_v10  ;;  %v3275_v45 = vadd.f32 %v3274_v61, %v3162_v48  ;;  %v3391_v42 = vadd.f32 %v3390_v31, %v3278_v29  ;;  %v7089_v31 = vld [vmem:[#allocation39_spill] sm:$0xff] }
 0x515   : > { %v3171_v49 = vadd.f32 %v6134_v38, %v7089_v31 }
 0x516   : > { %v3388_v28 = vadd.f32 %v3387_v43, %v3275_v45  ;;  %v3402_v43 = vpop.f32.mrf.mxu3  ;;  %v3504_v47 = vadd.f32 %v3503_v5, %v3391_v42 }
 0x517   : > { %v3607_v11 = vpop.f32.mrf.mxu1  ;;  %v3284_v24 = vadd.f32 %v3283_v17, %v3171_v49 }
 0x518   : > { %v3608_v12 = vadd.f32 %v3607_v11, %v3495_v6  ;;  %v3501_v23 = vadd.f32 %v3500_v21, %v3388_v28  ;;  %v7091_v6 = vld [vmem:[#allocation48_spill] sm:$0xff] }
 0x519   : > { %v3397_v5 = vadd.f32 %v3396_v14, %v3284_v24  ;;  %v3177_v14 = vadd.f32 %v6155_v36, %v7091_v6  ;;  %v7099_v24 = vld [vmem:[#allocation26_spill] sm:$0xff] }
 0x51a   : > { %v3685_v7 = vmax.f32 %v3608_v12, 0.0  ;;  %3654 = vmatmul.f32.gmra.mxu1 %v5944_v0  ;;  %v3512_v0 = vpop.f32.mrf.mxu0  ;;  %v3292_v63 = vpop.f32.mrf.mxu2 }
 0x51b   : > { %v3510_v10 = vadd.f32 %v3509_v18, %v3397_v5 }
 0x51c   : > { %3717 = vst [vmem:[%s6324_s30 + $0x48] sm:$0xff] %v3685_v7 }
 0x51f   : > { %v3610_v9 = vpop.f32.mrf.mxu1 }
 0x520   : > { %v3611_v44 = vadd.f32 %v3610_v9, %v3498_v57 }
 0x522   : > { %v3686_v33 = vmax.f32 %v3611_v44, 0.0  ;;  %3657 = vmatmul.f32.gmra.mxu1 %v5967_v35  ;;  %v3281_v35 = vadd.f32 %v3280_v13, %v3168_v41  ;;  %v3515_v2 = vpop.f32.mrf.mxu0  ;;  %v3295_v37 = vpop.f32.mrf.mxu2  ;;  %v7097_v41 = vld [vmem:[#allocation79_spill] sm:$0xff] }
 0x524   : > { %3718 = vst [vmem:[%s6324_s30 + $0x50] sm:$0xff] %v3686_v33  ;;  %v3394_v22 = vadd.f32 %v3393_v55, %v3281_v35  ;;  %v7090_v55 = vld [vmem:[#allocation18_spill] sm:$0xff]  ;;  %v3186_v35 = vadd.f32 %v7097_v41, %v7096_v60 }
 0x525   : > { %v3174_v54 = vadd.f32 %v6146_v56, %v7090_v55 }
 0x526   : > { %v3507_v16 = vadd.f32 %v3506_v59, %v3394_v22 }
 0x527   : > { %v3613_v58 = vpop.f32.mrf.mxu1 }
 0x528   : > { %v3614_v61 = vadd.f32 %v3613_v58, %v3501_v23 }
 0x52a   : > { %v3687_v26 = vmax.f32 %v3614_v61, 0.0  ;;  %3660 = vmatmul.f32.gmra.mxu1 %v5985_v53  ;;  %v3405_v53 = vpop.f32.mrf.mxu3  ;;  %v3518_v39 = vpop.f32.mrf.mxu0 }
 0x52b   : > { %v3298_v50 = vpop.f32.mrf.mxu2 }
 0x52c   : > { %3719 = vst [vmem:[%s6324_s30 + $0x58] sm:$0xff] %v3687_v26 }
 0x52f   : > { %v3616_v19 = vpop.f32.mrf.mxu1 }
 0x530   : > { %v3617_v32 = vadd.f32 %v3616_v19, %v3504_v47  ;;  %v3299_v47 = vadd.f32 %v3298_v50, %v3186_v35 }
 0x532   : > { %v3688_v21 = vmax.f32 %v3617_v32, 0.0  ;;  %3663 = vmatmul.f32.gmra.mxu1 %v6289_v51  ;;  %v3287_v51 = vadd.f32 %v3286_v8, %v3174_v54  ;;  %v3408_v38 = vpop.f32.mrf.mxu3  ;;  %v3521_v59 = vpop.f32.mrf.mxu0  ;;  %v7092_v8 = vld [vmem:[#allocation60_spill] sm:$0xff] }
 0x533   : > { %v3180_v48 = vadd.f32 %v7093_v62, %v7092_v8  ;;  %v3301_v57 = vpop.f32.mrf.mxu2 }
 0x534   : > { %3720 = vst [vmem:[%s6324_s30 + $0x60] sm:$0xff] %v3688_v21  ;;  %v3400_v17 = vadd.f32 %v3399_v15, %v3287_v51 }
 0x535   : > { %v3293_v9 = vadd.f32 %v3292_v63, %v3180_v48 }
 0x536   : > { %v3513_v11 = vadd.f32 %v3512_v0, %v3400_v17  ;;  %v7095_v0 = vld [vmem:[#allocation54_spill] sm:$0xff] }
 0x537   : > { %v3619_v34 = vpop.f32.mrf.mxu1  ;;  %v3406_v28 = vadd.f32 %v3405_v53, %v3293_v9  ;;  %v7098_v53 = vld [vmem:[#allocation50_spill] sm:$0xff]  ;;  %v7104_v9 = vld [vmem:[#allocation24_spill] sm:$0xff] }
 0x538   : > { %v3620_v13 = vadd.f32 %v3619_v34, %v3507_v16  ;;  %v3189_v16 = vadd.f32 %v7099_v24, %v7098_v53 }
 0x539   : > { %v3519_v23 = vadd.f32 %v3518_v39, %v3406_v28 }
 0x53a   : > { %v3689_v20 = vmax.f32 %v3620_v13, 0.0  ;;  %3666 = vmatmul.f32.gmra.mxu1 %v6305_v46  ;;  %v3290_v46 = vadd.f32 %v3289_v25, %v3177_v14  ;;  %v3411_v27 = vpop.f32.mrf.mxu3  ;;  %v3524_v45 = vpop.f32.mrf.mxu0  ;;  %v3183_v25 = vadd.f32 %v7095_v0, %v7094_v4  ;;  %v3302_v34 = vadd.f32 %v3301_v57, %v3189_v16 }
 0x53b   : > { %v3304_v58 = vpop.f32.mrf.mxu2  ;;  %v3412_v31 = vadd.f32 %v3411_v27, %v3299_v47 }
 0x53c   : > { %3721 = vst [vmem:[%s6324_s30 + $0x68] sm:$0xff] %v3689_v20  ;;  %v3403_v18 = vadd.f32 %v3402_v43, %v3290_v46  ;;  %v3296_v29 = vadd.f32 %v3295_v37, %v3183_v25  ;;  %v7102_v46 = vld [vmem:[#allocation62_spill] sm:$0xff] }
 0x53d   : > { %v3525_v39 = vadd.f32 %v3524_v45, %v3412_v31 }
 0x53e   : > { %v3516_v44 = vadd.f32 %v3515_v2, %v3403_v18  ;;  %v3409_v26 = vadd.f32 %v3408_v38, %v3296_v29  ;;  %v7101_v38 = vld [vmem:[#allocation83_spill] sm:$0xff] }
 0x53f   : > { %v3622_v30 = vpop.f32.mrf.mxu1 }
 0x540   : > { %v3623_v1 = vadd.f32 %v3622_v30, %v3510_v10  ;;  %v3522_v63 = vadd.f32 %v3521_v59, %v3409_v26  ;;  %v7100_v10 = vld [vmem:[#allocation44_spill] sm:$0xff] }
 0x541   : > { %v3192_v30 = vadd.f32 %v7101_v38, %v7100_v10 }
 0x542   : > { %v3690_v52 = vmax.f32 %v3623_v1, 0.0  ;;  %3669 = vmatmul.f32.gmra.mxu1 %v7074_v3  ;;  %v3414_v40 = vpop.f32.mrf.mxu3 }
 0x543   : > { %v3307_v21 = vpop.f32.mrf.mxu2  ;;  %v3415_v20 = vadd.f32 %v3414_v40, %v3302_v34  ;;  %v3305_v1 = vadd.f32 %v3304_v58, %v3192_v30 }
 0x544   : > { %3722 = vst [vmem:[%s6324_s30 + $0x70] sm:$0xff] %v3690_v52 }
 0x547   : > { %v3625_v56 = vpop.f32.mrf.mxu1 }
 0x548   : > { %v3626_v12 = vadd.f32 %v3625_v56, %v3513_v11  ;;  %v7103_v11 = vld [vmem:[#allocation51_spill] sm:$0xff] }
 0x549   : > { %v3195_v56 = vadd.f32 %v7103_v11, %v7102_v46 }
 0x54a   : > { %v3691_v7 = vmax.f32 %v3626_v12, 0.0  ;;  %3672 = vmatmul.f32.gmra.mxu1 %v7074_v3  ;;  %v3527_v3 = vpop.f32.mrf.mxu0  ;;  %v3417_v2 = vpop.f32.mrf.mxu3 }
 0x54b   : > { %v3310_v51 = vpop.f32.mrf.mxu2  ;;  %v3528_v17 = vadd.f32 %v3527_v3, %v3415_v20  ;;  %v3418_v6 = vadd.f32 %v3417_v2, %v3305_v1  ;;  %v3308_v18 = vadd.f32 %v3307_v21, %v3195_v56  ;;  %v7106_v3 = vld [vmem:[#allocation46_spill] sm:$0xff]  ;;  %v7112_v1 = vld [vmem:[#allocation52_spill] sm:$0xff] }
 0x54c   : > { %3723 = vst [vmem:[%s6324_s30 + $0x78] sm:$0xff] %v3691_v7 }
 0x54f   : > { %v3628_v36 = vpop.f32.mrf.mxu1 }
 0x550   : > { %v3629_v15 = vadd.f32 %v3628_v36, %v3516_v44  ;;  %v7105_v44 = vld [vmem:[#allocation78_spill] sm:$0xff] }
 0x551   : > { %v3198_v36 = vadd.f32 %v7105_v44, %v7104_v9 }
 0x552   : > { %v3692_v33 = vmax.f32 %v3629_v15, 0.0  ;;  %v3530_v32 = vpop.f32.mrf.mxu0  ;;  %v3420_v13 = vpop.f32.mrf.mxu3 }
 0x553   : > { %v3313_v27 = vpop.f32.mrf.mxu2  ;;  %v3531_v7 = vadd.f32 %v3530_v32, %v3418_v6  ;;  %v3421_v48 = vadd.f32 %v3420_v13, %v3308_v18  ;;  %v3311_v15 = vadd.f32 %v3310_v51, %v3198_v36  ;;  %v7110_v13 = vld [vmem:[#allocation71_spill] sm:$0xff] }
 0x554   : > { %3724 = vst [vmem:[%s6324_s30 + $0x80] sm:$0xff] %v3692_v33  ;;  %v7114_v18 = vld [vmem:[#allocation27_spill] sm:$0xff] }
 0x557   : > { %v3631_v61 = vpop.f32.mrf.mxu1 }
 0x558   : > { %v3632_v42 = vadd.f32 %v3631_v61, %v3519_v23  ;;  %v7107_v23 = vld [vmem:[#allocation28_spill] sm:$0xff] }
 0x559   : > { %v3201_v58 = vadd.f32 %v7107_v23, %v7106_v3 }
 0x55a   : > { %v3693_v43 = vmax.f32 %v3632_v42, 0.0  ;;  %v3533_v55 = vpop.f32.mrf.mxu0  ;;  %v3423_v50 = vpop.f32.mrf.mxu3 }
 0x55b   : > { %v3534_v33 = vadd.f32 %v3533_v55, %v3421_v48  ;;  %v3316_v40 = vpop.f32.mrf.mxu2  ;;  %v3424_v25 = vadd.f32 %v3423_v50, %v3311_v15  ;;  %v3314_v42 = vadd.f32 %v3313_v27, %v3201_v58 }
 0x55c   : > { %3725 = vst [vmem:[%s6324_s30 + $0x88] sm:$0xff] %v3693_v43 }
 0x55f   : > { %v3634_v19 = vpop.f32.mrf.mxu1 }
 0x560   : > { %v3635_v22 = vadd.f32 %v3634_v19, %v3522_v63  ;;  %v7108_v63 = vld [vmem:[#allocation47_spill] sm:$0xff]  ;;  %v7109_v19 = vld [vmem:[#allocation34_spill] sm:$0xff] }
 0x561   : > { %v3204_v32 = vadd.f32 %v7109_v19, %v7108_v63 }
 0x562   : > { %v3694_v49 = vmax.f32 %v3635_v22, 0.0  ;;  %v3536_v12 = vpop.f32.mrf.mxu0  ;;  %v3426_v57 = vpop.f32.mrf.mxu3 }
 0x563   : > { %v3537_v26 = vadd.f32 %v3536_v12, %v3424_v25  ;;  %v3319_v35 = vpop.f32.mrf.mxu2  ;;  %v3427_v2 = vadd.f32 %v3426_v57, %v3314_v42  ;;  %v3317_v22 = vadd.f32 %v3316_v40, %v3204_v32 }
 0x564   : > { %3726 = vst [vmem:[%s6324_s30 + $0x90] sm:$0xff] %v3694_v49 }
 0x567   : > { %v3637_v37 = vpop.f32.mrf.mxu1 }
 0x568   : > { %v3638_v5 = vadd.f32 %v3637_v37, %v3525_v39  ;;  %v7111_v37 = vld [vmem:[#allocation66_spill] sm:$0xff] }
 0x56a   : > { %v3695_v54 = vmax.f32 %v3638_v5, 0.0  ;;  %v3539_v28 = vpop.f32.mrf.mxu0  ;;  %v3429_v61 = vpop.f32.mrf.mxu3  ;;  %v3207_v5 = vadd.f32 %v7111_v37, %v7110_v13 }
 0x56b   : > { %v3540_v21 = vadd.f32 %v3539_v28, %v3427_v2  ;;  %v3430_v24 = vadd.f32 %v3429_v61, %v3317_v22  ;;  %v3322_v39 = vpop.f32.mrf.mxu2  ;;  %v7116_v28 = vld [vmem:[#allocation25_spill] sm:$0xff] }
 0x56c   : > { %3727 = vst [vmem:[%s6324_s30 + $0x98] sm:$0xff] %v3695_v54  ;;  %v3320_v20 = vadd.f32 %v3319_v35, %v3207_v5 }
 0x56f   : > { %v3640_v59 = vpop.f32.mrf.mxu1 }
 0x570   : > { %v3641_v52 = vadd.f32 %v3640_v59, %v3528_v17  ;;  %v7113_v17 = vld [vmem:[#allocation53_spill] sm:$0xff] }
 0x571   : > { %v3210_v59 = vadd.f32 %v7113_v17, %v7112_v1 }
 0x572   : > { %v3696_v14 = vmax.f32 %v3641_v52, 0.0  ;;  %v3542_v60 = vpop.f32.mrf.mxu0  ;;  %v3432_v31 = vpop.f32.mrf.mxu3 }
 0x573   : > { %v3543_v55 = vadd.f32 %v3542_v60, %v3430_v24  ;;  %v3433_v38 = vadd.f32 %v3432_v31, %v3320_v20  ;;  %v3325_v50 = vpop.f32.mrf.mxu2  ;;  %v3323_v6 = vadd.f32 %v3322_v39, %v3210_v59  ;;  %v7120_v31 = vld [vmem:[#allocation49_spill] sm:$0xff] }
 0x574   : > { %3728 = vst [vmem:[%s6324_s30 + $0xa0] sm:$0xff] %v3696_v14 }
 0x577   : > { %v3643_v8 = vpop.f32.mrf.mxu1 }
 0x578   : > { %v3644_v62 = vadd.f32 %v3643_v8, %v3531_v7  ;;  %v7115_v7 = vld [vmem:[#allocation92_spill] sm:$0xff] }
 0x579   : > { %v3213_v8 = vadd.f32 %v7115_v7, %v7114_v18 }
 0x57a   : > { %v3697_v45 = vmax.f32 %v3644_v62, 0.0  ;;  %v3545_v16 = vpop.f32.mrf.mxu0  ;;  %v3435_v10 = vpop.f32.mrf.mxu3 }
 0x57b   : > { %v3546_v14 = vadd.f32 %v3545_v16, %v3433_v38  ;;  %v3436_v56 = vadd.f32 %v3435_v10, %v3323_v6  ;;  %v3326_v48 = vadd.f32 %v3325_v50, %v3213_v8  ;;  %v3328_v57 = vpop.f32.mrf.mxu2 }
 0x57c   : > { %3729 = vst [vmem:[%s6324_s30 + $0xa8] sm:$0xff] %v3697_v45 }
 0x57f   : > { %v3646_v4 = vpop.f32.mrf.mxu1 }
 0x580   : > { %v3647_v0 = vadd.f32 %v3646_v4, %v3534_v33  ;;  %v7117_v33 = vld [vmem:[#allocation38_spill] sm:$0xff] }
 0x581   : > { %v3216_v40 = vadd.f32 %v7117_v33, %v7116_v28 }
 0x582   : > { %v3698_v29 = vmax.f32 %v3647_v0, 0.0  ;;  %v3548_v52 = vpop.f32.mrf.mxu0  ;;  %v3438_v27 = vpop.f32.mrf.mxu3 }
 0x583   : > { %v3549_v45 = vadd.f32 %v3548_v52, %v3436_v56  ;;  %v3439_v36 = vadd.f32 %v3438_v27, %v3326_v48  ;;  %v3329_v0 = vadd.f32 %v3328_v57, %v3216_v40  ;;  %v3331_v58 = vpop.f32.mrf.mxu2 }
 0x584   : > { %3730 = vst [vmem:[%s6324_s30 + $0xb0] sm:$0xff] %v3698_v29 }
 0x587   : > { %v3649_v43 = vpop.f32.mrf.mxu1 }
 0x588   : > { %v3650_v41 = vadd.f32 %v3649_v43, %v3537_v26  ;;  %v7118_v26 = vld [vmem:[#allocation74_spill] sm:$0xff] }
 0x589   : > { %v7119_v43 = vld [vmem:[#allocation30_spill] sm:$0xff] }
 0x58a   : > { %v3699_v47 = vmax.f32 %v3650_v41, 0.0  ;;  %v3551_v62 = vpop.f32.mrf.mxu0  ;;  %v3441_v4 = vpop.f32.mrf.mxu3  ;;  %v3219_v60 = vadd.f32 %v7119_v43, %v7118_v26 }
 0x58b   : > { %v3552_v25 = vadd.f32 %v3551_v62, %v3439_v36  ;;  %v3442_v61 = vadd.f32 %v3441_v4, %v3329_v0 }
 0x58c   : > { %3731 = vst [vmem:[%s6324_s30 + $0xb8] sm:$0xff] %v3699_v47  ;;  %v3332_v35 = vadd.f32 %v3331_v58, %v3219_v60 }
 0x58f   : > { %v3652_v49 = vpop.f32.mrf.mxu1 }
 0x590   : > { %v3653_v53 = vadd.f32 %v3652_v49, %v3540_v21  ;;  %v3334_v21 = vpop.f32.mrf.mxu2  ;;  %v7121_v49 = vld [vmem:[#allocation40_spill] sm:$0xff] }
 0x592   : > { %v3700_v34 = vmax.f32 %v3653_v53, 0.0  ;;  %v3554_v23 = vpop.f32.mrf.mxu0  ;;  %v3444_v41 = vpop.f32.mrf.mxu3  ;;  %v3222_v53 = vadd.f32 %v7121_v49, %v7120_v31 }
 0x593   : > { %v3555_v2 = vadd.f32 %v3554_v23, %v3442_v61  ;;  %v3445_v32 = vadd.f32 %v3444_v41, %v3332_v35 }
 0x594   : > { %3732 = vst [vmem:[%s6324_s30 + $0xc0] sm:$0xff] %v3700_v34  ;;  %v3335_v16 = vadd.f32 %v3334_v21, %v3222_v53 }
 0x597   : > { %v3655_v54 = vpop.f32.mrf.mxu1 }
 0x598   : > { %v3656_v51 = vadd.f32 %v3655_v54, %v3543_v55 }
 0x59a   : > { %v3701_v30 = vmax.f32 %v3656_v51, 0.0  ;;  %v3557_v19 = vpop.f32.mrf.mxu0  ;;  %v3447_v34 = vpop.f32.mrf.mxu3 }
 0x59b   : > { %v3558_v24 = vadd.f32 %v3557_v19, %v3445_v32  ;;  %v3448_v37 = vadd.f32 %v3447_v34, %v3335_v16 }
 0x59c   : > { %3733 = vst [vmem:[%s6324_s30 + $0xc8] sm:$0xff] %v3701_v30 }
 0x59f   : > { %v3658_v46 = vpop.f32.mrf.mxu1 }
 0x5a0   : > { %v3659_v11 = vadd.f32 %v3658_v46, %v3546_v14 }
 0x5a2   : > { %v3702_v12 = vmax.f32 %v3659_v11, 0.0  ;;  %v3560_v20 = vpop.f32.mrf.mxu0 }
 0x5a3   : > { %v3561_v55 = vadd.f32 %v3560_v20, %v3448_v37 }
 0x5a4   : > { %3734 = vst [vmem:[%s6324_s30 + $0xd0] sm:$0xff] %v3702_v12 }
 0x5a7   : > { %v3661_v9 = vpop.f32.mrf.mxu1 }
 0x5a8   : > { %v3662_v44 = vadd.f32 %v3661_v9, %v3549_v45 }
 0x5aa   : > { %v3703_v15 = vmax.f32 %v3662_v44, 0.0 }
 0x5ac   : > { %3735 = vst [vmem:[%s6324_s30 + $0xd8] sm:$0xff] %v3703_v15 }
 0x5af   : > { %v3664_v29 = vpop.f32.mrf.mxu1 }
 0x5b0   : > { %v3665_v3 = vadd.f32 %v3664_v29, %v3552_v25 }
 0x5b2   : > { %v3704_v42 = vmax.f32 %v3665_v3, 0.0 }
 0x5b4   : > { %3736 = vst [vmem:[%s6324_s30 + $0xe0] sm:$0xff] %v3704_v42 }
 0x5b7   : > { %v3667_v47 = vpop.f32.mrf.mxu1 }
 0x5b8   : > { %v3668_v63 = vadd.f32 %v3667_v47, %v3555_v2 }
 0x5ba   : > { %v3705_v22 = vmax.f32 %v3668_v63, 0.0 }
 0x5bc   : > { %3737 = vst [vmem:[%s6324_s30 + $0xe8] sm:$0xff] %v3705_v22 }
 0x5bf   : > { %v3670_v39 = vpop.f32.mrf.mxu1 }
 0x5c0   : > { %v3671_v13 = vadd.f32 %v3670_v39, %v3558_v24 }
 0x5c2   : > { %v3706_v5 = vmax.f32 %v3671_v13, 0.0 }
 0x5c4   : > { %3738 = vst [vmem:[%s6324_s30 + $0xf0] sm:$0xff] %v3706_v5 }
 0x5c7   : > { %v3673_v54 = vpop.f32.mrf.mxu1 }
 0x5c8   : > { %v3674_v51 = vadd.f32 %v3673_v54, %v3561_v55 }
 0x5ca   : > { %v3707_v10 = vmax.f32 %v3674_v51, 0.0 }
 0x5cc   : > { %3739 = vst [vmem:[%s6324_s30 + $0xf8] sm:$0xff] %v3707_v10 }
 0x5cd   : > { %4121 = shalt.err (!%p4118_p10)
}
 0x5ce   : > { %s4171_s8 = smov 128   ;;  %s4172_s27 = smov 8  }
 0x5cf   : > { %3910 = dma.vmem_to_hbm [thread:$0]  (%p4275_p3), %s3754_s16, 4096, %s3756_s28, %s3741_s24, %s4171_s8, %s4171_s8, %s4172_s27  }
 0x5d0 PF: > { %s3770_s30 = sand.u32 1, %s4152_s18   ;;  %p7122_p12 = scmp.ge.s32.totalorder %s4164_s21, 2 }
 0x5d1   : > { %s3771_s6 = scalar_lea.sflag [#allocation6], %s3770_s30 }
 0x5d2   : > { %p3924_p13 = pnand %p7122_p12, %p4238_p6 }
 0x5d4   : > { %p3925_p0 = pneg %p3924_p13 }
 0x5d6   : > { %4147 = dma.done.wait (%p3925_p0), %s3771_s6, 4096  }
 0x5d7   : > { %4149 = vsyncadd (%p3925_p0), %s3771_s6, 4294963200  ;;  %p19_p5 = scmp.ge.s32.totalorder %s4265_s14, 4   ;;  %s7123_s18 = smov %s4156_s19 }
 0x5d8   : > { %s7124_s19 = smov %s4160_s20  ;;  %s7125_s20 = smov %s4281_s23 }
 0x5d9   : > { %s7126_s21 = smov %s4265_s14  ;;  %21 = sbr.rel (!%p19_p5) target bundleno = 6 (0x6), region = 95 }
 0x5de   :  { %3777 = vsyncpa [#allocation5], 1 }
 0x5df   :  { %3779 = vsyncpa [#allocation5 + $0x1], 1 }
 0x5e0   :  { %3780 = vsyncpa [#allocation8], 1 }
 0x5e1   :  { %3781 = vsyncpa [#allocation6], 1 }
 0x5e2   :  { %3783 = vsyncpa [#allocation6 + $0x1], 1 }

</bundles_post_ra>
